<compile_context>
chip_gen: v7x
topology: tpu7x:2x2x1
jax: 0.10.0
libtpu: 0.0.40
codegen_flags: <defaults>
</compile_context>

<pallas_src>
import jax
import jax.numpy as jnp
from jax.experimental import pallas as pl
from jax.experimental.pallas import tpu as pltpu

NUM_HIDDEN = 128
PROJ_DIM = 128


def attention_kernel(v_ref, q_ref, maskb_ref, wv_ref, wq_ref, bsum_ref, wa_ref,
                     att_ref, watt_ref):
    # Per-grid-step shapes (Bt batch rows):
    #   v_ref     : (Bt, K, H) f32|bf16   q_ref    : (Bt, H) f32
    #   maskb_ref : (Bt, K)    f32        wv/wq    : (H, P)  bf16
    #   bsum_ref  : (1, P)     f32        wa_ref   : (1, P)  f32
    #   att_ref   : (Bt, H)    f32        watt_ref : (Bt, K) f32
    Bt, K, H = v_ref.shape
    P = wv_ref.shape[1]

    # FCNet v/q projections (weight-normed Linear; dropout = identity at eval).
    # bf16 MXU operands, f32 accumulation.  v_ref is read and immediately cast;
    # the wide tile is NOT kept live across the score path (vreg pressure).
    v_proj = jnp.dot(v_ref[...].reshape(Bt * K, H).astype(jnp.bfloat16),
                     wv_ref[...], preferred_element_type=jnp.float32)   # (Bt*K, P)
    q_proj = jnp.dot(q_ref[...].astype(jnp.bfloat16), wq_ref[...],
                     preferred_element_type=jnp.float32)                # (Bt, P)

    # Fold the (bv + bq) bias into the K-times-smaller (Bt, P) tensor before
    # broadcasting over K, then relu -- all f32 on the VPU.
    qb = q_proj + bsum_ref[...]                                         # (Bt, P)
    h = jnp.maximum(v_proj.reshape(Bt, K, P) + qb[:, None, :], 0.0)     # (Bt, K, P)

    # Attention logits: Linear(P -> 1) as VPU multiply + lane (XLU) reduction;
    # the additive mask bias (and ba) was pre-folded in the wrapper.
    scores = jnp.sum(h * wa_ref[...], axis=-1) + maskb_ref[...]         # (Bt, K)

    # Masked softmax over K (lane axis), f32.  Exact normalization: one divide
    # per Bt rows is invisible next to the DMA / per-step overhead.
    m = jnp.max(scores, axis=-1, keepdims=True)                         # (Bt, 1)
    e = jnp.exp(scores - m)                                             # (Bt, K)
    w = e / jnp.sum(e, axis=-1, keepdims=True)                          # (Bt, K)
    watt_ref[...] = w

    # Weighted-sum pooling.  Re-read v from VMEM (cheap vld) instead of reusing
    # a long-lived register copy; accumulate in f32 even if v arrived as bf16.
    att_ref[...] = jnp.sum(v_ref[...].astype(jnp.float32) * w[:, :, None],
                           axis=1)                                      # (Bt, H)


# ----------------------------- wrapper-side glue -----------------------------
def _device_kind():
    try:
        return jax.devices()[0].device_kind.lower()
    except Exception:
        return ""


def _num_tensorcores(kind):
    # Chips whose 2 TensorCores get sharded grid steps via
    # dimension_semantics=("parallel",): v7x and the v4/v5p megacore parts.
    # v5e / v6e have a single TensorCore.
    return 2 if any(t in kind for t in ("v7", "v4", "v5p")) else 1


def _choose_block_b(B, K, H, num_tc, v_bytes, vmem_budget_bytes=24 << 20):
    """Largest per-step batch tile such that (a) the grid is the smallest possible
    multiple of num_tc (each step costs ~0.35us; even grid keeps v7x's 2 TCs
    balanced) and (b) the double-buffered v tile stays well inside VMEM.  The
    budget is sized against v7x's 64 MiB VMEM, not the 128 MiB of v5e/v6e."""
    max_bt = max(8, vmem_budget_bytes // (2 * K * H * v_bytes))
    steps = num_tc
    while -(-B // steps) > max_bt:
        steps += num_tc
    bt = -(-B // steps)
    return ((bt + 7) // 8) * 8                  # sublane-align


def attention_forward(v, q, mask, params, block_b=None, v_bf16=None):
    """v: (B,K,H) f32, q: (B,H) f32, mask: (B,K) f32.

    Returns (att: (B,H) f32, w_att: (B,K,1) f32)."""
    B, K, H = v.shape
    Wv, bv, Wq, bq, Wa, ba = params            # PyTorch (out, in) layouts
    P = Wv.shape[0]

    kind = _device_kind()
    num_tc = _num_tensorcores(kind)
    if v_bf16 is None:
        # v is the only non-trivial HBM stream; halve it on bandwidth-poor v5e.
        v_bf16 = ("v5e" in kind) or ("v5 lite" in kind)
    v = v.astype(jnp.bfloat16) if v_bf16 else v.astype(jnp.float32)

    # --- one-time wrapper-side parameter prep ---
    wv = Wv.T.astype(jnp.bfloat16)             # (H, P)
    wq = Wq.T.astype(jnp.bfloat16)             # (H, P)
    b_sum = (bv + bq).reshape(1, P).astype(jnp.float32)
    wa = Wa.reshape(1, P).astype(jnp.float32)
    # (1 - mask) * (-10000) + ba folded into one lane-dense additive bias
    # (exact; softmax is shift-equivariant).
    mask_bias = ((mask - 1.0) * 10000.0 + ba[0]).astype(jnp.float32)  # (B, K)

    if block_b is None:
        Bt = _choose_block_b(B, K, H, num_tc, v.dtype.itemsize)
    else:
        Bt = ((min(block_b, B) + 7) // 8) * 8
    Bt = min(Bt, ((B + 7) // 8) * 8)
    Bp = -(-B // Bt) * Bt
    if Bp != B:                                # pad batch to a Bt multiple
        pad = Bp - B
        v = jnp.pad(v, ((0, pad), (0, 0), (0, 0)))
        q = jnp.pad(q, ((0, pad), (0, 0)))
        mask_bias = jnp.pad(mask_bias, ((0, pad), (0, 0)))

    att, w_att = pl.pallas_call(
        attention_kernel,
        out_shape=(
            jax.ShapeDtypeStruct((Bp, H), jnp.float32),
            jax.ShapeDtypeStruct((Bp, K), jnp.float32),
        ),
        grid_spec=pltpu.PrefetchScalarGridSpec(
            num_scalar_prefetch=0,
            grid=(Bp // Bt,),
            in_specs=[
                pl.BlockSpec((Bt, K, H), lambda b: (b, 0, 0)),   # v
                pl.BlockSpec((Bt, H),    lambda b: (b, 0)),      # q
                pl.BlockSpec((Bt, K),    lambda b: (b, 0)),      # mask bias (lane-dense)
                pl.BlockSpec((H, P),     lambda b: (0, 0)),      # Wv (in,out) bf16
                pl.BlockSpec((H, P),     lambda b: (0, 0)),      # Wq (in,out) bf16
                pl.BlockSpec((1, P),     lambda b: (0, 0)),      # bv + bq
                pl.BlockSpec((1, P),     lambda b: (0, 0)),      # wa row
            ],
            out_specs=[
                pl.BlockSpec((Bt, H), lambda b: (b, 0)),         # att
                pl.BlockSpec((Bt, K), lambda b: (b, 0)),         # w_att
            ],
        ),
        compiler_params=pltpu.CompilerParams(
            dimension_semantics=("parallel",)),                  # shard steps on 2-TC chips
    )(v, q, mask_bias, wv, wq, b_sum, wa)

    return att[:B], w_att[:B].reshape(B, K, 1)


# -------- deterministic parameter init (mirrors nn.Linear + weight_norm) --------
def init_fcnet(key, in_dim, out_dim):
    k1, k2 = jax.random.split(key)
    bound = 1.0 / jnp.sqrt(in_dim)
    W = jax.random.uniform(k1, (out_dim, in_dim), jnp.float32, -bound, bound)
    b = jax.random.uniform(k2, (out_dim,), jnp.float32, -bound, bound)
    # weight_norm(dim=None): g = ||W||_F at init, W_eff = g * W / ||W||_F
    g = jnp.sqrt(jnp.sum(W * W))
    W_eff = g * W / jnp.sqrt(jnp.sum(W * W))
    return W_eff, b


def reference(v, q, mask, Wv, bv, Wq, bq, Wa, ba):
    v_proj = v @ Wv.T + bv
    q_proj = (q @ Wq.T + bq)[:, None, :]
    h = jax.nn.relu(v_proj + q_proj)
    proj = (h @ Wa.T + ba)[..., 0]                 # squeeze -> (B, K)
    proj = proj + (1.0 - mask) * (-10000.0)
    w = jax.nn.softmax(proj, axis=1)
    w_att = w[..., None]
    att = jnp.sum(v * w_att, axis=1)
    return att, w_att


if __name__ == "__main__":
    B, K, H = 32, 16, NUM_HIDDEN     # 1-TC chips: Bt=32, grid=1; v7x: Bt=16, grid=2

    key = jax.random.PRNGKey(0)
    kv, kq, km, k1, k2, k3 = jax.random.split(key, 6)

    v = jax.random.normal(kv, (B, K, H), jnp.float32)
    q = jax.random.normal(kq, (B, H), jnp.float32)
    mask = (jax.random.uniform(km, (B, K)) > 0.3).astype(jnp.float32)

    Wv, bv = init_fcnet(k1, NUM_HIDDEN, PROJ_DIM)
    Wq, bq = init_fcnet(k2, NUM_HIDDEN, PROJ_DIM)
    Wa, ba = init_fcnet(k3, PROJ_DIM, 1)

    att, w_att = attention_forward(v, q, mask, (Wv, bv, Wq, bq, Wa, ba))
    jax.block_until_ready((att, w_att))

    att_ref, w_att_ref = reference(v, q, mask, Wv, bv, Wq, bq, Wa, ba)
    # Tolerances account for the bf16 MXU operands (Wv/Wq and, on v5e, v itself);
    # the softmax normalization is now exact.
    assert jnp.allclose(att, att_ref, atol=2e-2, rtol=2e-2), "att mismatch"
    assert jnp.allclose(w_att, w_att_ref, atol=5e-3, rtol=5e-2), "w_att mismatch"

    print("KERNEL_OK")
</pallas_src>

<mosaic_0001>
module attributes {stable_mosaic.version = 11 : i64} {
  func.func @attention_kernel(%arg0: i32, %arg1: memref<32x16x128xf32, #tpu.memory_space<vmem>>, %arg2: memref<32x128xf32, #tpu.memory_space<vmem>>, %arg3: memref<32x16xf32, #tpu.memory_space<vmem>>, %arg4: memref<128x128xbf16, #tpu.memory_space<vmem>>, %arg5: memref<128x128xbf16, #tpu.memory_space<vmem>>, %arg6: memref<1x128xf32, #tpu.memory_space<vmem>>, %arg7: memref<1x128xf32, #tpu.memory_space<vmem>>, %arg8: memref<32x128xf32, #tpu.memory_space<vmem>>, %arg9: memref<32x16xf32, #tpu.memory_space<vmem>>) attributes {dimension_semantics = [#tpu.dimension_semantics<parallel>], iteration_bounds = array<i64: 1>, scalar_prefetch = 0 : i64, scratch_operands = 0 : i64, tpu.core_type = #tpu.core_type<tc>, window_params = [{transform_indices = @transform_0, window_bounds = array<i64: 32, 16, 128>}, {transform_indices = @transform_1, window_bounds = array<i64: 32, 128>}, {transform_indices = @transform_2, window_bounds = array<i64: 32, 16>}, {pipeline_mode = #tpu.pipeline_mode<synchronous>, transform_indices = @transform_3, window_bounds = array<i64: 128, 128>}, {pipeline_mode = #tpu.pipeline_mode<synchronous>, transform_indices = @transform_4, window_bounds = array<i64: 128, 128>}, {pipeline_mode = #tpu.pipeline_mode<synchronous>, transform_indices = @transform_5, window_bounds = array<i64: 1, 128>}, {pipeline_mode = #tpu.pipeline_mode<synchronous>, transform_indices = @transform_6, window_bounds = array<i64: 1, 128>}, {transform_indices = @transform_7, window_bounds = array<i64: 32, 128>}, {transform_indices = @transform_8, window_bounds = array<i64: 32, 16>}]} {
    %c0 = arith.constant 0 : index
    %c0_0 = arith.constant 0 : index
    %c0_1 = arith.constant 0 : index
    %0 = vector.load %arg1[%c0, %c0_0, %c0_1] : memref<32x16x128xf32, #tpu.memory_space<vmem>>, vector<32x16x128xf32>
    %1 = vector.shape_cast %0 : vector<32x16x128xf32> to vector<512x128xf32>
    %2 = arith.truncf %1 : vector<512x128xf32> to vector<512x128xbf16>
    %c0_2 = arith.constant 0 : index
    %c0_3 = arith.constant 0 : index
    %3 = vector.load %arg4[%c0_2, %c0_3] : memref<128x128xbf16, #tpu.memory_space<vmem>>, vector<128x128xbf16>
    %cst = arith.constant dense<0.000000e+00> : vector<512x128xf32>
    %4 = tpu.matmul %2, %3, %cst {dimension_numbers = #tpu.dot_dimension_numbers<[1], [0], [0], [1], [0, 0, 1, 1], [], []>} : vector<512x128xbf16>, vector<128x128xbf16>, vector<512x128xf32> -> vector<512x128xf32>
    %c0_4 = arith.constant 0 : index
    %c0_5 = arith.constant 0 : index
    %5 = vector.load %arg2[%c0_4, %c0_5] : memref<32x128xf32, #tpu.memory_space<vmem>>, vector<32x128xf32>
    %6 = arith.truncf %5 : vector<32x128xf32> to vector<32x128xbf16>
    %c0_6 = arith.constant 0 : index
    %c0_7 = arith.constant 0 : index
    %7 = vector.load %arg5[%c0_6, %c0_7] : memref<128x128xbf16, #tpu.memory_space<vmem>>, vector<128x128xbf16>
    %cst_8 = arith.constant dense<0.000000e+00> : vector<32x128xf32>
    %8 = tpu.matmul %6, %7, %cst_8 {dimension_numbers = #tpu.dot_dimension_numbers<[1], [0], [0], [1], [0, 0, 1, 1], [], []>} : vector<32x128xbf16>, vector<128x128xbf16>, vector<32x128xf32> -> vector<32x128xf32>
    %c0_9 = arith.constant 0 : index
    %c0_10 = arith.constant 0 : index
    %9 = vector.load %arg6[%c0_9, %c0_10] : memref<1x128xf32, #tpu.memory_space<vmem>>, vector<1x128xf32>
    %10 = vector.broadcast %9 : vector<1x128xf32> to vector<32x128xf32>
    %11 = arith.addf %8, %10 : vector<32x128xf32>
    %12 = vector.shape_cast %4 : vector<512x128xf32> to vector<32x16x128xf32>
    %13 = vector.shape_cast %11 : vector<32x128xf32> to vector<32x1x128xf32>
    %14 = vector.broadcast %13 : vector<32x1x128xf32> to vector<32x16x128xf32>
    %15 = arith.addf %12, %14 : vector<32x16x128xf32>
    %cst_11 = arith.constant 0.000000e+00 : f32
    %16 = vector.broadcast %cst_11 : f32 to vector<32x16x128xf32>
    %17 = arith.maximumf %15, %16 : vector<32x16x128xf32>
    %c0_12 = arith.constant 0 : index
    %c0_13 = arith.constant 0 : index
    %18 = vector.load %arg7[%c0_12, %c0_13] : memref<1x128xf32, #tpu.memory_space<vmem>>, vector<1x128xf32>
    %19 = vector.shape_cast %18 : vector<1x128xf32> to vector<1x1x128xf32>
    %20 = vector.broadcast %19 : vector<1x1x128xf32> to vector<32x16x128xf32>
    %21 = arith.mulf %17, %20 : vector<32x16x128xf32>
    %cst_14 = arith.constant dense<0.000000e+00> : vector<32x16xf32>
    %22 = vector.multi_reduction <add>, %21, %cst_14 [2] : vector<32x16x128xf32> to vector<32x16xf32>
    %c0_15 = arith.constant 0 : index
    %c0_16 = arith.constant 0 : index
    %23 = vector.load %arg3[%c0_15, %c0_16] : memref<32x16xf32, #tpu.memory_space<vmem>>, vector<32x16xf32>
    %24 = arith.addf %22, %23 : vector<32x16xf32>
    %cst_17 = arith.constant dense<0xFF800000> : vector<32xf32>
    %25 = vector.multi_reduction <maximumf>, %24, %cst_17 [1] : vector<32x16xf32> to vector<32xf32>
    %26 = vector.shape_cast %25 : vector<32xf32> to vector<32x1xf32>
    %27 = vector.broadcast %26 : vector<32x1xf32> to vector<32x16xf32>
    %28 = arith.subf %24, %27 : vector<32x16xf32>
    %29 = math.exp %28 : vector<32x16xf32>
    %cst_18 = arith.constant dense<0.000000e+00> : vector<32xf32>
    %30 = vector.multi_reduction <add>, %29, %cst_18 [1] : vector<32x16xf32> to vector<32xf32>
    %31 = vector.shape_cast %30 : vector<32xf32> to vector<32x1xf32>
    %32 = vector.broadcast %31 : vector<32x1xf32> to vector<32x16xf32>
    %33 = arith.divf %29, %32 : vector<32x16xf32>
    %c0_19 = arith.constant 0 : index
    %c0_20 = arith.constant 0 : index
    %34 = vector.load %arg9[%c0_19, %c0_20] : memref<32x16xf32, #tpu.memory_space<vmem>>, vector<32x16xf32>
    tpu.vector_store %arg9[%c0_19, %c0_20], %33 {strides = array<i32>} : memref<32x16xf32, #tpu.memory_space<vmem>>, vector<32x16xf32>,
    %c0_21 = arith.constant 0 : index
    %c0_22 = arith.constant 0 : index
    %c0_23 = arith.constant 0 : index
    %35 = vector.load %arg1[%c0_21, %c0_22, %c0_23] : memref<32x16x128xf32, #tpu.memory_space<vmem>>, vector<32x16x128xf32>
    %36 = vector.shape_cast %33 : vector<32x16xf32> to vector<32x16x1xf32>
    %37 = vector.broadcast %36 : vector<32x16x1xf32> to vector<32x16x128xf32>
    %38 = arith.mulf %35, %37 : vector<32x16x128xf32>
    %cst_24 = arith.constant dense<0.000000e+00> : vector<32x128xf32>
    %39 = vector.multi_reduction <add>, %38, %cst_24 [1] : vector<32x16x128xf32> to vector<32x128xf32>
    %c0_25 = arith.constant 0 : index
    %c0_26 = arith.constant 0 : index
    %40 = vector.load %arg8[%c0_25, %c0_26] : memref<32x128xf32, #tpu.memory_space<vmem>>, vector<32x128xf32>
    tpu.vector_store %arg8[%c0_25, %c0_26], %39 {strides = array<i32>} : memref<32x128xf32, #tpu.memory_space<vmem>>, vector<32x128xf32>,
    return
  }
  func.func @transform_0(%arg0: i32) -> (i32, i32, i32) {
    %c0_i32 = arith.constant 0 : i32
    %c0_i32_0 = arith.constant 0 : i32
    %c0_i32_1 = arith.constant 0 : i32
    return %arg0, %c0_i32, %c0_i32_0 : i32, i32, i32
  }
  func.func @transform_1(%arg0: i32) -> (i32, i32) {
    %c0_i32 = arith.constant 0 : i32
    %c0_i32_0 = arith.constant 0 : i32
    return %arg0, %c0_i32 : i32, i32
  }
  func.func @transform_2(%arg0: i32) -> (i32, i32) {
    %c0_i32 = arith.constant 0 : i32
    %c0_i32_0 = arith.constant 0 : i32
    return %arg0, %c0_i32 : i32, i32
  }
  func.func @transform_3(%arg0: i32) -> (i32, i32) {
    %c0_i32 = arith.constant 0 : i32
    %c0_i32_0 = arith.constant 0 : i32
    %c0_i32_1 = arith.constant 0 : i32
    return %c0_i32, %c0_i32_0 : i32, i32
  }
  func.func @transform_4(%arg0: i32) -> (i32, i32) {
    %c0_i32 = arith.constant 0 : i32
    %c0_i32_0 = arith.constant 0 : i32
    %c0_i32_1 = arith.constant 0 : i32
    return %c0_i32, %c0_i32_0 : i32, i32
  }
  func.func @transform_5(%arg0: i32) -> (i32, i32) {
    %c0_i32 = arith.constant 0 : i32
    %c0_i32_0 = arith.constant 0 : i32
    %c0_i32_1 = arith.constant 0 : i32
    return %c0_i32, %c0_i32_0 : i32, i32
  }
  func.func @transform_6(%arg0: i32) -> (i32, i32) {
    %c0_i32 = arith.constant 0 : i32
    %c0_i32_0 = arith.constant 0 : i32
    %c0_i32_1 = arith.constant 0 : i32
    return %c0_i32, %c0_i32_0 : i32, i32
  }
  func.func @transform_7(%arg0: i32) -> (i32, i32) {
    %c0_i32 = arith.constant 0 : i32
    %c0_i32_0 = arith.constant 0 : i32
    return %arg0, %c0_i32 : i32, i32
  }
  func.func @transform_8(%arg0: i32) -> (i32, i32) {
    %c0_i32 = arith.constant 0 : i32
    %c0_i32_0 = arith.constant 0 : i32
    return %arg0, %c0_i32 : i32, i32
  }
}

</mosaic_0001>

<bundles_post_ra>
// kernel: tpu_custom_call.1
= control target key start
LH: loop header
LB: loop body
LE: loop exit
PB: predicated region body
PF: predicated region fallthrough
CT: control target
= control target key end

     0   :  { %14 = vsyncpa [#allocation3], 0  ;;  %s7509_s0 = inlined_call_operand.hbm [shape: f32[32,16,128], index: 0, kind: input, shape index: {}]   ;;  %s7510_s1 = inlined_call_operand.vmem [shape: f32[32,128], index: 1, kind: input, shape index: {}]   ;;  %s7511_s2 = inlined_call_operand.vmem [shape: f32[32,16], index: 2, kind: input, shape index: {}]   ;;  %s7512_s3 = inlined_call_operand.hbm [shape: bf16[128,128], index: 3, kind: input, shape index: {}]   ;;  %s7513_s4 = inlined_call_operand.hbm [shape: bf16[128,128], index: 4, kind: input, shape index: {}]   ;;  %s7514_s5 = inlined_call_operand.vmem [shape: f32[1,128], index: 5, kind: input, shape index: {}]   ;;  %s7515_s6 = inlined_call_operand.vmem [shape: f32[1,128], index: 6, kind: input, shape index: {}]   ;;  %s7516_s7 = inlined_call_operand.hbm [shape: f32[32,128], index: 7, kind: output, shape index: {0}]   ;;  %s7517_s8 = inlined_call_operand.vmem [shape: f32[32,16], index: 8, kind: output, shape index: {1}]  }
   0x1   :  { %15 = vsyncpa [#allocation6], 0 }
   0x2   :  { %16 = vsyncpa [#allocation4], 0  ;;  %s5209_s27 = smov [#allocation5]   ;;  %s5115_s9 = scalar_lea.hbm %s7512_s3, 1024 }
   0x3   :  { %s38_s28 = sshll.u32 %s5209_s27, 4  ;;  %p5116_p0 = scmp.ne.s32.totalorder %s7512_s3, %s5115_s9  ;;  %s39_s28 = int_to_ptr.vmem [resolvable:$true] %s38_s28 }
   0x4   :  { %p5119_p1 = scmp.lt.u32.totalorder %s5115_s9, %s7512_s3 }
   0x6   :  { %p5121_p2 = pnand %p5119_p1, %p5116_p0 }
   0x8   :  { %5124 = shalt.err (!%p5121_p2)
}
   0x9   :  { %s5125_s14 = scalar_lea.vmem %s39_s28, 1024  ;;  %p5130_p4 = scmp.lt.s32.totalorder %s39_s28, %s39_s28 }
   0xa   :  { %p5126_p3 = scmp.ne.s32.totalorder %s39_s28, %s5125_s14  ;;  %p5131_p5 = scmp.lt.s32.totalorder %s5125_s14, %s5125_s14 }
   0xc   :  { %p5132_p6 = por %p5131_p5, %p5130_p4 }
   0xe   :  { %p5133_p7 = pnand %p5132_p6, %p5126_p3 }
  0x10   :  { %5136 = shalt.err (!%p5133_p7)
}
  0x11   :  { %s5210_s15 = smov 64   ;;  %s5211_s16 = smov 4  }
  0x12   :  { %44 = dma.hbm_to_vmem [thread:$0]  %s7512_s3, 1024, %s39_s28, [#allocation6], %s5210_s15, %s5210_s15, %s5211_s16  }
  0x13   :  { %s5212_s19 = smov [#allocation2]   ;;  %s5137_s23 = scalar_lea.hbm %s7509_s0, 8192 }
  0x14   :  { %s22_s20 = sshll.u32 %s5212_s19, 4  ;;  %p5138_p8 = scmp.ne.s32.totalorder %s7509_s0, %s5137_s23  ;;  %s23_s20 = int_to_ptr.vmem [resolvable:$true] %s22_s20 }
  0x15   :  { %p5141_p9 = scmp.lt.u32.totalorder %s5137_s23, %s7509_s0 }
  0x17   :  { %p5143_p10 = pnand %p5141_p9, %p5138_p8 }
  0x19   :  { %5146 = shalt.err (!%p5143_p10)
}
  0x1a   :  { %s5147_s29 = scalar_lea.vmem %s23_s20, 8192  ;;  %p5152_p12 = scmp.lt.s32.totalorder %s23_s20, %s23_s20 }
  0x1b   :  { %p5148_p11 = scmp.ne.s32.totalorder %s23_s20, %s5147_s29  ;;  %p5153_p13 = scmp.lt.s32.totalorder %s5147_s29, %s5147_s29 }
  0x1d   :  { %p5154_p0 = por %p5153_p13, %p5152_p12 }
  0x1f   :  { %p5155_p1 = pnand %p5154_p0, %p5148_p11 }
  0x21   :  { %5158 = shalt.err (!%p5155_p1)
}
  0x22   :  { %s5213_s3 = smov 128   ;;  %s5214_s28 = smov 8  }
  0x23   :  { %28 = dma.hbm_to_vmem [thread:$0]  %s7509_s0, 8192, %s23_s20, [#allocation3], %s5213_s3, %s5213_s3, %s5214_s28  }
  0x24   :  { %s5215_s10 = smov [#allocation7]   ;;  %s5159_s14 = scalar_lea.hbm %s7513_s4, 1024 }
  0x25   :  { %s50_s11 = sshll.u32 %s5215_s10, 4  ;;  %p5160_p2 = scmp.ne.s32.totalorder %s7513_s4, %s5159_s14  ;;  %s51_s11 = int_to_ptr.vmem [resolvable:$true] %s50_s11 }
  0x26   :  { %p5163_p3 = scmp.lt.u32.totalorder %s5159_s14, %s7513_s4 }
  0x28   :  { %p5165_p4 = pnand %p5163_p3, %p5160_p2 }
  0x2a   :  { %5168 = shalt.err (!%p5165_p4)
}
  0x2b   :  { %s5169_s22 = scalar_lea.vmem %s51_s11, 1024  ;;  %p5174_p6 = scmp.lt.s32.totalorder %s51_s11, %s51_s11 }
  0x2c   :  { %p5170_p5 = scmp.ne.s32.totalorder %s51_s11, %s5169_s22  ;;  %p5175_p7 = scmp.lt.s32.totalorder %s5169_s22, %s5169_s22 }
  0x2e   :  { %p5176_p8 = por %p5175_p7, %p5174_p6 }
  0x30   :  { %p5177_p9 = pnand %p5176_p8, %p5170_p5 }
  0x32   :  { %5180 = shalt.err (!%p5177_p9)
}
  0x33   :  { %56 = dma.hbm_to_vmem [thread:$0]  %s7513_s4, 1024, %s51_s11, [#allocation6], %s5210_s15, %s5210_s15, %s5211_s16  }
  0x34   :  { %5203 = dma.done.wait [#allocation3], 8192  }
  0x35   :  { %5204 = vsyncadd [#allocation3], 4294959104 }
  0x36   :  { %5205 = dma.done.wait [#allocation6], 2048  }
  0x37   :  { %5206 = vsyncadd [#allocation6], 4294965248  ;;  %v4907_v0 = vld [vmem:[#allocation5] sm:$0xff]   ;;  %v4908_v1 = vld [vmem:[#allocation5 + $0x8] sm:$0xff]   ;;  %v7518_v18 = vlaneseq  ;;  %vm2088_vm0 = vcmask 130112   ;;  %vm2369_vm1 = vcmask 1041409  }
  0x38   :  { %4779 = vmatprep.subr.bf16.mxu0 %v4907_v0  ;;  %4879 = vmatprep.subr.bf16.mxu1 %v4907_v0  ;;  %v4909_v2 = vld [vmem:[#allocation5 + $0x10] sm:$0xff]   ;;  %v4910_v3 = vld [vmem:[#allocation5 + $0x18] sm:$0xff]   ;;  %v71_v4 = vld [vmem:[#allocation2] sm:$0xff]  ;;  %vm2373_vm2 = vcmask 1043459   ;;  %vm2371_vm3 = vcmask 1042434   ;;  %vm2375_vm4 = vcmask 1044484  }
  0x39   :  { %4780 = vmatpush3.bf16.msra.mxu0 %v4907_v0  ;;  %4887 = vmatpush3.bf16.msra.mxu1 %v4907_v0  ;;  %v72_v5 = vld [vmem:[#allocation2 + $0x8] sm:$0xff]  ;;  %v107_v6 = vld [vmem:[#allocation2 + $0x120] sm:$0xff]  ;;  %v4913_v12 = vld [vmem:[#allocation5 + $0x30] sm:$0xff]   ;;  %v5310_v27 = vshrl.u32 %v7518_v18, 7  ;;  %vm2377_vm5 = vcmask 1045509   ;;  %vm2379_vm6 = vcmask 1046534  }
  0x3a   :  { %4781 = vmatprep.subr.bf16.mxu0 %v4908_v1  ;;  %4880 = vmatprep.subr.bf16.mxu1 %v4908_v1  ;;  %v135_v7 = vpack.c.bf16 %v72_v5, %v71_v4  ;;  %v108_v8 = vld [vmem:[#allocation2 + $0x128] sm:$0xff]  ;;  %v4911_v10 = vld [vmem:[#allocation5 + $0x20] sm:$0xff]   ;;  %v4914_v13 = vld [vmem:[#allocation5 + $0x38] sm:$0xff]   ;;  %vm2381_vm7 = vcmask 1047559   ;;  %vm2408_vm8 = vcmask 130048  }
  0x3b   :  { %v153_v9 = vpack.c.bf16 %v108_v8, %v107_v6  ;;  %v4912_v11 = vld [vmem:[#allocation5 + $0x28] sm:$0xff]   ;;  %v73_v14 = vld [vmem:[#allocation2 + $0x10] sm:$0xff]  ;;  %v74_v15 = vld [vmem:[#allocation2 + $0x18] sm:$0xff]  ;;  %7627 = vst [vmem:[#allocation12_spill] sm:$0xff] %v5310_v27  ;;  %v5313_v36 = vsub.s32 0, %v5310_v27  ;;  %v5316_v40 = vsub.s32 1, %v5310_v27 }
  0x3c   :  { %4795 = vmatprep.mubr.bf16.mxu0 %v135_v7  ;;  %v109_v16 = vld [vmem:[#allocation2 + $0x130] sm:$0xff]  ;;  %v110_v17 = vld [vmem:[#allocation2 + $0x138] sm:$0xff]  ;;  %v4915_v19 = vld [vmem:[#allocation7] sm:$0xff]   ;;  %v136_v24 = vpack.c.bf16 %v74_v15, %v73_v14  ;;  %v5326_v47 = vsub.s32 2, %v5310_v27  ;;  %v5333_v62 = vsub.s32 3, %v5310_v27  ;;  %v5338_v5 = vsub.s32 4, %v5310_v27 }
  0x3d   :  { %4782 = vmatpush3.bf16.msra.mxu0 %v4908_v1  ;;  %4888 = vmatpush3.bf16.msra.mxu1 %v4908_v1  ;;  %v75_v20 = vld [vmem:[#allocation2 + $0x20] sm:$0xff]  ;;  %v76_v21 = vld [vmem:[#allocation2 + $0x28] sm:$0xff]  ;;  %v154_v25 = vpack.c.bf16 %v110_v17, %v109_v16  ;;  %v77_v30 = vld [vmem:[#allocation2 + $0x30] sm:$0xff]  ;;  %7628 = vst [vmem:[#allocation13_spill] sm:$0xff] %v5316_v40  ;;  %v5343_v16 = vsub.s32 5, %v5310_v27 }
  0x3e   :  { %4783 = vmatprep.subr.bf16.mxu0 %v4909_v2  ;;  %4881 = vmatprep.subr.bf16.mxu1 %v4909_v2  ;;  %v111_v22 = vld [vmem:[#allocation2 + $0x140] sm:$0xff]  ;;  %v112_v23 = vld [vmem:[#allocation2 + $0x148] sm:$0xff]  ;;  %v137_v26 = vpack.c.bf16 %v76_v21, %v75_v20  ;;  %v78_v31 = vld [vmem:[#allocation2 + $0x38] sm:$0xff]  ;;  %7629 = vst [vmem:[#allocation14_spill] sm:$0xff] %v5326_v47 }
  0x3f   :  { %4831 = vmatprep.mubr.bf16.mxu1 %v153_v9  ;;  %v155_v28 = vpack.c.bf16 %v112_v23, %v111_v22  ;;  %v4916_v29 = vld [vmem:[#allocation7 + $0x8] sm:$0xff]   ;;  %v113_v32 = vld [vmem:[#allocation2 + $0x150] sm:$0xff]  ;;  %v114_v33 = vld [vmem:[#allocation2 + $0x158] sm:$0xff]  ;;  %v138_v41 = vpack.c.bf16 %v78_v31, %v77_v30  ;;  %7630 = vst [vmem:[#allocation15_spill] sm:$0xff] %v5333_v62 }
  0x40   :  { %v4917_v34 = vld [vmem:[#allocation7 + $0x10] sm:$0xff]   ;;  %v79_v35 = vld [vmem:[#allocation2 + $0x40] sm:$0xff]  ;;  %v80_v37 = vld [vmem:[#allocation2 + $0x48] sm:$0xff]  ;;  %v156_v42 = vpack.c.bf16 %v114_v33, %v113_v32  ;;  %7631 = vst [vmem:[#allocation16_spill] sm:$0xff] %v5338_v5 }
  0x41   :  { %4784 = vmatpush3.bf16.msra.mxu0 %v4909_v2  ;;  %4889 = vmatpush3.bf16.msra.mxu1 %v4909_v2  ;;  %v115_v38 = vld [vmem:[#allocation2 + $0x160] sm:$0xff]  ;;  %v116_v39 = vld [vmem:[#allocation2 + $0x168] sm:$0xff]  ;;  %v139_v44 = vpack.c.bf16 %v80_v37, %v79_v35  ;;  %v4918_v48 = vld [vmem:[#allocation7 + $0x18] sm:$0xff]   ;;  %7632 = vst [vmem:[#allocation17_spill] sm:$0xff] %v5343_v16  ;;  %v5353_v35 = vsub.s32 7, %v5310_v27 }
  0x42   :  { %4785 = vmatprep.subr.bf16.mxu0 %v4910_v3  ;;  %4882 = vmatprep.subr.bf16.mxu1 %v4910_v3  ;;  %v5321_v43 = vld [vmem:[%s7511_s2] sm:$0xff]  ;;  %v157_v45 = vpack.c.bf16 %v116_v39, %v115_v38  ;;  %v81_v50 = vld [vmem:[#allocation2 + $0x50] sm:$0xff]  ;;  %v82_v51 = vld [vmem:[#allocation2 + $0x58] sm:$0xff] }
  0x43   :  { %v1344_v46 = vrot.slane %v5321_v43, %v5313_v36  ;;  %v1355_v49 = vrot.slane %v5321_v43, %v5316_v40  ;;  %v117_v52 = vld [vmem:[#allocation2 + $0x170] sm:$0xff]  ;;  %v118_v53 = vld [vmem:[#allocation2 + $0x178] sm:$0xff]  ;;  %v83_v54 = vld [vmem:[#allocation2 + $0x60] sm:$0xff]  ;;  %v1366_v58 = vrot.slane %v5321_v43, %v5326_v47  ;;  %v140_v60 = vpack.c.bf16 %v82_v51, %v81_v50  ;;  %7634 = vst [vmem:[#allocation19_spill] sm:$0xff] %v5353_v35 }
  0x44   :  { %v84_v55 = vld [vmem:[#allocation2 + $0x68] sm:$0xff]  ;;  %v119_v56 = vld [vmem:[#allocation2 + $0x180] sm:$0xff]  ;;  %v158_v61 = vpack.c.bf16 %v118_v53, %v117_v52  ;;  %v85_v2 = vld [vmem:[#allocation2 + $0x70] sm:$0xff]  ;;  %v1377_v4 = vrot.slane %v5321_v43, %v5333_v62  ;;  %v1388_v15 = vrot.slane %v5321_v43, %v5338_v5  ;;  %v1399_v23 = vrot.slane %v5321_v43, %v5343_v16 }
  0x45   :  { %4786 = vmatpush3.bf16.msra.mxu0 %v4910_v3  ;;  %4890 = vmatpush3.bf16.msra.mxu1 %v4910_v3  ;;  %v120_v57 = vld [vmem:[#allocation2 + $0x188] sm:$0xff]  ;;  %v4919_v59 = vld [vmem:[#allocation7 + $0x20] sm:$0xff]   ;;  %v141_v63 = vpack.c.bf16 %v84_v55, %v83_v54  ;;  %v86_v3 = vld [vmem:[#allocation2 + $0x78] sm:$0xff] }
  0x46   :  { %4787 = vmatprep.subr.bf16.mxu0 %v4911_v10  ;;  %4883 = vmatprep.subr.bf16.mxu1 %v4911_v10  ;;  %v159_v0 = vpack.c.bf16 %v120_v57, %v119_v56  ;;  %v4920_v1 = vld [vmem:[#allocation7 + $0x28] sm:$0xff]   ;;  %v121_v6 = vld [vmem:[#allocation2 + $0x190] sm:$0xff]  ;;  %v122_v7 = vld [vmem:[#allocation2 + $0x198] sm:$0xff] }
  0x47   :  { %1350 = vbcast.lane.b32.xlu1 %v1344_v46, 264  ;;  %1346 = vbcast.lane.b32.xlu0 %v1344_v46, 256  ;;  %v87_v8 = vld [vmem:[#allocation2 + $0x80] sm:$0xff]  ;;  %v88_v9 = vld [vmem:[#allocation2 + $0x88] sm:$0xff]  ;;  %v160_v14 = vpack.c.bf16 %v122_v7, %v121_v6  ;;  %v4922_v20 = vld [vmem:[#allocation7 + $0x38] sm:$0xff]  }
  0x48   :  { %v143_v17 = vpack.c.bf16 %v88_v9, %v87_v8  ;;  %v89_v21 = vld [vmem:[#allocation2 + $0x90] sm:$0xff]  ;;  %v90_v22 = vld [vmem:[#allocation2 + $0x98] sm:$0xff]  ;;  %v127_v30 = vld [vmem:[#allocation2 + $0x1c0] sm:$0xff] }
  0x49   :  { %4788 = vmatpush3.bf16.msra.mxu0 %v4911_v10  ;;  %4891 = vmatpush3.bf16.msra.mxu1 %v4911_v10  ;;  %v123_v10 = vld [vmem:[#allocation2 + $0x1a0] sm:$0xff]  ;;  %v128_v31 = vld [vmem:[#allocation2 + $0x1c8] sm:$0xff]  ;;  %v144_v32 = vpack.c.bf16 %v90_v22, %v89_v21  ;;  %v93_v39 = vld [vmem:[#allocation2 + $0xb0] sm:$0xff] }
  0x4a   :  { %4789 = vmatprep.subr.bf16.mxu0 %v4912_v11  ;;  %4884 = vmatprep.subr.bf16.mxu1 %v4912_v11  ;;  %v163_v38 = vpack.c.bf16 %v128_v31, %v127_v30  ;;  %v95_v46 = vld [vmem:[#allocation2 + $0xc0] sm:$0xff]  ;;  %v132_v51 = vld [vmem:[#allocation2 + $0x1e8] sm:$0xff]  ;;  %v97_v56 = vld [vmem:[#allocation2 + $0xd0] sm:$0xff] }
  0x4b   :  { %1357 = vbcast.lane.b32.xlu1 %v1355_v49, 256  ;;  %1368 = vbcast.lane.b32.xlu0 %v1366_v58, 256  ;;  %v131_v50 = vld [vmem:[#allocation2 + $0x1e0] sm:$0xff]  ;;  %v98_v57 = vld [vmem:[#allocation2 + $0xd8] sm:$0xff]  ;;  %v101_v8 = vld [vmem:[#allocation2 + $0xf0] sm:$0xff] }
  0x4c   :  { %v165_v55 = vpack.c.bf16 %v132_v51, %v131_v50  ;;  %v105_v22 = vld [vmem:[#allocation2 + $0x110] sm:$0xff] }
  0x4d   :  { %4790 = vmatpush3.bf16.msra.mxu0 %v4912_v11  ;;  %4892 = vmatpush3.bf16.msra.mxu1 %v4912_v11  ;;  %v124_v11 = vld [vmem:[#allocation2 + $0x1a8] sm:$0xff] }
  0x4e   :  { %4791 = vmatprep.subr.bf16.mxu0 %v4913_v12  ;;  %4885 = vmatprep.subr.bf16.mxu1 %v4913_v12 }
  0x4f   :  { %1361 = vbcast.lane.b32.xlu1 %v1355_v49, 264  ;;  %1379 = vbcast.lane.b32.xlu0 %v1377_v4, 256  ;;  %v96_v49 = vld [vmem:[#allocation2 + $0xc8] sm:$0xff] }
  0x51   :  { %4792 = vmatpush3.bf16.msra.mxu0 %v4913_v12  ;;  %4893 = vmatpush3.bf16.msra.mxu1 %v4913_v12  ;;  %v4921_v12 = vld [vmem:[#allocation7 + $0x30] sm:$0xff]  }
  0x52   :  { %4793 = vmatprep.subr.bf16.mxu0 %v4914_v13  ;;  %4886 = vmatprep.subr.bf16.mxu1 %v4914_v13 }
  0x53   :  { %1372 = vbcast.lane.b32.xlu1 %v1366_v58, 264  ;;  %1390 = vbcast.lane.b32.xlu0 %v1388_v15, 256 }
  0x55   :  { %4794 = vmatpush3.bf16.msra.mxu0 %v4914_v13  ;;  %4894 = vmatpush3.bf16.msra.mxu1 %v4914_v13  ;;  %v142_v13 = vpack.c.bf16 %v86_v3, %v85_v2  ;;  %v148_v2 = vpack.c.bf16 %v98_v57, %v97_v56 }
  0x56   :  { %4859 = vmatprep.subr.bf16.mxu1 %v4915_v19 }
  0x57   :  { %1383 = vbcast.lane.b32.xlu1 %v1377_v4, 264  ;;  %1401 = vbcast.lane.b32.xlu0 %v1399_v23, 256 }
  0x58   :  { %4796 = vmatmul.mubr.bf16.vlgmr.msra.gmra.mrb[0].mxu0 %v136_v24  ;;  %4832 = vmatmul.mubr.bf16.vlgmr.msra.gmra.mrb[0].mxu1 %v154_v25  ;;  %v5348_v24 = vsub.s32 6, %v5310_v27  ;;  %v125_v25 = vld [vmem:[#allocation2 + $0x1b0] sm:$0xff] }
  0x59   :  { %4860 = vmatpush3.bf16.msra.mxu1 %v4915_v19  ;;  %4799 = vmatprep.mubr.bf16.mxu0 %v137_v26  ;;  %v161_v19 = vpack.c.bf16 %v124_v11, %v123_v10  ;;  %v126_v26 = vld [vmem:[#allocation2 + $0x1b8] sm:$0xff]  ;;  %v522_v11 = vld [vmem:[%s7510_s1 + $0x10] sm:$0xff] }
  0x5a   :  { %4835 = vmatprep.mubr.bf16.mxu1 %v155_v28  ;;  %4861 = vmatprep.subr.bf16.mxu1 %v4916_v29  ;;  %7633 = vst [vmem:[#allocation18_spill] sm:$0xff] %v5348_v24  ;;  %v91_v28 = vld [vmem:[#allocation2 + $0xa0] sm:$0xff]  ;;  %v162_v33 = vpack.c.bf16 %v126_v26, %v125_v25  ;;  %v102_v10 = vld [vmem:[#allocation2 + $0xf8] sm:$0xff] }
  0x5b   :  { %1394 = vbcast.lane.b32.xlu1 %v1388_v15, 264  ;;  %v150_v15 = vpack.c.bf16 %v102_v10, %v101_v8 }
  0x5d   :  { %4862 = vmatpush3.bf16.msra.mxu1 %v4916_v29  ;;  %v92_v29 = vld [vmem:[#allocation2 + $0xa8] sm:$0xff] }
  0x5e   :  { %4863 = vmatprep.subr.bf16.mxu1 %v4917_v34  ;;  %v145_v37 = vpack.c.bf16 %v92_v29, %v91_v28  ;;  %v1335_v29 = vld [vmem:[%s7511_s2 + $0x10] sm:$0xff] }
  0x5f   :  { %1405 = vbcast.lane.b32.xlu1 %v1399_v23, 264  ;;  %v106_v23 = vld [vmem:[#allocation2 + $0x118] sm:$0xff]  ;;  %v1520_v30 = vrot.slane %v1335_v29, %v5313_v36  ;;  %v1531_v31 = vrot.slane %v1335_v29, %v5316_v40 }
  0x60   :  { %4800 = vmatmul.mubr.bf16.gmra.mrb[4].mxu0 %v138_v41  ;;  %4836 = vmatmul.mubr.bf16.gmra.mrb[4].mxu1 %v156_v42  ;;  %v94_v41 = vld [vmem:[#allocation2 + $0xb8] sm:$0xff]  ;;  %v129_v42 = vld [vmem:[#allocation2 + $0x1d0] sm:$0xff]  ;;  %v152_v25 = vpack.c.bf16 %v106_v23, %v105_v22 }
  0x61   :  { %4803 = vmatprep.mubr.bf16.mxu0 %v139_v44  ;;  %4839 = vmatprep.mubr.bf16.mxu1 %v157_v45  ;;  %v1421_v44 = vrot.slane %v5321_v43, %v5353_v35  ;;  %v130_v45 = vld [vmem:[#allocation2 + $0x1d8] sm:$0xff]  ;;  %v146_v52 = vpack.c.bf16 %v94_v41, %v93_v39  ;;  %v1597_v39 = vrot.slane %v1335_v29, %v5353_v35 }
  0x62   :  { %4864 = vmatpush3.bf16.msra.mxu1 %v4917_v34  ;;  %v1410_v34 = vrot.slane %v5321_v43, %v5348_v24  ;;  %v164_v53 = vpack.c.bf16 %v130_v45, %v129_v42  ;;  %v147_v43 = vpack.c.bf16 %v96_v49, %v95_v46  ;;  %v1336_v41 = vld [vmem:[%s7511_s2 + $0x18] sm:$0xff] }
  0x63   :  { %4865 = vmatprep.subr.bf16.mxu1 %v4918_v48  ;;  %v1608_v42 = vrot.slane %v1336_v41, %v5313_v36  ;;  %v1630_v45 = vrot.slane %v1336_v41, %v5326_v47  ;;  %v1641_v46 = vrot.slane %v1336_v41, %v5333_v62  ;;  %v1663_v49 = vrot.slane %v1336_v41, %v5343_v16 }
  0x64   :  { %1412 = vbcast.lane.b32.xlu0 %v1410_v34, 256  ;;  %1416 = vbcast.lane.b32.xlu1 %v1410_v34, 264  ;;  %v1564_v34 = vrot.slane %v1335_v29, %v5338_v5  ;;  %v1674_v50 = vrot.slane %v1336_v41, %v5348_v24  ;;  %v1685_v51 = vrot.slane %v1336_v41, %v5353_v35 }
  0x66   :  { %4866 = vmatpush3.bf16.msra.mxu1 %v4918_v48  ;;  %v5360_v48 = vld [vmem:[%s7511_s2 + $0x8] sm:$0xff] }
  0x67   :  { %4867 = vmatprep.subr.bf16.mxu1 %v4919_v59  ;;  %v1432_v54 = vrot.slane %v5360_v48, %v5313_v36  ;;  %v1443_v58 = vrot.slane %v5360_v48, %v5316_v40  ;;  %v1454_v4 = vrot.slane %v5360_v48, %v5326_v47  ;;  %v1465_v9 = vrot.slane %v5360_v48, %v5333_v62 }
  0x68   :  { %4804 = vmatmul.mubr.bf16.gmra.mrb[8].mxu0 %v140_v60  ;;  %4840 = vmatmul.mubr.bf16.gmra.mrb[8].mxu1 %v158_v61  ;;  %v134_v60 = vld [vmem:[#allocation2 + $0x1f8] sm:$0xff]  ;;  %v99_v61 = vld [vmem:[#allocation2 + $0xe0] sm:$0xff]  ;;  %v1487_v21 = vrot.slane %v5360_v48, %v5343_v16  ;;  %v1498_v26 = vrot.slane %v5360_v48, %v5348_v24  ;;  %v1509_v28 = vrot.slane %v5360_v48, %v5353_v35 }
  0x69   :  { %4807 = vmatprep.mubr.bf16.mxu0 %v141_v63  ;;  %4843 = vmatprep.mubr.bf16.mxu1 %v159_v0  ;;  %v100_v63 = vld [vmem:[#allocation2 + $0xe8] sm:$0xff]  ;;  %v520_v0 = vld [vmem:[%s7510_s1] sm:$0xff] }
  0x6a   :  { %4868 = vmatpush3.bf16.msra.mxu1 %v4919_v59  ;;  %1423 = vbcast.lane.b32.xlu0 %v1421_v44, 256  ;;  %v133_v59 = vld [vmem:[#allocation2 + $0x1f0] sm:$0xff]  ;;  %v149_v6 = vpack.c.bf16 %v100_v63, %v99_v61 }
  0x6b   :  { %4869 = vmatprep.subr.bf16.mxu1 %v4920_v1  ;;  %1427 = vbcast.lane.b32.xlu1 %v1421_v44, 264  ;;  %v166_v3 = vpack.c.bf16 %v134_v60, %v133_v59  ;;  %v1619_v44 = vrot.slane %v1336_v41, %v5316_v40 }
  0x6e   :  { %4870 = vmatpush3.bf16.msra.mxu1 %v4920_v1  ;;  %1434 = vbcast.lane.b32.xlu0 %v1432_v54, 256  ;;  %v521_v1 = vld [vmem:[%s7510_s1 + $0x8] sm:$0xff] }
  0x6f   :  { %4871 = vmatprep.subr.bf16.mxu1 %v4921_v12  ;;  %1438 = vbcast.lane.b32.xlu1 %v1432_v54, 264  ;;  %v524_v7 = vpack.c.bf16 %v521_v1, %v520_v0 }
  0x70   :  { %4808 = vmatmul.mubr.bf16.gmra.mrb[12].mxu0 %v142_v13  ;;  %4844 = vmatmul.mubr.bf16.gmra.mrb[12].mxu1 %v160_v14  ;;  %v103_v13 = vld [vmem:[#allocation2 + $0x100] sm:$0xff]  ;;  %v104_v14 = vld [vmem:[#allocation2 + $0x108] sm:$0xff] }
  0x71   :  { %4811 = vmatprep.mubr.bf16.mxu0 %v143_v17  ;;  %4847 = vmatprep.mubr.bf16.mxu1 %v161_v19  ;;  %v1476_v19 = vrot.slane %v5360_v48, %v5338_v5  ;;  %v1652_v48 = vrot.slane %v1336_v41, %v5338_v5  ;;  %v5216_v5 = vmov 1966171168  }
  0x72   :  { %4872 = vmatpush3.bf16.msra.mxu1 %v4921_v12  ;;  %1445 = vbcast.lane.b32.xlu0 %v1443_v58, 256  ;;  %v523_v12 = vld [vmem:[%s7510_s1 + $0x18] sm:$0xff] }
  0x73   :  { %4873 = vmatprep.subr.bf16.mxu1 %v4922_v20  ;;  %1449 = vbcast.lane.b32.xlu1 %v1443_v58, 264  ;;  %v525_v17 = vpack.c.bf16 %v523_v12, %v522_v11 }
  0x76   :  { %4874 = vmatpush3.bf16.msra.mxu1 %v4922_v20  ;;  %1456 = vbcast.lane.b32.xlu0 %v1454_v4, 256  ;;  %v151_v20 = vpack.c.bf16 %v104_v14, %v103_v13 }
  0x77   :  { %1460 = vbcast.lane.b32.xlu1 %v1454_v4, 264 }
  0x78   :  { %4812 = vmatmul.mubr.bf16.gmra.mrb[16].mxu0 %v144_v32  ;;  %4848 = vmatmul.mubr.bf16.gmra.mrb[16].mxu1 %v162_v33  ;;  %v1542_v32 = vrot.slane %v1335_v29, %v5326_v47  ;;  %v1553_v33 = vrot.slane %v1335_v29, %v5333_v62  ;;  %v652_v62 = vunpack.c.l.s4 %v5216_v5  ;;  %v4719_v5 = vld [vmem:[%s7514_s5] ss:$0 sm:$0xff] }
  0x79   :  { %4815 = vmatprep.mubr.bf16.mxu0 %v145_v37  ;;  %4851 = vmatprep.mubr.bf16.mxu1 %v163_v38  ;;  %v1575_v37 = vrot.slane %v1335_v29, %v5343_v16  ;;  %v1586_v38 = vrot.slane %v1335_v29, %v5348_v24 }
  0x7a   :  { %1467 = vbcast.lane.b32.xlu0 %v1465_v9, 256 }
  0x7b   :  { %1471 = vbcast.lane.b32.xlu1 %v1465_v9, 264 }
  0x7e   :  { %1478 = vbcast.lane.b32.xlu0 %v1476_v19, 256 }
  0x7f   :  { %1482 = vbcast.lane.b32.xlu1 %v1476_v19, 264 }
  0x80   :  { %4816 = vmatmul.mubr.bf16.gmra.mrb[20].mxu0 %v146_v52  ;;  %4852 = vmatmul.mubr.bf16.gmra.mrb[20].mxu1 %v164_v53 }
  0x81   :  { %4819 = vmatprep.mubr.bf16.mxu0 %v147_v43  ;;  %4855 = vmatprep.mubr.bf16.mxu1 %v165_v55 }
  0x82   :  { %1489 = vbcast.lane.b32.xlu0 %v1487_v21, 256 }
  0x83   :  { %1493 = vbcast.lane.b32.xlu1 %v1487_v21, 264 }
  0x86   :  { %1500 = vbcast.lane.b32.xlu0 %v1498_v26, 256 }
  0x87   :  { %1504 = vbcast.lane.b32.xlu1 %v1498_v26, 264 }
  0x88   :  { %4820 = vmatmul.mubr.bf16.gmra.mrb[24].mxu0 %v148_v2  ;;  %4856 = vmatmul.mubr.bf16.gmra.mrb[24].mxu1 %v166_v3 }
  0x89   :  { %4823 = vmatprep.mubr.bf16.mxu0 %v149_v6  ;;  %4875 = vmatprep.mubr.bf16.mxu1 %v524_v7 }
  0x8a   :  { %1511 = vbcast.lane.b32.xlu0 %v1509_v28, 256 }
  0x8b   :  { %1515 = vbcast.lane.b32.xlu1 %v1509_v28, 264 }
  0x8e   :  { %1522 = vbcast.lane.b32.xlu0 %v1520_v30, 256 }
  0x8f   :  { %1526 = vbcast.lane.b32.xlu1 %v1520_v30, 264 }
  0x90   :  { %4824 = vmatmul.mubr.bf16.gmra.mrb[28].mxu0 %v150_v15  ;;  %4876 = vmatmul.mubr.bf16.vlgmr.msra.gmra.mrb[28].mxu1 %v525_v17 }
  0x91   :  { %4827 = vmatprep.mubr.bf16.mxu0 %v151_v20 }
  0x92   :  { %1533 = vbcast.lane.b32.xlu0 %v1531_v31, 256 }
  0x93   :  { %1537 = vbcast.lane.b32.xlu1 %v1531_v31, 264 }
  0x96   :  { %1544 = vbcast.lane.b32.xlu0 %v1542_v32, 256 }
  0x97   :  { %1548 = vbcast.lane.b32.xlu1 %v1542_v32, 264 }
  0x98   :  { %4828 = vmatmul.mubr.bf16.gmra.mrb[32].mxu0 %v152_v25 }
  0x9a   :  { %1555 = vbcast.lane.b32.xlu0 %v1553_v33, 256 }
  0x9b   :  { %1559 = vbcast.lane.b32.xlu1 %v1553_v33, 264 }
  0x9e   :  { %1566 = vbcast.lane.b32.xlu0 %v1564_v34, 256 }
  0x9f   :  { %1570 = vbcast.lane.b32.xlu1 %v1564_v34, 264 }
  0xa2   :  { %1577 = vbcast.lane.b32.xlu0 %v1575_v37, 256 }
  0xa3   :  { %1581 = vbcast.lane.b32.xlu1 %v1575_v37, 264 }
  0xa6   :  { %1588 = vbcast.lane.b32.xlu0 %v1586_v38, 256 }
  0xa7   :  { %1592 = vbcast.lane.b32.xlu1 %v1586_v38, 264 }
  0xaa   :  { %1599 = vbcast.lane.b32.xlu0 %v1597_v39, 256 }
  0xab   :  { %1603 = vbcast.lane.b32.xlu1 %v1597_v39, 264 }
  0xae   :  { %1610 = vbcast.lane.b32.xlu0 %v1608_v42, 256 }
  0xaf   :  { %1614 = vbcast.lane.b32.xlu1 %v1608_v42, 264 }
  0xb2   :  { %1621 = vbcast.lane.b32.xlu0 %v1619_v44, 256 }
  0xb3   :  { %1625 = vbcast.lane.b32.xlu1 %v1619_v44, 264 }
  0xb6   :  { %1632 = vbcast.lane.b32.xlu0 %v1630_v45, 256 }
  0xb7   :  { %1636 = vbcast.lane.b32.xlu1 %v1630_v45, 264 }
  0xb9   :  { %v5428_v59 = vpop.permute.xlu1 %1350  ;;  %v5466_v17 = vpop.permute.xlu0 %1346 }
  0xba   :  { %1643 = vbcast.lane.b32.xlu0 %v1641_v46, 256  ;;  %7635 = vst [vmem:[#allocation20_spill] sm:$0xff] %v5428_v59  ;;  %7643 = vst [vmem:[#allocation28_spill] sm:$0xff] %v5466_v17 }
  0xbb   :  { %1647 = vbcast.lane.b32.xlu1 %v1641_v46, 264 }
  0xbd   :  { %v5446_v6 = vpop.permute.xlu1 %1357  ;;  %v5486_v30 = vpop.permute.xlu0 %1368 }
  0xbe   :  { %1654 = vbcast.lane.b32.xlu0 %v1652_v48, 256  ;;  %7637 = vst [vmem:[#allocation22_spill] sm:$0xff] %v5446_v6  ;;  %7649 = vst [vmem:[#allocation34_spill] sm:$0xff] %v5486_v30 }
  0xbf   :  { %1658 = vbcast.lane.b32.xlu1 %v1652_v48, 264 }
  0xc1   :  { %v5464_v15 = vpop.permute.xlu1 %1361  ;;  %v5506_v44 = vpop.permute.xlu0 %1379 }
  0xc2   :  { %1665 = vbcast.lane.b32.xlu0 %v1663_v49, 256  ;;  %7642 = vst [vmem:[#allocation27_spill] sm:$0xff] %v5464_v15  ;;  %7655 = vst [vmem:[#allocation40_spill] sm:$0xff] %v5506_v44 }
  0xc3   :  { %1669 = vbcast.lane.b32.xlu1 %v1663_v49, 264 }
  0xc5   :  { %v5484_v29 = vpop.permute.xlu1 %1372  ;;  %v5526_v16 = vpop.permute.xlu0 %1390 }
  0xc6   :  { %1676 = vbcast.lane.b32.xlu0 %v1674_v50, 256  ;;  %7648 = vst [vmem:[#allocation33_spill] sm:$0xff] %v5484_v29  ;;  %7663 = vst [vmem:[#allocation48_spill] sm:$0xff] %v5526_v16 }
  0xc7   :  { %1680 = vbcast.lane.b32.xlu1 %v1674_v50, 264 }
  0xc9   :  { %v5504_v42 = vpop.permute.xlu1 %1383  ;;  %v5549_v59 = vpop.permute.xlu0 %1401 }
  0xca   :  { %1687 = vbcast.lane.b32.xlu0 %v1685_v51, 256  ;;  %7654 = vst [vmem:[#allocation39_spill] sm:$0xff] %v5504_v42  ;;  %7673 = vst [vmem:[#allocation58_spill] sm:$0xff] %v5549_v59 }
  0xcb   :  { %1691 = vbcast.lane.b32.xlu1 %v1685_v51, 264 }
  0xcd   :  { %v5524_v24 = vpop.permute.xlu1 %1394 }
  0xce   :  { %7662 = vst [vmem:[#allocation47_spill] sm:$0xff] %v5524_v24  ;;  %v653_v24 = vunpack.c.0.s8 %v652_v62 }
  0xd0   :  { %v5552_v17 = vsub.s32 %v653_v24, %v5310_v27 }
  0xd1   :  { %v5547_v16 = vpop.permute.xlu1 %1405 }
  0xd2   :  { %7672 = vst [vmem:[#allocation57_spill] sm:$0xff] %v5547_v16 }
 0x12b   :  { %v5412_v52 = vpop.f32.mrb[0].mxu1  ;;  %v5414_v53 = vpop.f32.mrb[0].mxu0 }
 0x12c   :  { %v5416_v54 = vpop.f32.mrb[1].mxu1  ;;  %v5418_v43 = vpop.f32.mrb[1].mxu0 }
 0x12d   :  { %v5420_v55 = vpop.f32.mrb[2].mxu1  ;;  %v5422_v56 = vpop.f32.mrb[2].mxu0 }
 0x12e   :  { %v5424_v57 = vpop.f32.mrb[3].mxu1  ;;  %v5426_v58 = vpop.f32.mrb[3].mxu0 }
 0x133   :  { %v5430_v60 = vpop.f32.mrb[4].mxu1  ;;  %v5432_v61 = vpop.f32.mrb[4].mxu0 }
 0x134   :  { %v5434_v63 = vpop.f32.mrb[5].mxu1  ;;  %v5436_v0 = vpop.f32.mrb[5].mxu0 }
 0x135   :  { %v5438_v1 = vpop.f32.mrb[6].mxu1  ;;  %v5440_v2 = vpop.f32.mrb[6].mxu0 }
 0x136   :  { %7636 = vst [vmem:[#allocation21_spill] sm:$0xff] %v5440_v2  ;;  %v5442_v3 = vpop.f32.mrb[7].mxu1  ;;  %v5444_v4 = vpop.f32.mrb[7].mxu0 }
 0x13b   :  { %v5448_v7 = vpop.f32.mrb[8].mxu1  ;;  %v5450_v8 = vpop.f32.mrb[8].mxu0 }
 0x13c   :  { %7638 = vst [vmem:[#allocation23_spill] sm:$0xff] %v5448_v7  ;;  %7639 = vst [vmem:[#allocation24_spill] sm:$0xff] %v5450_v8  ;;  %v5452_v9 = vpop.f32.mrb[9].mxu1  ;;  %v5454_v10 = vpop.f32.mrb[9].mxu0 }
 0x13d   :  { %v5456_v11 = vpop.f32.mrb[10].mxu1  ;;  %v5458_v12 = vpop.f32.mrb[10].mxu0 }
 0x13e   :  { %7640 = vst [vmem:[#allocation25_spill] sm:$0xff] %v5456_v11  ;;  %7641 = vst [vmem:[#allocation26_spill] sm:$0xff] %v5458_v12  ;;  %v5460_v13 = vpop.f32.mrb[11].mxu1  ;;  %v5462_v14 = vpop.f32.mrb[11].mxu0 }
 0x13f   :  { %v5572_v11 = vpop.permute.xlu0 %1412 }
 0x140   :  { %7677 = vst [vmem:[#allocation62_spill] sm:$0xff] %v5572_v11 }
 0x143   :  { %v5468_v19 = vpop.f32.mrb[12].mxu1  ;;  %v5470_v20 = vpop.f32.mrb[12].mxu0 }
 0x144   :  { %7644 = vst [vmem:[#allocation29_spill] sm:$0xff] %v5470_v20  ;;  %v5472_v21 = vpop.f32.mrb[13].mxu1  ;;  %v5474_v22 = vpop.f32.mrb[13].mxu0 }
 0x145   :  { %7645 = vst [vmem:[#allocation30_spill] sm:$0xff] %v5474_v22  ;;  %v5476_v23 = vpop.f32.mrb[14].mxu1  ;;  %v5478_v25 = vpop.f32.mrb[14].mxu0 }
 0x146   :  { %7646 = vst [vmem:[#allocation31_spill] sm:$0xff] %v5478_v25  ;;  %v5480_v26 = vpop.f32.mrb[15].mxu1  ;;  %v5482_v28 = vpop.f32.mrb[15].mxu0 }
 0x147   :  { %7647 = vst [vmem:[#allocation32_spill] sm:$0xff] %v5482_v28  ;;  %v5621_v22 = vpop.permute.xlu0 %1423 }
 0x148   :  { %7682 = vst [vmem:[#allocation67_spill] sm:$0xff] %v5621_v22 }
 0x14b   :  { %v5488_v31 = vpop.f32.mrb[16].mxu1  ;;  %v5490_v32 = vpop.f32.mrb[16].mxu0 }
 0x14c   :  { %7650 = vst [vmem:[#allocation35_spill] sm:$0xff] %v5488_v31  ;;  %7651 = vst [vmem:[#allocation36_spill] sm:$0xff] %v5490_v32  ;;  %v5492_v33 = vpop.f32.mrb[17].mxu1  ;;  %v5494_v34 = vpop.f32.mrb[17].mxu0 }
 0x14d   :  { %v5496_v37 = vpop.f32.mrb[18].mxu1  ;;  %v5498_v38 = vpop.f32.mrb[18].mxu0 }
 0x14e   :  { %7652 = vst [vmem:[#allocation37_spill] sm:$0xff] %v5496_v37  ;;  %7653 = vst [vmem:[#allocation38_spill] sm:$0xff] %v5498_v38  ;;  %v5500_v39 = vpop.f32.mrb[19].mxu1  ;;  %v5502_v41 = vpop.f32.mrb[19].mxu0 }
 0x14f   :  { %v5567_v31 = vpop.permute.xlu1 %1416 }
 0x150   :  { %7676 = vst [vmem:[#allocation61_spill] sm:$0xff] %v5567_v31 }
 0x153   :  { %v5508_v45 = vpop.f32.mrb[20].mxu1  ;;  %v5510_v46 = vpop.f32.mrb[20].mxu0 }
 0x154   :  { %7656 = vst [vmem:[#allocation41_spill] sm:$0xff] %v5508_v45  ;;  %7657 = vst [vmem:[#allocation42_spill] sm:$0xff] %v5510_v46  ;;  %v5512_v48 = vpop.f32.mrb[21].mxu1  ;;  %v5514_v49 = vpop.f32.mrb[21].mxu0 }
 0x155   :  { %7658 = vst [vmem:[#allocation43_spill] sm:$0xff] %v5514_v49  ;;  %v5516_v50 = vpop.f32.mrb[22].mxu1  ;;  %v5518_v51 = vpop.f32.mrb[22].mxu0 }
 0x156   :  { %7659 = vst [vmem:[#allocation44_spill] sm:$0xff] %v5516_v50  ;;  %7660 = vst [vmem:[#allocation45_spill] sm:$0xff] %v5518_v51  ;;  %v5520_v18 = vpop.f32.mrb[23].mxu1  ;;  %v5522_v35 = vpop.f32.mrb[23].mxu0 }
 0x157   :  { %7661 = vst [vmem:[#allocation46_spill] sm:$0xff] %v5522_v35 }
 0x15b   :  { %v5528_v47 = vpop.f32.mrb[24].mxu1  ;;  %v5530_v40 = vpop.f32.mrb[24].mxu0 }
 0x15c   :  { %7664 = vst [vmem:[#allocation49_spill] sm:$0xff] %v5528_v47  ;;  %7665 = vst [vmem:[#allocation50_spill] sm:$0xff] %v5530_v40  ;;  %v5532_v44 = vpop.f32.mrb[25].mxu1  ;;  %v5534_v42 = vpop.f32.mrb[25].mxu0 }
 0x15d   :  { %7666 = vst [vmem:[#allocation51_spill] sm:$0xff] %v5532_v44  ;;  %7667 = vst [vmem:[#allocation52_spill] sm:$0xff] %v5534_v42  ;;  %v5536_v30 = vpop.f32.mrb[26].mxu1  ;;  %v5538_v6 = vpop.f32.mrb[26].mxu0 }
 0x15e   :  { %7668 = vst [vmem:[#allocation53_spill] sm:$0xff] %v5536_v30  ;;  %7669 = vst [vmem:[#allocation54_spill] sm:$0xff] %v5538_v6  ;;  %v5540_v29 = vpop.f32.mrb[27].mxu1  ;;  %v5542_v15 = vpop.f32.mrb[27].mxu0 }
 0x15f   :  { %7670 = vst [vmem:[#allocation55_spill] sm:$0xff] %v5540_v29  ;;  %7671 = vst [vmem:[#allocation56_spill] sm:$0xff] %v5542_v15 }
 0x163   :  { %v4877_v47 = vpop.f32.mrb[28].mxu1  ;;  %v5554_v30 = vpop.f32.mrb[28].mxu0 }
 0x164   :  { %7674 = vst [vmem:[#allocation59_spill] sm:$0xff] %v5554_v30  ;;  %v640_v6 = vadd.f32 %v4877_v47, %v4719_v5  ;;  %v631_v40 = vpop.f32.mrb[29].mxu1  ;;  %v5556_v51 = vpop.f32.mrb[29].mxu0 }
 0x165   :  { %v632_v46 = vadd.f32 %v4719_v5, %v631_v40  ;;  %v4878_v62 = vpop.f32.mrb[30].mxu1  ;;  %v5558_v25 = vpop.f32.mrb[30].mxu0 }
 0x166   :  { %7675 = vst [vmem:[#allocation60_spill] sm:$0xff] %v5558_v25  ;;  %v748_v20 = vcombine.high %v640_v6, %v640_v6  ;;  %v755_v29 = vrot.slane %v640_v6, %v5552_v17  ;;  %v643_v16 = vadd.f32 %v4878_v62, %v4719_v5  ;;  %v634_v44 = vpop.f32.mrb[31].mxu1  ;;  %v380_v59 = vpop.f32.mrb[31].mxu0 }
 0x167   :  { %v650_v50 = vcombine.high %v632_v46, %v632_v46  ;;  %v635_v24 = vadd.f32 %v4719_v5, %v634_v44  ;;  %v657_v27 = vrot.slane %v632_v46, %v5552_v17 }
 0x168   :  { %v797_v45 = vcombine.high %v643_v16, %v643_v16  ;;  %v763_v30 = vcombine.high %v755_v29, %v755_v29  ;;  %v5563_v37 = vrot.slane %v748_v20, %v5552_v17  ;;  %v804_v40 = vrot.slane %v643_v16, %v5552_v17 }
 0x169   :  { %v699_v47 = vcombine.high %v635_v24, %v635_v24  ;;  %v5570_v6 = vrot.slane %v650_v50, %v5552_v17  ;;  %v5575_v44 = vrot.slane %v657_v27, %v5552_v17  ;;  %v665_v7 = vcombine.high %v657_v27, %v657_v27 }
 0x16a   :  { %v811_v25 = vrot.slane %v797_v45, %v5552_v17  ;;  %v706_v16 = vrot.slane %v635_v24, %v5552_v17  ;;  %v5583_v31 = vrot.slane %v763_v30, %v5552_v17  ;;  %v5589_v15 = vrot.slane %v5563_v37, %v5552_v17  ;;  %v5611_v24 = vpop.permute.xlu1 %1427 }
 0x16b   :  { %v4829_v62 = vpop.f32.mrb[32].mxu0  ;;  %v713_v45 = vrot.slane %v699_v47, %v5552_v17  ;;  %v812_v42 = vcombine.high %v804_v40, %v804_v40  ;;  %v5601_v11 = vrot.slane %v5570_v6, %v5552_v17  ;;  %v771_v38 = vrot.slane %v755_v29, %v5552_v17  ;;  %7680 = vst [vmem:[#allocation65_spill] sm:$0xff] %v5611_v24 }
 0x16c   :  { %v813_v46 = vcombine.high %v811_v25, %v811_v25  ;;  %v5578_v5 = vrot.slane %v811_v25, %v5552_v17  ;;  %v393_v20 = vpop.f32.mrb[33].mxu0  ;;  %v714_v47 = vcombine.high %v706_v16, %v706_v16  ;;  %v917_v49 = vrot.slane %v5583_v31, %v5313_v36 }
 0x16d   :  { %v4830_v50 = vpop.f32.mrb[34].mxu0  ;;  %v715_v35 = vcombine.high %v713_v45, %v713_v45  ;;  %v5597_v30 = vrot.slane %v713_v45, %v5552_v17  ;;  %v793_v12 = vcombine.high %v771_v38, %v771_v38  ;;  %v913_v8 = vrot.slane %v771_v38, %v5313_v36 }
 0x16e   :  { %v5592_v25 = vrot.slane %v813_v46, %v5552_v17  ;;  %v396_v27 = vpop.f32.mrb[35].mxu0  ;;  %v849_v46 = vrot.slane %v5575_v44, %v5313_v36  ;;  %v5614_v45 = vrot.slane %v714_v47, %v5552_v17  ;;  %v5623_v29 = vadd.f32 %v4829_v62, %v917_v49 }
 0x16f   :  { %7679 = vst [vmem:[#allocation64_spill] sm:$0xff] %v5597_v30  ;;  %v5617_v32 = vrot.slane %v715_v35, %v5552_v17  ;;  %v745_v28 = vcombine.high %v5597_v30, %v5597_v30  ;;  %v5627_v2 = vrot.slane %v665_v7, %v5552_v17  ;;  %v5633_v35 = vld [vmem:[%s7515_s6] ss:$0 sm:$0xff]  ;;  %v695_v62 = vcombine.high %v5575_v44, %v5575_v44 }
 0x170   :  { %7678 = vst [vmem:[#allocation63_spill] sm:$0xff] %v5592_v25  ;;  %v5609_v25 = vrot.slane %v804_v40, %v5552_v17  ;;  %v1041_v40 = vadd.f32 %v4830_v50, %v917_v49  ;;  %v1006_v24 = vadd.f32 %v849_v46, %v5418_v43  ;;  %v1007_v22 = vadd.f32 %v849_v46, %v5426_v58  ;;  %v5661_v46 = vpop.permute.xlu0 %1434 }
 0x171   :  { %7681 = vst [vmem:[#allocation66_spill] sm:$0xff] %v5617_v32  ;;  %v905_v47 = vrot.slane %v745_v28, %v5313_v36  ;;  %v1038_v32 = vadd.f32 %v913_v8, %v393_v20  ;;  %v5639_v49 = vadd.f32 %v913_v8, %v396_v27  ;;  %v5642_v7 = vrot.slane %v812_v42, %v5552_v17  ;;  %v5655_v27 = vpop.permute.xlu1 %1438 }
 0x172   :  { %v1105_v38 = vmax.f32 %v1041_v40, 0.0  ;;  %v1070_v30 = vmax.f32 %v1006_v24, 0.0  ;;  %v842_v58 = vcombine.high %v5609_v25, %v5609_v25  ;;  %v921_v20 = vrot.slane %v793_v12, %v5313_v36 }
 0x173   :  { %v5645_v28 = vadd.f32 %v905_v47, %v5556_v51  ;;  %v1035_v50 = vadd.f32 %v905_v47, %v380_v59  ;;  %v1071_v59 = vmax.f32 %v1007_v22, 0.0  ;;  %v5659_v24 = vrot.slane %v706_v16, %v5552_v17 }
 0x174   :  { %v1176_v44 = vmul.f32 %v5633_v35, %v1105_v38  ;;  %v1141_v51 = vmul.f32 %v5633_v35, %v1070_v30  ;;  %v1102_v40 = vmax.f32 %v1038_v32, 0.0  ;;  %v1043_v47 = vadd.f32 %v921_v20, %v5424_v57 }
 0x175   :  { %v1099_v42 = vmax.f32 %v1035_v50, 0.0  ;;  %v929_v12 = vrot.slane %v5589_v15, %v5313_v36  ;;  %v945_v30 = vrot.slane %v5609_v25, %v5313_v36  ;;  %v1042_v22 = vadd.f32 %v921_v20, %v5416_v54 }
 0x176   :  { %1275 = vadd.xlane.f32.xlu1 %v1176_v44  ;;  %1205 = vadd.xlane.f32.xlu0 %v1141_v51  ;;  %v853_v16 = vrot.slane %v5627_v2, %v5313_v36  ;;  %v1107_v50 = vmax.f32 %v1043_v47, 0.0  ;;  %v857_v44 = vrot.slane %v695_v62, %v5313_v36  ;;  %v1142_v8 = vmul.f32 %v5633_v35, %v1071_v59 }
 0x177   :  { %v5667_v38 = vmul.f32 %v5633_v35, %v1099_v42  ;;  %v1047_v32 = vadd.f32 %v929_v12, %v5442_v3  ;;  %v1046_v57 = vadd.f32 %v929_v12, %v5434_v63  ;;  %v1055_v42 = vadd.f32 %v945_v30, %v5480_v26 }
 0x178   :  { %v1008_v51 = vadd.f32 %v5414_v53, %v853_v16  ;;  %v1009_v43 = vadd.f32 %v5422_v56, %v853_v16  ;;  %v1178_v20 = vmul.f32 %v5633_v35, %v1107_v50  ;;  %v1054_v3 = vadd.f32 %v945_v30, %v5472_v21  ;;  %v5692_v56 = vpop.permute.xlu1 %1449  ;;  %v5696_v16 = vpop.permute.xlu0 %1445 }
 0x179   :  { %v1111_v47 = vmax.f32 %v1047_v32, 0.0  ;;  %v744_v63 = vcombine.high %v5659_v24, %v5659_v24  ;;  %v795_v26 = vcombine.high %v5583_v31, %v5583_v31  ;;  %v1104_v53 = vmax.f32 %v5623_v29, 0.0 }
 0x17a   :  { %1207 = vadd.xlane.f32.xlu0 %v1142_v8  ;;  %v1103_v12 = vmax.f32 %v5639_v49, 0.0  ;;  %1279 = vadd.xlane.f32.xlu1 %v1178_v20  ;;  %v1173_v21 = vmul.f32 %v5633_v35, %v1102_v40  ;;  %v1011_v30 = vadd.f32 %v857_v44, %v5444_v4  ;;  %v1119_v50 = vmax.f32 %v1055_v42, 0.0 }
 0x17b   :  { %v1106_v32 = vmax.f32 %v1042_v22, 0.0  ;;  %v1110_v62 = vmax.f32 %v1046_v57, 0.0  ;;  %v1010_v31 = vadd.f32 %v857_v44, %v5436_v0  ;;  %v1182_v29 = vmul.f32 %v5633_v35, %v1111_v47 }
 0x17c   :  { %v1072_v54 = vmax.f32 %v1008_v51, 0.0  ;;  %v865_v8 = vrot.slane %v5601_v11, %v5313_v36  ;;  %v881_v49 = vrot.slane %v5659_v24, %v5313_v36  ;;  %v1073_v20 = vmax.f32 %v1009_v43, 0.0  ;;  %v5716_v51 = vpop.permute.xlu1 %1460 }
 0x17d   :  { %v1118_v59 = vmax.f32 %v1054_v3, 0.0  ;;  %v925_v40 = vrot.slane %v795_v26, %v5313_v36  ;;  %v7683_v4 = vcombine.high %v5563_v37, %v5563_v37  ;;  %v1075_v0 = vmax.f32 %v1011_v30, 0.0  ;;  %v5722_v26 = vpop.permute.xlu0 %1456 }
 0x17e   :  { %1269 = vadd.xlane.f32.xlu0 %v1173_v21  ;;  %1287 = vadd.xlane.f32.xlu1 %v1182_v29  ;;  %v1015_v57 = vadd.f32 %v865_v8, %v5462_v14  ;;  %v1014_v44 = vadd.f32 %v865_v8, %v5454_v10  ;;  %v1023_v42 = vadd.f32 %v881_v49, %v5502_v41 }
 0x17f   :  { %v5711_v22 = vrot.slane %v7683_v4, %v5552_v17  ;;  %v1175_v43 = vmul.f32 %v5633_v35, %v1104_v53  ;;  %v1022_v47 = vadd.f32 %v881_v49, %v5494_v34  ;;  %v1044_v3 = vadd.f32 %v5412_v52, %v925_v40 }
 0x180   :  { %v1045_v37 = vadd.f32 %v5420_v55, %v925_v40  ;;  %v1190_v21 = vmul.f32 %v5633_v35, %v1119_v50  ;;  %v1177_v14 = vmul.f32 %v5633_v35, %v1106_v32  ;;  %v1143_v10 = vmul.f32 %v5633_v35, %v1072_v54  ;;  %v5747_v40 = vpop.permute.xlu1 %1471 }
 0x181   :  { %v1181_v41 = vmul.f32 %v5633_v35, %v1110_v62  ;;  %v1144_v30 = vmul.f32 %v5633_v35, %v1073_v20  ;;  %v1189_v53 = vmul.f32 %v5633_v35, %v1118_v59  ;;  %v1074_v34 = vmax.f32 %v1010_v31, 0.0 }
 0x182   :  { %1273 = vadd.xlane.f32.xlu0 %v1175_v43  ;;  %v933_v52 = vrot.slane %v5711_v22, %v5313_v36  ;;  %1303 = vadd.xlane.f32.xlu1 %v1190_v21  ;;  %v1146_v55 = vmul.f32 %v5633_v35, %v1075_v0  ;;  %v1079_v29 = vmax.f32 %v1015_v57, 0.0  ;;  %v5734_v50 = vmul.f32 %v5633_v35, %v1103_v12  ;;  %v5757_v57 = vpop.permute.xlu0 %1467 }
 0x183   :  { %v794_v54 = vcombine.high %v5589_v15, %v5589_v15  ;;  %v1078_v62 = vmax.f32 %v1014_v44, 0.0  ;;  %v1087_v32 = vmax.f32 %v1023_v42, 0.0  ;;  %v1086_v8 = vmax.f32 %v1022_v47, 0.0  ;;  %7685 = vst [vmem:[#allocation68_spill] sm:$0xff] %v5757_v57 }
 0x184   :  { %v1048_v49 = vadd.f32 %v5430_v60, %v933_v52  ;;  %v1049_v59 = vadd.f32 %v5438_v1, %v933_v52  ;;  %v949_v20 = vrot.slane %v5642_v7, %v5313_v36  ;;  %v953_v12 = vrot.slane %v842_v58, %v5313_v36 }
 0x185   :  { %v937_v31 = vrot.slane %v794_v54, %v5313_v36  ;;  %v1108_v15 = vmax.f32 %v1044_v3, 0.0  ;;  %v1109_v4 = vmax.f32 %v1045_v37, 0.0  ;;  %v961_v60 = vrot.slane %v5578_v5, %v5313_v36 }
 0x186   :  { %1277 = vadd.xlane.f32.xlu0 %v1177_v14  ;;  %v7684_v1 = vcombine.high %v5570_v6, %v5570_v6  ;;  %1209 = vadd.xlane.f32.xlu1 %v1143_v10  ;;  %v1112_v44 = vmax.f32 %v1048_v49, 0.0  ;;  %v5762_v42 = vadd.f32 %v5468_v19, %v949_v20  ;;  %v1113_v43 = vmax.f32 %v1049_v59, 0.0  ;;  %v5793_v10 = vpop.permute.xlu1 %1482  ;;  %v5805_v52 = vpop.permute.xlu0 %1478 }
 0x187   :  { %v1050_v25 = vadd.f32 %v937_v31, %v5452_v9  ;;  %v1051_v58 = vadd.f32 %v937_v31, %v5460_v13  ;;  %v5765_v47 = vadd.f32 %v5476_v23, %v949_v20  ;;  %v5768_v3 = vadd.f32 %v953_v12, %v5492_v33 }
 0x188   :  { %v5755_v0 = vrot.slane %v7684_v1, %v5552_v17  ;;  %v5771_v17 = vadd.f32 %v953_v12, %v5500_v39  ;;  %v1145_v6 = vmul.f32 %v5633_v35, %v1074_v34  ;;  %v796_v9 = vcombine.high %v5711_v22, %v5711_v22  ;;  %v7687_v12 = vld [vmem:[#allocation21_spill] sm:$0xff]  ;;  %v7689_v1 = vld [vmem:[#allocation26_spill] sm:$0xff] }
 0x189   :  { %v1114_v37 = vmax.f32 %v1050_v25, 0.0  ;;  %v697_v13 = vcombine.high %v5627_v2, %v5627_v2  ;;  %v1150_v19 = vmul.f32 %v5633_v35, %v1079_v29  ;;  %v1149_v23 = vmul.f32 %v5633_v35, %v1078_v62  ;;  %v7690_v25 = vld [vmem:[#allocation30_spill] sm:$0xff] }
 0x18a   :  { %1285 = vadd.xlane.f32.xlu0 %v1181_v41  ;;  %v1115_v21 = vmax.f32 %v1051_v58, 0.0  ;;  %v5781_v33 = vadd.f32 %v961_v60, %v5512_v48  ;;  %1211 = vadd.xlane.f32.xlu1 %v1144_v30  ;;  %v1158_v39 = vmul.f32 %v5633_v35, %v1087_v32  ;;  %v5785_v14 = vmul.f32 %v5633_v35, %v1086_v8  ;;  %v7691_v58 = vld [vmem:[#allocation32_spill] sm:$0xff]  ;;  %v5839_v34 = vpop.permute.xlu0 %1489 }
 0x18b   :  { %v5788_v22 = vmul.f32 %v5633_v35, %v1108_v15  ;;  %v5791_v2 = vadd.f32 %v961_v60, %v5520_v18  ;;  %v5796_v41 = vmul.f32 %v5633_v35, %v1109_v4  ;;  %v5799_v48 = vmul.f32 %v5633_v35, %v1112_v44 }
 0x18c   :  { %v5802_v30 = vmul.f32 %v5633_v35, %v1113_v43  ;;  %v5808_v29 = vmul.f32 %v5633_v35, %v1114_v37  ;;  %v861_v54 = vrot.slane %v697_v13, %v5313_v36  ;;  %v869_v62 = vrot.slane %v5755_v0, %v5313_v36  ;;  %v7692_v37 = vld [vmem:[#allocation36_spill] sm:$0xff] }
 0x18d   :  { %v5815_v32 = vmul.f32 %v5633_v35, %v1115_v21  ;;  %v7686_v49 = vcombine.high %v5601_v11, %v5601_v11  ;;  %v885_v31 = vrot.slane %v5614_v45, %v5313_v36  ;;  %v889_v60 = vrot.slane %v744_v63, %v5313_v36 }
 0x18e   :  { %1301 = vadd.xlane.f32.xlu0 %v1189_v53  ;;  %1215 = vadd.xlane.f32.xlu1 %v1146_v55  ;;  %v1012_v20 = vadd.f32 %v5432_v61, %v861_v54  ;;  %v1013_v15 = vadd.f32 %v7687_v12, %v861_v54  ;;  %v7688_v53 = vld [vmem:[#allocation24_spill] sm:$0xff]  ;;  %v1017_v44 = vadd.f32 %v7689_v1, %v869_v62  ;;  %v5837_v12 = vpop.permute.xlu1 %1493  ;;  %v5888_v57 = vpop.permute.xlu0 %1500 }
 0x18f   :  { %v873_v59 = vrot.slane %v7686_v49, %v5313_v36  ;;  %v1016_v4 = vadd.f32 %v7688_v53, %v869_v62  ;;  %v1024_v13 = vadd.f32 %v7692_v37, %v885_v31  ;;  %v7693_v49 = vld [vmem:[#allocation38_spill] sm:$0xff]  ;;  %7694 = vst [vmem:[#allocation21_spill] sm:$0xff] %v5837_v12  ;;  %7695 = vst [vmem:[#allocation24_spill] sm:$0xff] %v5839_v34  ;;  %v7708_v34 = vld [vmem:[#allocation37_spill] sm:$0xff] }
 0x190   :  { %v1076_v55 = vmax.f32 %v1012_v20, 0.0  ;;  %v1077_v21 = vmax.f32 %v1013_v15, 0.0  ;;  %v1025_v54 = vadd.f32 %v7693_v49, %v885_v31  ;;  %v1081_v53 = vmax.f32 %v1017_v44, 0.0  ;;  %v7696_v44 = vld [vmem:[#allocation43_spill] sm:$0xff]  ;;  %7709 = vst [vmem:[#allocation30_spill] sm:$0xff] %v5888_v57 }
 0x191   :  { %v1018_v11 = vadd.f32 %v873_v59, %v7690_v25  ;;  %v1019_v43 = vadd.f32 %v873_v59, %v7691_v58  ;;  %v1080_v61 = vmax.f32 %v1016_v4, 0.0  ;;  %v1088_v63 = vmax.f32 %v1024_v13, 0.0 }
 0x192   :  { %1213 = vadd.xlane.f32.xlu0 %v1145_v6  ;;  %1223 = vadd.xlane.f32.xlu1 %v1150_v19  ;;  %v5842_v62 = vmul.f32 %v5633_v35, %v1076_v55  ;;  %v5845_v59 = vmul.f32 %v5633_v35, %v1077_v21  ;;  %v1089_v31 = vmax.f32 %v1025_v54, 0.0  ;;  %v5851_v15 = vmul.f32 %v5633_v35, %v1081_v53  ;;  %v7700_v21 = vld [vmem:[#allocation63_spill] sm:$0xff] }
 0x193   :  { %v1082_v18 = vmax.f32 %v1018_v11, 0.0  ;;  %v1083_v24 = vmax.f32 %v1019_v43, 0.0  ;;  %v5848_v20 = vmul.f32 %v5633_v35, %v1080_v61  ;;  %v5860_v19 = vmul.f32 %v5633_v35, %v1088_v63  ;;  %v7697_v11 = vld [vmem:[#allocation46_spill] sm:$0xff]  ;;  %v7698_v43 = vld [vmem:[#allocation64_spill] sm:$0xff] }
 0x194   :  { %v5863_v1 = vmul.f32 %v5633_v35, %v1089_v31  ;;  %v1026_v25 = vadd.f32 %v889_v60, %v7696_v44  ;;  %v1027_v58 = vadd.f32 %v889_v60, %v7697_v11  ;;  %v897_v37 = vrot.slane %v7698_v43, %v5313_v36  ;;  %v7703_v63 = vld [vmem:[#allocation56_spill] sm:$0xff]  ;;  %v5882_v31 = vpop.permute.xlu1 %1504  ;;  %v7705_v44 = vld [vmem:[#allocation23_spill] sm:$0xff]  ;;  %v7706_v11 = vld [vmem:[#allocation25_spill] sm:$0xff] }
 0x195   :  { %v5854_v6 = vmul.f32 %v5633_v35, %v1082_v18  ;;  %v5857_v4 = vmul.f32 %v5633_v35, %v1083_v24  ;;  %v941_v18 = vrot.slane %v796_v9, %v5313_v36  ;;  %v7699_v13 = vcombine.high %v5642_v7, %v5642_v7  ;;  %v7702_v24 = vld [vmem:[#allocation52_spill] sm:$0xff]  ;;  %7704 = vst [vmem:[#allocation26_spill] sm:$0xff] %v5882_v31 }
 0x196   :  { %1221 = vadd.xlane.f32.xlu0 %v1149_v23  ;;  %v965_v61 = vrot.slane %v7700_v21, %v5313_v36  ;;  %v7701_v49 = vcombine.high %v5578_v5, %v5578_v5  ;;  %1239 = vadd.xlane.f32.xlu1 %v1158_v39  ;;  %v1090_v60 = vmax.f32 %v1026_v25, 0.0  ;;  %v1091_v53 = vmax.f32 %v1027_v58, 0.0 }
 0x197   :  { %v957_v55 = vrot.slane %v7699_v13, %v5313_v36  ;;  %v1030_v23 = vadd.f32 %v897_v37, %v7702_v24  ;;  %v1031_v9 = vadd.f32 %v897_v37, %v7703_v63  ;;  %v1052_v7 = vadd.f32 %v7705_v44, %v941_v18  ;;  %v7707_v13 = vld [vmem:[#allocation35_spill] sm:$0xff] }
 0x198   :  { %v969_v54 = vrot.slane %v7701_v49, %v5313_v36  ;;  %v1053_v43 = vadd.f32 %v7706_v11, %v941_v18  ;;  %v5891_v5 = vmul.f32 %v5633_v35, %v1090_v60  ;;  %v5894_v39 = vmul.f32 %v5633_v35, %v1091_v53  ;;  %v7710_v60 = vld [vmem:[#allocation41_spill] sm:$0xff]  ;;  %v7711_v53 = vld [vmem:[#allocation44_spill] sm:$0xff] }
 0x199   :  { %v1060_v8 = vadd.f32 %v7707_v13, %v957_v55  ;;  %v1061_v12 = vadd.f32 %v7708_v34, %v957_v55  ;;  %v1094_v25 = vmax.f32 %v1030_v23, 0.0  ;;  %v1095_v58 = vmax.f32 %v1031_v9, 0.0 }
 0x19a   :  { %1237 = vadd.xlane.f32.xlu0 %v5785_v14  ;;  %v1116_v37 = vmax.f32 %v1052_v7, 0.0  ;;  %v1117_v49 = vmax.f32 %v1053_v43, 0.0  ;;  %1271 = vadd.xlane.f32.xlu1 %v5734_v50  ;;  %v1064_v63 = vadd.f32 %v7710_v60, %v965_v61  ;;  %v1065_v44 = vadd.f32 %v7711_v53, %v965_v61  ;;  %v7712_v7 = vld [vmem:[#allocation51_spill] sm:$0xff] }
 0x19b   :  { %v1124_v24 = vmax.f32 %v1060_v8, 0.0  ;;  %v1125_v18 = vmax.f32 %v1061_v12, 0.0  ;;  %v5899_v34 = vmul.f32 %v5633_v35, %v1094_v25  ;;  %v5902_v55 = vmul.f32 %v5633_v35, %v1095_v58  ;;  %v7713_v43 = vld [vmem:[#allocation55_spill] sm:$0xff]  ;;  %v5920_v25 = vpop.permute.xlu1 %1515 }
 0x19c   :  { %v5907_v23 = vmul.f32 %v5633_v35, %v1116_v37  ;;  %v5910_v14 = vmul.f32 %v5633_v35, %v1117_v49  ;;  %v1128_v12 = vmax.f32 %v1064_v63, 0.0  ;;  %v1129_v9 = vmax.f32 %v1065_v44, 0.0  ;;  %7714 = vst [vmem:[#allocation32_spill] sm:$0xff] %v5920_v25  ;;  %v5938_v63 = vpop.permute.xlu0 %1511  ;;  %v7720_v44 = vld [vmem:[#allocation29_spill] sm:$0xff] }
 0x19d   :  { %v5913_v8 = vmul.f32 %v5633_v35, %v1124_v24  ;;  %v5916_v50 = vmul.f32 %v5633_v35, %v1125_v18  ;;  %v1066_v11 = vadd.f32 %v969_v54, %v7712_v7  ;;  %v1067_v13 = vadd.f32 %v969_v54, %v7713_v43  ;;  %v7717_v24 = vld [vmem:[#allocation66_spill] sm:$0xff]  ;;  %7719 = vst [vmem:[#allocation36_spill] sm:$0xff] %v5938_v63  ;;  %v7721_v43 = vld [vmem:[#allocation31_spill] sm:$0xff] }
 0x19e   :  { %1281 = vadd.xlane.f32.xlu0 %v5788_v22  ;;  %v7715_v61 = vcombine.high %v5755_v0, %v5755_v0  ;;  %v7716_v37 = vcombine.high %v5614_v45, %v5614_v45  ;;  %v901_v18 = vrot.slane %v7717_v24, %v5313_v36  ;;  %v7718_v60 = vmax.f32 %v5645_v28, 0.0  ;;  %1283 = vadd.xlane.f32.xlu1 %v5796_v41  ;;  %v7722_v28 = vld [vmem:[#allocation42_spill] sm:$0xff] }
 0x19f   :  { %v5942_v0 = vmul.f32 %v5633_v35, %v1128_v12  ;;  %v5945_v22 = vmul.f32 %v5633_v35, %v1129_v9  ;;  %v1130_v45 = vmax.f32 %v1066_v11, 0.0  ;;  %v1131_v53 = vmax.f32 %v1067_v13, 0.0  ;;  %v7724_v12 = vld [vmem:[#allocation50_spill] sm:$0xff] }
 0x1a0   :  { %v877_v58 = vrot.slane %v7715_v61, %v5313_v36  ;;  %v893_v49 = vrot.slane %v7716_v37, %v5313_v36  ;;  %v5936_v54 = vmul.f32 %v5633_v35, %v7718_v60  ;;  %v7723_v60 = vld [vmem:[#allocation45_spill] sm:$0xff]  ;;  %v1032_v57 = vadd.f32 %v7724_v12, %v901_v18  ;;  %v7725_v9 = vld [vmem:[#allocation54_spill] sm:$0xff] }
 0x1a1   :  { %v5952_v63 = vmul.f32 %v5633_v35, %v1130_v45  ;;  %v5955_v41 = vmul.f32 %v5633_v35, %v1131_v53  ;;  %v1033_v31 = vadd.f32 %v7725_v9, %v901_v18  ;;  %v845_v45 = vcombine.high %v7700_v21, %v7700_v21  ;;  %v7728_v9 = vld [vmem:[#allocation59_spill] sm:$0xff] }
 0x1a2   :  { %v1020_v7 = vadd.f32 %v7720_v44, %v877_v58  ;;  %v1021_v61 = vadd.f32 %v7721_v43, %v877_v58  ;;  %v1028_v37 = vadd.f32 %v7722_v28, %v893_v49  ;;  %v1029_v25 = vadd.f32 %v7723_v60, %v893_v49  ;;  %1289 = vadd.xlane.f32.xlu0 %v5799_v48  ;;  %v5965_v28 = vpop.permute.xlu1 %1526  ;;  %v7727_v60 = vld [vmem:[#allocation53_spill] sm:$0xff] }
 0x1a3   :  { %1291 = vadd.xlane.f32.xlu1 %v5802_v30  ;;  %v1096_v43 = vmax.f32 %v1032_v57, 0.0  ;;  %v1097_v49 = vmax.f32 %v1033_v31, 0.0  ;;  %v747_v53 = vcombine.high %v7717_v24, %v7717_v24  ;;  %v5979_v30 = vpop.permute.xlu0 %1522  ;;  %v973_v24 = vrot.slane %v845_v45, %v5313_v36 }
 0x1a4   :  { %v1084_v11 = vmax.f32 %v1020_v7, 0.0  ;;  %v1085_v13 = vmax.f32 %v1021_v61, 0.0  ;;  %v1092_v44 = vmax.f32 %v1028_v37, 0.0  ;;  %v1093_v58 = vmax.f32 %v1029_v25, 0.0  ;;  %v7726_v61 = vld [vmem:[#allocation49_spill] sm:$0xff] }
 0x1a5   :  { %v5982_v21 = vmul.f32 %v5633_v35, %v1096_v43  ;;  %v5985_v31 = vmul.f32 %v5633_v35, %v1097_v49  ;;  %v909_v7 = vrot.slane %v747_v53, %v5313_v36  ;;  %v1068_v37 = vadd.f32 %v7726_v61, %v973_v24 }
 0x1a6   :  { %v5968_v18 = vmul.f32 %v5633_v35, %v1084_v11  ;;  %v5971_v48 = vmul.f32 %v5633_v35, %v1085_v13  ;;  %v5974_v25 = vmul.f32 %v5633_v35, %v1092_v44  ;;  %v5977_v57 = vmul.f32 %v5633_v35, %v1093_v58  ;;  %1293 = vadd.xlane.f32.xlu0 %v5808_v29  ;;  %v7729_v13 = vld [vmem:[#allocation60_spill] sm:$0xff] }
 0x1a7   :  { %1295 = vadd.xlane.f32.xlu1 %v5815_v32  ;;  %v1069_v12 = vadd.f32 %v7727_v60, %v973_v24  ;;  %v1036_v11 = vadd.f32 %v7728_v9, %v909_v7  ;;  %v1037_v44 = vadd.f32 %v7729_v13, %v909_v7  ;;  %v7730_v58 = vmax.f32 %v5762_v42, 0.0  ;;  %v6003_v7 = vpop.permute.xlu1 %1537  ;;  %v6005_v42 = vpop.permute.xlu0 %1533 }
 0x1a8   :  { %v7731_v49 = vmax.f32 %v5765_v47, 0.0  ;;  %v1122_v29 = vmax.f32 %v5768_v3, 0.0  ;;  %v1123_v32 = vmax.f32 %v5771_v17, 0.0  ;;  %v5217_v53 = vmov 0  }
 0x1a9   :  { %v1191_v43 = vmul.f32 %v5633_v35, %v7730_v58  ;;  %4905 = vset.pattern.permute.xlu0 %v5217_v53  ;;  %4906 = vset.pattern.permute.xlu1 %v5217_v53  ;;  %v1132_v24 = vmax.f32 %v1068_v37, 0.0  ;;  %v1133_v61 = vmax.f32 %v1069_v12, 0.0  ;;  %v1100_v60 = vmax.f32 %v1036_v11, 0.0 }
 0x1aa   :  { %v1192_v45 = vmul.f32 %v5633_v35, %v7731_v49  ;;  %v1101_v9 = vmax.f32 %v1037_v44, 0.0  ;;  %v1193_v12 = vmul.f32 %v5633_v35, %v1122_v29  ;;  %v1126_v11 = vmax.f32 %v5781_v33, 0.0 }
 0x1ab   :  { %1305 = vadd.xlane.f32.xlu0 %v1191_v43  ;;  %v6008_v47 = vmul.f32 %v5633_v35, %v1132_v24  ;;  %v6011_v3 = vmul.f32 %v5633_v35, %v1133_v61  ;;  %v6014_v17 = vmul.f32 %v5633_v35, %v1100_v60  ;;  %v1194_v13 = vmul.f32 %v5633_v35, %v1123_v32  ;;  %v6023_v58 = vpop.permute.xlu1 %1548  ;;  %v6026_v49 = vpop.permute.xlu0 %1544 }
 0x1ac   :  { %1307 = vadd.xlane.f32.xlu1 %v1192_v45  ;;  %v6017_v37 = vmul.f32 %v5633_v35, %v1101_v9  ;;  %v1127_v44 = vmax.f32 %v5791_v2, 0.0  ;;  %v1197_v43 = vmul.f32 %v5633_v35, %v1126_v11 }
 0x1ae   :  { %v1198_v45 = vmul.f32 %v5633_v35, %v1127_v44 }
 0x1af   :  { %1309 = vadd.xlane.f32.xlu0 %v1193_v12  ;;  %v6029_v53 = vpop.permute.xlu1 %1559  ;;  %v6032_v33 = vpop.permute.xlu0 %1555 }
 0x1b0   :  { %1311 = vadd.xlane.f32.xlu1 %v1194_v13 }
 0x1b3   :  { %1317 = vadd.xlane.f32.xlu0 %v1197_v43  ;;  %v6037_v2 = vpop.permute.xlu1 %1570  ;;  %v6039_v29 = vpop.permute.xlu0 %1566  ;;  %v7742_v43 = vld [vmem:[#allocation27_spill] sm:$0xff] }
 0x1b4   :  { %1319 = vadd.xlane.f32.xlu1 %v1198_v45 }
 0x1b7   :  { %1217 = vadd.xlane.f32.xlu0 %v5842_v62  ;;  %v6043_v35 = vpop.permute.xlu1 %1581  ;;  %v6046_v62 = vpop.permute.xlu0 %1577 }
 0x1b8   :  { %1219 = vadd.xlane.f32.xlu1 %v5845_v59 }
 0x1bb   :  { %1225 = vadd.xlane.f32.xlu0 %v5848_v20  ;;  %v6051_v59 = vpop.permute.xlu1 %1592  ;;  %v6053_v20 = vpop.permute.xlu0 %1588 }
 0x1bc   :  { %1227 = vadd.xlane.f32.xlu1 %v5851_v15 }
 0x1bf   :  { %1229 = vadd.xlane.f32.xlu0 %v5854_v6  ;;  %v6057_v15 = vpop.permute.xlu1 %1603  ;;  %v6060_v6 = vpop.permute.xlu0 %1599 }
 0x1c0   :  { %1231 = vadd.xlane.f32.xlu1 %v5857_v4 }
 0x1c3   :  { %1241 = vadd.xlane.f32.xlu0 %v5860_v19  ;;  %v1615_v4 = vpop.permute.xlu1 %1614  ;;  %v6065_v19 = vpop.permute.xlu0 %1610 }
 0x1c4   :  { %1243 = vadd.xlane.f32.xlu1 %v5863_v1 }
 0x1c7   :  { %1245 = vadd.xlane.f32.xlu0 %v5891_v5  ;;  %v6069_v1 = vpop.permute.xlu1 %1625  ;;  %v6072_v5 = vpop.permute.xlu0 %1621 }
 0x1c8   :  { %1247 = vadd.xlane.f32.xlu1 %v5894_v39 }
 0x1cb   :  { %1253 = vadd.xlane.f32.xlu0 %v5899_v34  ;;  %v6077_v39 = vpop.permute.xlu1 %1636  ;;  %v6079_v34 = vpop.permute.xlu0 %1632 }
 0x1cc   :  { %1255 = vadd.xlane.f32.xlu1 %v5902_v55 }
 0x1cf   :  { %1297 = vadd.xlane.f32.xlu0 %v5907_v23  ;;  %v6083_v55 = vpop.permute.xlu1 %1647  ;;  %v6086_v23 = vpop.permute.xlu0 %1643 }
 0x1d0   :  { %1299 = vadd.xlane.f32.xlu1 %v5910_v14 }
 0x1d3   :  { %1313 = vadd.xlane.f32.xlu0 %v5913_v8  ;;  %v6091_v14 = vpop.permute.xlu1 %1658  ;;  %v6093_v8 = vpop.permute.xlu0 %1654 }
 0x1d4   :  { %1315 = vadd.xlane.f32.xlu1 %v5916_v50 }
 0x1d7   :  { %1321 = vadd.xlane.f32.xlu0 %v5942_v0  ;;  %v6097_v50 = vpop.permute.xlu1 %1669 }
 0x1d8   :  { %1323 = vadd.xlane.f32.xlu1 %v5945_v22 }
 0x1db   :  { %1325 = vadd.xlane.f32.xlu0 %v5952_v63  ;;  %v6100_v63 = vpop.permute.xlu0 %1665  ;;  %v6103_v0 = vpop.permute.xlu1 %1680 }
 0x1dc   :  { %1327 = vadd.xlane.f32.xlu1 %v5955_v41 }
 0x1df   :  { %1233 = vadd.xlane.f32.xlu0 %v5968_v18 }
 0x1e0   :  { %1235 = vadd.xlane.f32.xlu1 %v5971_v48  ;;  %v7732_v48 = vld [vmem:[#allocation28_spill] sm:$0xff] }
 0x1e3   :  { %1249 = vadd.xlane.f32.xlu0 %v5974_v25 }
 0x1e4   :  { %1251 = vadd.xlane.f32.xlu1 %v5977_v57 }
 0x1e7   :  { %1257 = vadd.xlane.f32.xlu0 %v5982_v21  ;;  %v7733_v21 = vld [vmem:[#allocation20_spill] sm:$0xff] }
 0x1e8   :  { %1259 = vadd.xlane.f32.xlu1 %v5985_v31 }
 0x1eb   :  { %1261 = vadd.xlane.f32.xlu0 %v5936_v54  ;;  %v6105_v54 = vpop.permute.xlu0 %1676 }
 0x1ec   :  { %1263 = vadd.xlane.f32.xlu1 %v5667_v38  ;;  %v6107_v38 = vpop.permute.xlu1 %1691 }
 0x1ef   :  { %1329 = vadd.xlane.f32.xlu0 %v6008_v47  ;;  %v6109_v22 = vpop.permute.xlu0 %1687 }
 0x1f0   :  { %1331 = vadd.xlane.f32.xlu1 %v6011_v3 }
 0x1f3   :  { %1265 = vadd.xlane.f32.xlu0 %v6014_v17 }
 0x1f4   :  { %1267 = vadd.xlane.f32.xlu1 %v6017_v37 }
 0x203   :  { %v1276_v41 = vpop.xlane.xlu1 %1275  ;;  %v1206_v18 = vpop.xlane.xlu0 %1205 }
 0x204   :  { %v6112_v25 = vadd.f32 %v7732_v48, %v1206_v18  ;;  %v6119_v24 = vadd.f32 %v6003_v7, %v1276_v41  ;;  %v7744_v41 = vld [vmem:[#allocation33_spill] sm:$0xff]  ;;  %v7745_v48 = vld [vmem:[#allocation22_spill] sm:$0xff] }
 0x206   :  { %7734 = vst [vmem:[#allocation38_spill] sm:$0xff] %v6119_v24 }
 0x207   :  { %v1208_v57 = vpop.xlane.xlu0 %1207  ;;  %v1280_v32 = vpop.xlane.xlu1 %1279 }
 0x208   :  { %v6115_v31 = vadd.f32 %v7733_v21, %v1208_v57  ;;  %v6127_v47 = vadd.f32 %v6023_v58, %v1280_v32  ;;  %v7746_v32 = vld [vmem:[#allocation47_spill] sm:$0xff] }
 0x209   :  { %1886 = vperm.xlu0 %4905, %v6112_v25  }
 0x20a   :  { %1889 = vperm.xlu1 %4906, %v6115_v31   ;;  %7736 = vst [vmem:[#allocation46_spill] sm:$0xff] %v6127_v47 }
 0x20b   :  { %v1270_v61 = vpop.xlane.xlu0 %1269  ;;  %v1288_v9 = vpop.xlane.xlu1 %1287 }
 0x20c   :  { %v6123_v60 = vadd.f32 %v5979_v30, %v1270_v61  ;;  %v6135_v37 = vadd.f32 %v6037_v2, %v1288_v9  ;;  %v7747_v9 = vld [vmem:[#allocation34_spill] sm:$0xff] }
 0x20d   :  { %1991 = vperm.xlu0 %4905, %v6119_v24  }
 0x20e   :  { %7735 = vst [vmem:[#allocation43_spill] sm:$0xff] %v6123_v60  ;;  %1982 = vperm.xlu1 %4906, %v6123_v60   ;;  %7738 = vst [vmem:[#allocation63_spill] sm:$0xff] %v6135_v37 }
 0x20f   :  { %v1274_v3 = vpop.xlane.xlu0 %1273  ;;  %v1304_v7 = vpop.xlane.xlu1 %1303 }
 0x210   :  { %v6131_v17 = vadd.f32 %v6005_v42, %v1274_v3  ;;  %v6142_v13 = vadd.f32 %v1615_v4, %v1304_v7 }
 0x211   :  { %1997 = vperm.xlu0 %4905, %v6127_v47  }
 0x212   :  { %7737 = vst [vmem:[#allocation64_spill] sm:$0xff] %v6131_v17  ;;  %1988 = vperm.xlu1 %4906, %v6131_v17   ;;  %7740 = vst [vmem:[#allocation56_spill] sm:$0xff] %v6142_v13 }
 0x213   :  { %v1278_v30 = vpop.xlane.xlu0 %1277  ;;  %v1210_v11 = vpop.xlane.xlu1 %1209 }
 0x214   :  { %v6139_v12 = vadd.f32 %v6026_v49, %v1278_v30  ;;  %v6162_v57 = vadd.f32 %v7745_v48, %v1210_v11 }
 0x215   :  { %2009 = vperm.xlu0 %4905, %v6135_v37  }
 0x216   :  { %7739 = vst [vmem:[#allocation52_spill] sm:$0xff] %v6139_v12  ;;  %1994 = vperm.xlu1 %4906, %v6139_v12  }
 0x217   :  { %v1286_v42 = vpop.xlane.xlu0 %1285  ;;  %v1212_v58 = vpop.xlane.xlu1 %1211 }
 0x218   :  { %v6146_v44 = vadd.f32 %v6039_v29, %v1286_v42  ;;  %v6150_v45 = vadd.f32 %v7742_v43, %v1212_v58  ;;  %v7749_v42 = vld [vmem:[#allocation48_spill] sm:$0xff] }
 0x219   :  { %2033 = vperm.xlu0 %4905, %v6142_v13  }
 0x21a   :  { %7741 = vst [vmem:[#allocation23_spill] sm:$0xff] %v6146_v44  ;;  %2006 = vperm.xlu1 %4906, %v6146_v44  }
 0x21b   :  { %v1302_v49 = vpop.xlane.xlu0 %1301  ;;  %v1216_v4 = vpop.xlane.xlu1 %1215 }
 0x21c   :  { %v6154_v2 = vadd.f32 %v6065_v19, %v1302_v49  ;;  %v6158_v18 = vadd.f32 %v7744_v41, %v1216_v4 }
 0x21d   :  { %1895 = vperm.xlu0 %4905, %v6150_v45  }
 0x21e   :  { %7743 = vst [vmem:[#allocation25_spill] sm:$0xff] %v6154_v2  ;;  %2030 = vperm.xlu1 %4906, %v6154_v2  }
 0x21f   :  { %v1214_v29 = vpop.xlane.xlu0 %1213  ;;  %v1224_v21 = vpop.xlane.xlu1 %1223 }
 0x220   :  { %v6166_v61 = vadd.f32 %v7746_v32, %v1224_v21  ;;  %v6170_v3 = vadd.f32 %v7747_v9, %v1214_v29 }
 0x221   :  { %1901 = vperm.xlu0 %4905, %v6158_v18  }
 0x222   :  { %1892 = vperm.xlu1 %4906, %v6162_v57  }
 0x223   :  { %v1222_v19 = vpop.xlane.xlu0 %1221  ;;  %v1240_v7 = vpop.xlane.xlu1 %1239 }
 0x224   :  { %v6174_v30 = vadd.f32 %v5655_v27, %v1240_v7  ;;  %v6178_v58 = vadd.f32 %v7749_v42, %v1222_v19 }
 0x225   :  { %1913 = vperm.xlu0 %4905, %v6166_v61  }
 0x226   :  { %7748 = vst [vmem:[#allocation35_spill] sm:$0xff] %v6174_v30  ;;  %1898 = vperm.xlu1 %4906, %v6170_v3   ;;  %7750 = vst [vmem:[#allocation37_spill] sm:$0xff] %v6178_v58 }
 0x227   :  { %v1238_v11 = vpop.xlane.xlu0 %1237  ;;  %v1272_v43 = vpop.xlane.xlu1 %1271 }
 0x228   :  { %v6182_v49 = vadd.f32 %v5965_v28, %v1272_v43  ;;  %v6186_v41 = vadd.f32 %v5661_v46, %v1238_v11 }
 0x229   :  { %1937 = vperm.xlu0 %4905, %v6174_v30  }
 0x22a   :  { %7751 = vst [vmem:[#allocation41_spill] sm:$0xff] %v6182_v49  ;;  %1910 = vperm.xlu1 %4906, %v6178_v58   ;;  %7752 = vst [vmem:[#allocation44_spill] sm:$0xff] %v6186_v41 }
 0x22b   :  { %v1282_v4 = vpop.xlane.xlu0 %1281  ;;  %v1284_v27 = vpop.xlane.xlu1 %1283 }
 0x22c   :  { %v6190_v29 = vadd.f32 %v6029_v53, %v1284_v27  ;;  %v6194_v21 = vadd.f32 %v6032_v33, %v1282_v4 }
 0x22d   :  { %1985 = vperm.xlu0 %4905, %v6182_v49  }
 0x22e   :  { %7753 = vst [vmem:[#allocation51_spill] sm:$0xff] %v6190_v29  ;;  %1934 = vperm.xlu1 %4906, %v6186_v41   ;;  %7754 = vst [vmem:[#allocation55_spill] sm:$0xff] %v6194_v21 }
 0x22f   :  { %v1290_v48 = vpop.xlane.xlu0 %1289 }
 0x230   :  { %v1292_v28 = vpop.xlane.xlu1 %1291  ;;  %v6202_v19 = vadd.f32 %v6046_v62, %v1290_v48 }
 0x231   :  { %2003 = vperm.xlu0 %4905, %v6190_v29   ;;  %v6198_v32 = vadd.f32 %v6043_v35, %v1292_v28  ;;  %v7765_v28 = vld [vmem:[#allocation39_spill] sm:$0xff]  ;;  %v7810_v29 = vld [vmem:[#allocation12_spill] sm:$0xff] }
 0x232   :  { %2000 = vperm.xlu1 %4906, %v6194_v21   ;;  %7756 = vst [vmem:[#allocation29_spill] sm:$0xff] %v6202_v19 }
 0x233   :  { %7755 = vst [vmem:[#allocation66_spill] sm:$0xff] %v6198_v32  ;;  %v1294_v46 = vpop.xlane.xlu0 %1293 }
 0x234   :  { %v1296_v53 = vpop.xlane.xlu1 %1295  ;;  %v6210_v7 = vadd.f32 %v6053_v20, %v1294_v46 }
 0x235   :  { %2015 = vperm.xlu0 %4905, %v6198_v32   ;;  %v6206_v9 = vadd.f32 %v6051_v59, %v1296_v53  ;;  %v7766_v53 = vld [vmem:[#allocation40_spill] sm:$0xff] }
 0x236   :  { %2012 = vperm.xlu1 %4906, %v6202_v19   ;;  %7758 = vst [vmem:[#allocation42_spill] sm:$0xff] %v6210_v7  ;;  %v7809_v19 = vlaneseq }
 0x237   :  { %7757 = vst [vmem:[#allocation31_spill] sm:$0xff] %v6206_v9 }
 0x238   :  { %v1306_v33 = vpop.xlane.xlu0 %1305 }
 0x239   :  { %2021 = vperm.xlu0 %4905, %v6206_v9   ;;  %v1308_v35 = vpop.xlane.xlu1 %1307  ;;  %v6218_v42 = vadd.f32 %v6072_v5, %v1306_v33  ;;  %v2078_v9 = vand.u32 127, %v7809_v19 }
 0x23a   :  { %v6214_v11 = vadd.f32 %v6069_v1, %v1308_v35  ;;  %2018 = vperm.xlu1 %4906, %v6210_v7   ;;  %v7767_v35 = vld [vmem:[#allocation57_spill] sm:$0xff] }
 0x23b   :  { %7760 = vst [vmem:[#allocation50_spill] sm:$0xff] %v6218_v42  ;;  %v2083_v21 = vadd.s32 4294967288, %v2078_v9  ;;  %v6425_v60 = vsub.s32 %v2078_v9, %v7810_v29 }
 0x23c   :  { %7759 = vst [vmem:[#allocation45_spill] sm:$0xff] %v6214_v11  ;;  %v1310_v62 = vpop.xlane.xlu0 %1309 }
 0x23d   :  { %2039 = vperm.xlu0 %4905, %v6214_v11   ;;  %v1312_v59 = vpop.xlane.xlu1 %1311  ;;  %v6226_v4 = vadd.f32 %v6079_v34, %v1310_v62  ;;  %v6420_v17 = vsub.s32 %v2083_v21, %v7810_v29 }
 0x23e   :  { %v6222_v43 = vadd.f32 %v6077_v39, %v1312_v59  ;;  %2036 = vperm.xlu1 %4906, %v6218_v42   ;;  %v7768_v59 = vld [vmem:[#allocation58_spill] sm:$0xff] }
 0x23f   :  { %7762 = vst [vmem:[#allocation49_spill] sm:$0xff] %v6226_v4 }
 0x240   :  { %7761 = vst [vmem:[#allocation54_spill] sm:$0xff] %v6222_v43  ;;  %v1318_v20 = vpop.xlane.xlu0 %1317 }
 0x241   :  { %2045 = vperm.xlu0 %4905, %v6222_v43   ;;  %v1320_v1 = vpop.xlane.xlu1 %1319  ;;  %v6234_v48 = vadd.f32 %v6093_v8, %v1318_v20 }
 0x242   :  { %v6230_v27 = vadd.f32 %v6091_v14, %v1320_v1  ;;  %2042 = vperm.xlu1 %4906, %v6226_v4  }
 0x243   :  { %7764 = vst [vmem:[#allocation59_spill] sm:$0xff] %v6234_v48 }
 0x244   :  { %7763 = vst [vmem:[#allocation53_spill] sm:$0xff] %v6230_v27  ;;  %v1218_v5 = vpop.xlane.xlu0 %1217 }
 0x245   :  { %2057 = vperm.xlu0 %4905, %v6230_v27   ;;  %v1220_v39 = vpop.xlane.xlu1 %1219  ;;  %v6242_v33 = vadd.f32 %v7766_v53, %v1218_v5  ;;  %v7772_v53 = vld [vmem:[#allocation62_spill] sm:$0xff] }
 0x246   :  { %v6238_v46 = vadd.f32 %v7765_v28, %v1220_v39  ;;  %2054 = vperm.xlu1 %4906, %v6234_v48   ;;  %v7770_v39 = vld [vmem:[#allocation61_spill] sm:$0xff] }
 0x248   :  { %v1226_v34 = vpop.xlane.xlu0 %1225 }
 0x249   :  { %1907 = vperm.xlu0 %4905, %v6238_v46   ;;  %v1228_v14 = vpop.xlane.xlu1 %1227  ;;  %v6250_v20 = vadd.f32 %v7768_v59, %v1226_v34 }
 0x24a   :  { %v6246_v62 = vadd.f32 %v7767_v35, %v1228_v14  ;;  %1904 = vperm.xlu1 %4906, %v6242_v33  }
 0x24b   :  { %7769 = vst [vmem:[#allocation60_spill] sm:$0xff] %v6250_v20 }
 0x24c   :  { %v1230_v8 = vpop.xlane.xlu0 %1229 }
 0x24d   :  { %1919 = vperm.xlu0 %4905, %v6246_v62   ;;  %v1232_v1 = vpop.xlane.xlu1 %1231  ;;  %v6258_v41 = vadd.f32 %v7772_v53, %v1230_v8 }
 0x24e   :  { %v6254_v28 = vadd.f32 %v7770_v39, %v1232_v1  ;;  %1916 = vperm.xlu1 %4906, %v6250_v20  }
 0x24f   :  { %7773 = vst [vmem:[#allocation20_spill] sm:$0xff] %v6258_v41 }
 0x250   :  { %7771 = vst [vmem:[#allocation28_spill] sm:$0xff] %v6254_v28  ;;  %v1242_v5 = vpop.xlane.xlu0 %1241 }
 0x251   :  { %1925 = vperm.xlu0 %4905, %v6254_v28   ;;  %v1244_v14 = vpop.xlane.xlu1 %1243  ;;  %v6266_v59 = vadd.f32 %v5696_v16, %v1242_v5 }
 0x252   :  { %v6262_v35 = vadd.f32 %v5692_v56, %v1244_v14  ;;  %1922 = vperm.xlu1 %4906, %v6258_v41  }
 0x253   :  { %7775 = vst [vmem:[#allocation33_spill] sm:$0xff] %v6266_v59 }
 0x254   :  { %7774 = vst [vmem:[#allocation27_spill] sm:$0xff] %v6262_v35  ;;  %v1246_v34 = vpop.xlane.xlu0 %1245 }
 0x255   :  { %1943 = vperm.xlu0 %4905, %v6262_v35   ;;  %v1248_v1 = vpop.xlane.xlu1 %1247  ;;  %v6274_v53 = vadd.f32 %v5722_v26, %v1246_v34 }
 0x256   :  { %v6270_v39 = vadd.f32 %v5716_v51, %v1248_v1  ;;  %1940 = vperm.xlu1 %4906, %v6266_v59  }
 0x257   :  { %7777 = vst [vmem:[#allocation47_spill] sm:$0xff] %v6274_v53 }
 0x258   :  { %7776 = vst [vmem:[#allocation22_spill] sm:$0xff] %v6270_v39  ;;  %v1254_v8 = vpop.xlane.xlu0 %1253 }
 0x259   :  { %1949 = vperm.xlu0 %4905, %v6270_v39   ;;  %v1256_v56 = vpop.xlane.xlu1 %1255  ;;  %v6282_v5 = vadd.f32 %v5805_v52, %v1254_v8 }
 0x25a   :  { %v6278_v14 = vadd.f32 %v5793_v10, %v1256_v56  ;;  %1946 = vperm.xlu1 %4906, %v6274_v53  }
 0x25b   :  { %7779 = vst [vmem:[#allocation48_spill] sm:$0xff] %v6282_v5 }
 0x25c   :  { %7778 = vst [vmem:[#allocation34_spill] sm:$0xff] %v6278_v14  ;;  %v1298_v16 = vpop.xlane.xlu0 %1297 }
 0x25d   :  { %1961 = vperm.xlu0 %4905, %v6278_v14   ;;  %v1300_v51 = vpop.xlane.xlu1 %1299  ;;  %v6290_v34 = vadd.f32 %v6060_v6, %v1298_v16 }
 0x25e   :  { %v6286_v1 = vadd.f32 %v6057_v15, %v1300_v51  ;;  %1958 = vperm.xlu1 %4906, %v6282_v5  }
 0x25f   :  { %7781 = vst [vmem:[#allocation40_spill] sm:$0xff] %v6290_v34 }
 0x260   :  { %7780 = vst [vmem:[#allocation39_spill] sm:$0xff] %v6286_v1  ;;  %v1314_v26 = vpop.xlane.xlu0 %1313 }
 0x261   :  { %2027 = vperm.xlu0 %4905, %v6286_v1   ;;  %v1316_v10 = vpop.xlane.xlu1 %1315  ;;  %v6298_v8 = vadd.f32 %v6086_v23, %v1314_v26 }
 0x262   :  { %v6294_v56 = vadd.f32 %v6083_v55, %v1316_v10  ;;  %2024 = vperm.xlu1 %4906, %v6290_v34  }
 0x263   :  { %7783 = vst [vmem:[#allocation58_spill] sm:$0xff] %v6298_v8 }
 0x264   :  { %7782 = vst [vmem:[#allocation57_spill] sm:$0xff] %v6294_v56  ;;  %v1322_v52 = vpop.xlane.xlu0 %1321 }
 0x265   :  { %2051 = vperm.xlu0 %4905, %v6294_v56   ;;  %v1324_v15 = vpop.xlane.xlu1 %1323  ;;  %v6306_v16 = vadd.f32 %v6100_v63, %v1322_v52  ;;  %v7790_v52 = vld [vmem:[#allocation67_spill] sm:$0xff] }
 0x266   :  { %v6302_v51 = vadd.f32 %v6097_v50, %v1324_v15  ;;  %2048 = vperm.xlu1 %4906, %v6298_v8   ;;  %v7788_v15 = vld [vmem:[#allocation65_spill] sm:$0xff] }
 0x267   :  { %7785 = vst [vmem:[#allocation62_spill] sm:$0xff] %v6306_v16 }
 0x268   :  { %7784 = vst [vmem:[#allocation61_spill] sm:$0xff] %v6302_v51  ;;  %v1326_v6 = vpop.xlane.xlu0 %1325 }
 0x269   :  { %2063 = vperm.xlu0 %4905, %v6302_v51   ;;  %v1328_v55 = vpop.xlane.xlu1 %1327  ;;  %v6314_v26 = vadd.f32 %v6105_v54, %v1326_v6  ;;  %v7793_v6 = vld [vmem:[#allocation68_spill] sm:$0xff] }
 0x26a   :  { %v6310_v10 = vadd.f32 %v6103_v0, %v1328_v55  ;;  %2060 = vperm.xlu1 %4906, %v6306_v16  }
 0x26b   :  { %7787 = vst [vmem:[#allocation70_spill] sm:$0xff] %v6314_v26 }
 0x26c   :  { %7786 = vst [vmem:[#allocation69_spill] sm:$0xff] %v6310_v10  ;;  %v1234_v23 = vpop.xlane.xlu0 %1233 }
 0x26d   :  { %2069 = vperm.xlu0 %4905, %v6310_v10   ;;  %v1236_v50 = vpop.xlane.xlu1 %1235  ;;  %v6322_v14 = vadd.f32 %v7790_v52, %v1234_v23  ;;  %v7797_v52 = vld [vmem:[#allocation24_spill] sm:$0xff] }
 0x26e   :  { %v6318_v5 = vadd.f32 %v7788_v15, %v1236_v50  ;;  %2066 = vperm.xlu1 %4906, %v6314_v26   ;;  %v7795_v15 = vld [vmem:[#allocation21_spill] sm:$0xff] }
 0x26f   :  { %7791 = vst [vmem:[#allocation67_spill] sm:$0xff] %v6322_v14 }
 0x270   :  { %7789 = vst [vmem:[#allocation65_spill] sm:$0xff] %v6318_v5  ;;  %v1250_v63 = vpop.xlane.xlu0 %1249 }
 0x271   :  { %1931 = vperm.xlu0 %4905, %v6318_v5   ;;  %v1252_v0 = vpop.xlane.xlu1 %1251  ;;  %v6330_v53 = vadd.f32 %v7793_v6, %v1250_v63  ;;  %v7801_v6 = vld [vmem:[#allocation30_spill] sm:$0xff] }
 0x272   :  { %v6326_v55 = vadd.f32 %v5747_v40, %v1252_v0  ;;  %1928 = vperm.xlu1 %4906, %v6322_v14   ;;  %v7799_v0 = vld [vmem:[#allocation26_spill] sm:$0xff] }
 0x273   :  { %7794 = vst [vmem:[#allocation68_spill] sm:$0xff] %v6330_v53 }
 0x274   :  { %7792 = vst [vmem:[#allocation71_spill] sm:$0xff] %v6326_v55  ;;  %v1258_v54 = vpop.xlane.xlu0 %1257 }
 0x275   :  { %1955 = vperm.xlu0 %4905, %v6326_v55   ;;  %v1260_v50 = vpop.xlane.xlu1 %1259  ;;  %v6338_v39 = vadd.f32 %v7797_v52, %v1258_v54 }
 0x276   :  { %v6334_v59 = vadd.f32 %v7795_v15, %v1260_v50  ;;  %1952 = vperm.xlu1 %4906, %v6330_v53  }
 0x277   :  { %7798 = vst [vmem:[#allocation24_spill] sm:$0xff] %v6338_v39 }
 0x278   :  { %7796 = vst [vmem:[#allocation21_spill] sm:$0xff] %v6334_v59  ;;  %v1262_v23 = vpop.xlane.xlu0 %1261 }
 0x279   :  { %1967 = vperm.xlu0 %4905, %v6334_v59   ;;  %v1264_v40 = vpop.xlane.xlu1 %1263  ;;  %v6346_v55 = vadd.f32 %v7801_v6, %v1262_v23  ;;  %v7807_v23 = vld [vmem:[#allocation36_spill] sm:$0xff] }
 0x27a   :  { %v6342_v35 = vadd.f32 %v7799_v0, %v1264_v40  ;;  %1964 = vperm.xlu1 %4906, %v6338_v39   ;;  %v7805_v0 = vld [vmem:[#allocation32_spill] sm:$0xff] }
 0x27b   :  { %7802 = vst [vmem:[#allocation30_spill] sm:$0xff] %v6346_v55 }
 0x27c   :  { %7800 = vst [vmem:[#allocation26_spill] sm:$0xff] %v6342_v35  ;;  %v1330_v63 = vpop.xlane.xlu0 %1329 }
 0x27d   :  { %1973 = vperm.xlu0 %4905, %v6342_v35   ;;  %v1332_v50 = vpop.xlane.xlu1 %1331  ;;  %v6354_v54 = vadd.f32 %v6109_v22, %v1330_v63 }
 0x27e   :  { %v6350_v15 = vadd.f32 %v6107_v38, %v1332_v50  ;;  %1970 = vperm.xlu1 %4906, %v6346_v55  }
 0x27f   :  { %7804 = vst [vmem:[#allocation73_spill] sm:$0xff] %v6354_v54 }
 0x280   :  { %7803 = vst [vmem:[#allocation72_spill] sm:$0xff] %v6350_v15  ;;  %v1266_v40 = vpop.xlane.xlu0 %1265 }
 0x281   :  { %2075 = vperm.xlu0 %4905, %v6350_v15   ;;  %v1268_v52 = vpop.xlane.xlu1 %1267  ;;  %v6362_v6 = vadd.f32 %v7807_v23, %v1266_v40 }
 0x282   :  { %v6358_v39 = vadd.f32 %v7805_v0, %v1268_v52  ;;  %2072 = vperm.xlu1 %4906, %v6354_v54  }
 0x283   :  { %7808 = vst [vmem:[#allocation36_spill] sm:$0xff] %v6362_v6 }
 0x284   :  { %7806 = vst [vmem:[#allocation32_spill] sm:$0xff] %v6358_v39 }
 0x285   :  { %1979 = vperm.xlu0 %4905, %v6358_v39  }
 0x286   :  { %1976 = vperm.xlu1 %4906, %v6362_v6  }
 0x288   :  { %v6366_v38 = vpop.permute.xlu0 %1886 }
 0x289   :  { %v6368_v22 = vpop.permute.xlu1 %1889 }
 0x28c   :  { %v1992_v63 = vpop.permute.xlu0 %1991 }
 0x28d   :  { %v1983_v50 = vpop.permute.xlu1 %1982  ;;  %v2241_v5 = vrot.slane %v1992_v63, %v6420_v17 }
 0x28e   :  { %v2228_v14 = vrot.slane %v1983_v50, %v6425_v60 }
 0x290   :  { %v1998_v55 = vpop.permute.xlu0 %1997 }
 0x291   :  { %v1989_v35 = vpop.permute.xlu1 %1988 }
 0x292   :  { %v2237_v49 = vrot.slane %v1989_v35, %v6425_v60  ;;  %v2250_v35 = vrot.slane %v1998_v55, %v6420_v17 }
 0x294   :  { %v6370_v59 = vpop.permute.xlu0 %2009 }
 0x295   :  { %v1995_v52 = vpop.permute.xlu1 %1994 }
 0x296   :  { %v2246_v29 = vrot.slane %v1995_v52, %v6425_v60  ;;  %v2268_v52 = vrot.slane %v6370_v59, %v6420_v17 }
 0x298   :  { %v6372_v0 = vpop.permute.xlu0 %2033 }
 0x299   :  { %v6374_v53 = vpop.permute.xlu1 %2006 }
 0x29a   :  { %v2264_v63 = vrot.slane %v6374_v53, %v6425_v60 }
 0x29c   :  { %v6376_v40 = vpop.permute.xlu0 %1895 }
 0x29d   :  { %v6378_v23 = vpop.permute.xlu1 %2030 }
 0x2a0   :  { %v6380_v6 = vpop.permute.xlu0 %1901 }
 0x2a1   :  { %v6382_v39 = vpop.permute.xlu1 %1892 }
 0x2a4   :  { %v6384_v54 = vpop.permute.xlu0 %1913 }
 0x2a5   :  { %v6386_v30 = vpop.permute.xlu1 %1898 }
 0x2a8   :  { %v6388_v26 = vpop.permute.xlu0 %1937 }
 0x2a9   :  { %v6390_v15 = vpop.permute.xlu1 %1910 }
 0x2ac   :  { %v1986_v16 = vpop.permute.xlu0 %1985 }
 0x2ad   :  { %v6392_v10 = vpop.permute.xlu1 %1934  ;;  %v2232_v24 = vrot.slane %v1986_v16, %v6420_v17  ;;  %v2242_v16 = vsel %vm2088_vm0, %v2241_v5, %v2237_v49 }
 0x2af   :  { %v2233_v21 = vsel %vm2088_vm0, %v2232_v24, %v2228_v14 }
 0x2b0   :  { %v2004_v48 = vpop.permute.xlu0 %2003  ;;  %v2390_v28 = vsel %vm2369_vm1, %v2242_v16, %v2233_v21 }
 0x2b1   :  { %v2001_v51 = vpop.permute.xlu1 %2000  ;;  %v2259_v50 = vrot.slane %v2004_v48, %v6420_v17 }
 0x2b2   :  { %v2255_v20 = vrot.slane %v2001_v51, %v6425_v60  ;;  %v2251_v51 = vsel %vm2088_vm0, %v2250_v35, %v2246_v29 }
 0x2b3   :  { %v2391_v5 = vsel %vm2371_vm3, %v2251_v51, %v2390_v28 }
 0x2b4   :  { %v2016_v8 = vpop.permute.xlu0 %2015  ;;  %v2260_v24 = vsel %vm2088_vm0, %v2259_v50, %v2255_v20 }
 0x2b5   :  { %v2013_v27 = vpop.permute.xlu1 %2012  ;;  %v2277_v55 = vrot.slane %v2016_v8, %v6420_v17  ;;  %v2392_v20 = vsel %vm2373_vm2, %v2260_v24, %v2391_v5  ;;  %v2102_v5 = vrot.slane %v6386_v30, %v6425_v60  ;;  %v2082_v30 = vrot.slane %v6366_v38, %v6425_v60 }
 0x2b6   :  { %v2273_v14 = vrot.slane %v2013_v27, %v6425_v60  ;;  %v2120_v38 = vrot.slane %v6390_v15, %v6425_v60 }
 0x2b8   :  { %v2022_v4 = vpop.permute.xlu0 %2021  ;;  %v2278_v53 = vsel %vm2088_vm0, %v2277_v55, %v2273_v14 }
 0x2b9   :  { %v2019_v56 = vpop.permute.xlu1 %2018  ;;  %v2286_v27 = vrot.slane %v2022_v4, %v6420_v17 }
 0x2ba   :  { %v2282_v49 = vrot.slane %v2019_v56, %v6425_v60  ;;  %v2269_v56 = vsel %vm2088_vm0, %v2268_v52, %v2264_v63  ;;  %v2093_v63 = vrot.slane %v6382_v39, %v6425_v60  ;;  %v2087_v52 = vrot.slane %v6368_v22, %v6420_v17 }
 0x2bb   :  { %v2393_v59 = vsel %vm2375_vm4, %v2269_v56, %v2392_v20  ;;  %v2097_v20 = vrot.slane %v6376_v40, %v6420_v17  ;;  %v2106_v39 = vrot.slane %v6380_v6, %v6420_v17 }
 0x2bc   :  { %v6394_v42 = vpop.permute.xlu0 %2039  ;;  %v2287_v29 = vsel %vm2088_vm0, %v2286_v27, %v2282_v49  ;;  %v2394_v4 = vsel %vm2377_vm5, %v2278_v53, %v2393_v59  ;;  %v2089_v40 = vsel %vm2088_vm0, %v2087_v52, %v2082_v30 }
 0x2bd   :  { %v6396_v43 = vpop.permute.xlu1 %2036  ;;  %v2395_v24 = vsel %vm2379_vm6, %v2287_v29, %v2394_v4  ;;  %v2098_v53 = vsel %vm2088_vm0, %v2097_v20, %v2093_v63  ;;  %v2107_v22 = vsel %vm2088_vm0, %v2106_v39, %v2102_v5  ;;  %v2124_v4 = vrot.slane %v6384_v54, %v6420_v17 }
 0x2c0   :  { %v6398_v2 = vpop.permute.xlu0 %2045 }
 0x2c1   :  { %v6400_v11 = vpop.permute.xlu1 %2042 }
 0x2c4   :  { %v6402_v34 = vpop.permute.xlu0 %2057 }
 0x2c5   :  { %v6404_v13 = vpop.permute.xlu1 %2054 }
 0x2c8   :  { %v6406_v7 = vpop.permute.xlu0 %1907 }
 0x2c9   :  { %v6408_v1 = vpop.permute.xlu1 %1904  ;;  %v2115_v56 = vrot.slane %v6406_v7, %v6420_v17 }
 0x2ca   :  { %v2111_v27 = vrot.slane %v6408_v1, %v6425_v60 }
 0x2cc   :  { %v6411_v44 = vpop.permute.xlu0 %1919  ;;  %v2116_v1 = vsel %vm2088_vm0, %v2115_v56, %v2111_v27  ;;  %v2300_v27 = vrot.slane %v6378_v23, %v6425_v60 }
 0x2cd   :  { %v6413_v32 = vpop.permute.xlu1 %1916  ;;  %v2133_v59 = vrot.slane %v6411_v44, %v6420_v17 }
 0x2ce   :  { %v2129_v6 = vrot.slane %v6413_v32, %v6425_v60 }
 0x2d0   :  { %v6415_v37 = vpop.permute.xlu0 %1925  ;;  %v2134_v15 = vsel %vm2088_vm0, %v2133_v59, %v2129_v6  ;;  %v2313_v6 = vrot.slane %v6394_v42, %v6420_v17 }
 0x2d1   :  { %v6417_v12 = vpop.permute.xlu1 %1922 }
 0x2d4   :  { %v6422_v47 = vpop.permute.xlu0 %1943 }
 0x2d5   :  { %v6428_v19 = vpop.permute.xlu1 %1940  ;;  %v2169_v59 = vrot.slane %v6422_v47, %v6420_v17 }
 0x2d8   :  { %v6432_v41 = vpop.permute.xlu0 %1949 }
 0x2d9   :  { %v6438_v9 = vpop.permute.xlu1 %1946 }
 0x2da   :  { %v2174_v42 = vrot.slane %v6438_v9, %v6425_v60 }
 0x2dc   :  { %v6444_v58 = vpop.permute.xlu0 %1961 }
 0x2dd   :  { %v6452_v48 = vpop.permute.xlu1 %1958 }
 0x2e0   :  { %v2028_v21 = vpop.permute.xlu0 %2027 }
 0x2e1   :  { %v2025_v16 = vpop.permute.xlu1 %2024  ;;  %v2295_v28 = vrot.slane %v2028_v21, %v6420_v17 }
 0x2e2   :  { %v2291_v8 = vrot.slane %v2025_v16, %v6425_v60  ;;  %v2370_v16 = vsel %vm2369_vm1, %v2098_v53, %v2089_v40  ;;  %v2309_v53 = vrot.slane %v6396_v43, %v6425_v60  ;;  %v2318_v40 = vrot.slane %v6400_v11, %v6425_v60 }
 0x2e3   :  { %v2322_v43 = vrot.slane %v6398_v2, %v6420_v17  ;;  %v2160_v11 = vrot.slane %v6388_v26, %v6420_v17 }
 0x2e4   :  { %v6466_v50 = vpop.permute.xlu0 %2051  ;;  %v2296_v35 = vsel %vm2088_vm0, %v2295_v28, %v2291_v8  ;;  %v2138_v28 = vrot.slane %v6417_v12, %v6425_v60  ;;  %v2372_v8 = vsel %vm2371_vm3, %v2107_v22, %v2370_v16  ;;  %v2125_v12 = vsel %vm2088_vm0, %v2124_v4, %v2120_v38 }
 0x2e5   :  { %v6471_v14 = vpop.permute.xlu1 %2048  ;;  %v2396_v51 = vsel %vm2381_vm7, %v2296_v35, %v2395_v24  ;;  %v2374_v32 = vsel %vm2373_vm2, %v2116_v1, %v2372_v8  ;;  %v2142_v35 = vrot.slane %v6415_v37, %v6420_v17  ;;  %v2304_v22 = vrot.slane %v6372_v0, %v6420_v17 }
 0x2e6   :  { %v2415_v49 = vsel %vm2408_vm8, %v2396_v51, -inf  ;;  %v2376_v5 = vsel %vm2375_vm4, %v2125_v12, %v2374_v32  ;;  %v2327_v23 = vrot.slane %v6471_v14, %v6425_v60  ;;  %v2165_v38 = vrot.slane %v6428_v19, %v6425_v60 }
 0x2e7   :  { %2416 = vmax.xlane.f32.xlu0 %v2415_v49  ;;  %v2143_v51 = vsel %vm2088_vm0, %v2142_v35, %v2138_v28  ;;  %v2378_v52 = vsel %vm2377_vm5, %v2134_v15, %v2376_v5  ;;  %v2305_v16 = vsel %vm2088_vm0, %v2304_v22, %v2300_v27  ;;  %v2314_v28 = vsel %vm2088_vm0, %v2313_v6, %v2309_v53 }
 0x2e8   :  { %v6479_v55 = vpop.permute.xlu0 %2063  ;;  %v2380_v37 = vsel %vm2379_vm6, %v2143_v51, %v2378_v52  ;;  %v2331_v14 = vrot.slane %v6466_v50, %v6420_v17  ;;  %v2156_v8 = vrot.slane %v6392_v10, %v6425_v60  ;;  %v2323_v2 = vsel %vm2088_vm0, %v2322_v43, %v2318_v40 }
 0x2e9   :  { %v6489_v21 = vpop.permute.xlu1 %2060  ;;  %v2336_v19 = vrot.slane %v6404_v13, %v6425_v60  ;;  %v2178_v4 = vrot.slane %v6432_v41, %v6420_v17  ;;  %v2397_v10 = vsel %vm2369_vm1, %v2314_v28, %v2305_v16  ;;  %v2340_v35 = vrot.slane %v6402_v34, %v6420_v17 }
 0x2ea   :  { %v2332_v9 = vsel %vm2088_vm0, %v2331_v14, %v2327_v23  ;;  %v2345_v50 = vrot.slane %v6489_v21, %v6425_v60  ;;  %v2170_v13 = vsel %vm2088_vm0, %v2169_v59, %v2165_v38  ;;  %v2398_v41 = vsel %vm2371_vm3, %v2323_v2, %v2397_v10 }
 0x2eb   :  { %v2179_v15 = vsel %vm2088_vm0, %v2178_v4, %v2174_v42  ;;  %v2349_v21 = vrot.slane %v6479_v55, %v6420_v17  ;;  %v2161_v51 = vsel %vm2088_vm0, %v2160_v11, %v2156_v8  ;;  %v2399_v34 = vsel %vm2373_vm2, %v2332_v9, %v2398_v41 }
 0x2ec   :  { %v6497_v29 = vpop.permute.xlu0 %2069  ;;  %v2196_v22 = vrot.slane %v6444_v58, %v6420_v17 }
 0x2ed   :  { %v6508_v7 = vpop.permute.xlu1 %2066  ;;  %v2350_v5 = vsel %vm2088_vm0, %v2349_v21, %v2345_v50 }
 0x2ee   :  { %v2354_v47 = vrot.slane %v6508_v7, %v6425_v60 }
 0x2f0   :  { %v1932_v24 = vpop.permute.xlu0 %1931 }
 0x2f1   :  { %v1929_v63 = vpop.permute.xlu1 %1928  ;;  %v2151_v49 = vrot.slane %v1932_v24, %v6420_v17 }
 0x2f2   :  { %v2147_v44 = vrot.slane %v1929_v63, %v6425_v60  ;;  %v2341_v63 = vsel %vm2088_vm0, %v2340_v35, %v2336_v19  ;;  %v7812_v35 = vld [vmem:[#allocation14_spill] sm:$0xff] }
 0x2f4   :  { %v1956_v54 = vpop.permute.xlu0 %1955  ;;  %v2152_v20 = vsel %vm2088_vm0, %v2151_v49, %v2147_v44  ;;  %v2358_v49 = vrot.slane %v6497_v29, %v6420_v17  ;;  %v2383_v44 = vsel %vm2369_vm1, %v2170_v13, %v2161_v51 }
 0x2f5   :  { %v1953_v39 = vpop.permute.xlu1 %1952  ;;  %v2382_v30 = vsel %vm2381_vm7, %v2152_v20, %v2380_v37  ;;  %v2187_v12 = vrot.slane %v1956_v54, %v6420_v17  ;;  %v2384_v54 = vsel %vm2371_vm3, %v2179_v15, %v2383_v44  ;;  %v2192_v20 = vrot.slane %v6452_v48, %v6425_v60  ;;  %v7813_v15 = vld [vmem:[#allocation15_spill] sm:$0xff] }
 0x2f6   :  { %v2409_v56 = vsel %vm2408_vm8, %v2382_v30, -inf  ;;  %v2183_v32 = vrot.slane %v1953_v39, %v6425_v60  ;;  %v2359_v37 = vsel %vm2088_vm0, %v2358_v49, %v2354_v47 }
 0x2f7   :  { %2410 = vmax.xlane.f32.xlu1 %v2409_v56  ;;  %v2400_v56 = vsel %vm2375_vm4, %v2341_v63, %v2399_v34  ;;  %v2197_v38 = vsel %vm2088_vm0, %v2196_v22, %v2192_v20  ;;  %v7819_v22 = vld [vmem:[#allocation28_spill] sm:$0xff] }
 0x2f8   :  { %v1968_v1 = vpop.permute.xlu0 %1967  ;;  %v2188_v52 = vsel %vm2088_vm0, %v2187_v12, %v2183_v32  ;;  %v2401_v23 = vsel %vm2377_vm5, %v2350_v5, %v2400_v56  ;;  %v7811_v32 = vld [vmem:[#allocation13_spill] sm:$0xff] }
 0x2f9   :  { %v1965_v0 = vpop.permute.xlu1 %1964  ;;  %v2205_v29 = vrot.slane %v1968_v1, %v6420_v17  ;;  %v2385_v40 = vsel %vm2373_vm2, %v2188_v52, %v2384_v54  ;;  %v2402_v43 = vsel %vm2379_vm6, %v2359_v37, %v2401_v23  ;;  %v7815_v52 = vld [vmem:[#allocation17_spill] sm:$0xff]  ;;  %v7816_v37 = vld [vmem:[#allocation18_spill] sm:$0xff] }
 0x2fa   :  { %v2201_v55 = vrot.slane %v1965_v0, %v6425_v60  ;;  %v2386_v8 = vsel %vm2375_vm4, %v2197_v38, %v2385_v40 }
 0x2fc   :  { %v1974_v26 = vpop.permute.xlu0 %1973  ;;  %v2206_v16 = vsel %vm2088_vm0, %v2205_v29, %v2201_v55 }
 0x2fd   :  { %v1971_v24 = vpop.permute.xlu1 %1970  ;;  %v2214_v48 = vrot.slane %v1974_v26, %v6420_v17  ;;  %v2387_v2 = vsel %vm2377_vm5, %v2206_v16, %v2386_v8  ;;  %v7820_v16 = vld [vmem:[#allocation60_spill] sm:$0xff] }
 0x2fe   :  { %v2210_v27 = vrot.slane %v1971_v24, %v6425_v60 }
 0x300   :  { %v2076_v7 = vpop.permute.xlu0 %2075  ;;  %v2215_v0 = vsel %vm2088_vm0, %v2214_v48, %v2210_v27 }
 0x301   :  { %v2073_v39 = vpop.permute.xlu1 %2072  ;;  %v2367_v30 = vrot.slane %v2076_v7, %v6420_v17  ;;  %v2388_v59 = vsel %vm2379_vm6, %v2215_v0, %v2387_v2  ;;  %v7814_v7 = vld [vmem:[#allocation16_spill] sm:$0xff]  ;;  %v7821_v0 = vld [vmem:[#allocation65_spill] sm:$0xff] }
 0x302   :  { %v2363_v53 = vrot.slane %v2073_v39, %v6425_v60 }
 0x304   :  { %v1980_v6 = vpop.permute.xlu0 %1979  ;;  %v2368_v1 = vsel %vm2088_vm0, %v2367_v30, %v2363_v53  ;;  %v7817_v30 = vld [vmem:[#allocation37_spill] sm:$0xff] }
 0x305   :  { %v1977_v11 = vpop.permute.xlu1 %1976  ;;  %v2403_v58 = vsel %vm2381_vm7, %v2368_v1, %v2402_v43  ;;  %v2223_v28 = vrot.slane %v1980_v6, %v6420_v17 }
 0x306   :  { %v2219_v42 = vrot.slane %v1977_v11, %v6425_v60  ;;  %v2418_v14 = vsel %vm2408_vm8, %v2403_v58, -inf }
 0x307   :  { %2419 = vmax.xlane.f32.xlu0 %v2418_v14  ;;  %v7822_v14 = vld [vmem:[#allocation20_spill] sm:$0xff] }
 0x308   :  { %v2224_v19 = vsel %vm2088_vm0, %v2223_v28, %v2219_v42 }
 0x309   :  { %v2389_v26 = vsel %vm2381_vm7, %v2224_v19, %v2388_v59  ;;  %v7823_v59 = vld [vmem:[#allocation41_spill] sm:$0xff] }
 0x30a   :  { %v2412_v4 = vsel %vm2408_vm8, %v2389_v26, -inf }
 0x30b   :  { %2413 = vmax.xlane.f32.xlu0 %v2412_v4 }
 0x374   :  { %v6643_v6 = vpop.xlane.xlu0 %2416 }
 0x375   :  { %v2492_v38 = vrot.slane %v6643_v6, %v5313_v36  ;;  %v2496_v19 = vrot.slane %v6643_v6, %v7811_v32 }
 0x377   :  { %v2618_v26 = vsub.f32 %v7823_v59, %v2492_v38 }
 0x384   :  { %v2411_v9 = vpop.xlane.xlu1 %2410 }
 0x385   :  { %v2428_v50 = vrot.slane %v2411_v9, %v5313_v36  ;;  %v2432_v10 = vrot.slane %v2411_v9, %v7811_v32  ;;  %v2436_v13 = vrot.slane %v2411_v9, %v7812_v35  ;;  %v2440_v21 = vrot.slane %v2411_v9, %v7813_v15 }
 0x386   :  { %v2444_v44 = vrot.slane %v2411_v9, %v7814_v7  ;;  %v2448_v55 = vrot.slane %v2411_v9, %v7815_v52  ;;  %v2452_v27 = vrot.slane %v2411_v9, %v7816_v37 }
 0x387   :  { %v2585_v47 = vsub.f32 %v6112_v25, %v2428_v50  ;;  %v2586_v24 = vsub.f32 %v6115_v31, %v2428_v50  ;;  %v2587_v41 = vsub.f32 %v6162_v57, %v2432_v10  ;;  %v2590_v12 = vsub.f32 %v6158_v18, %v2436_v13 }
 0x388   :  { %v2588_v34 = vsub.f32 %v6150_v45, %v2432_v10  ;;  %v2592_v5 = vsub.f32 %v6238_v46, %v2440_v21  ;;  %v2589_v31 = vsub.f32 %v6170_v3, %v2436_v13  ;;  %v2594_v18 = vsub.f32 %v6166_v61, %v2444_v44  ;;  %v7824_v10 = vld [vmem:[#allocation67_spill] sm:$0xff] }
 0x389   :  { %v2649_v51 = vmul.f32 1.442695, %v2585_v47  ;;  %v2651_v63 = vmul.f32 1.442695, %v2586_v24  ;;  %v2653_v49 = vmul.f32 1.442695, %v2587_v41  ;;  %v2591_v45 = vsub.f32 %v6242_v33, %v2440_v21 }
 0x38a   :  { %v2659_v25 = vmul.f32 1.442695, %v2590_v12  ;;  %v2655_v57 = vmul.f32 1.442695, %v2588_v34  ;;  %v2663_v54 = vmul.f32 1.442695, %v2592_v5  ;;  %v2596_v46 = vsub.f32 %v6246_v62, %v2448_v55 }
 0x38b   :  { %4923 = vpow2.f32 %v2649_v51  ;;  %v2657_v20 = vmul.f32 1.442695, %v2589_v31  ;;  %v2667_v39 = vmul.f32 1.442695, %v2594_v18  ;;  %v2593_v61 = vsub.f32 %v7817_v30, %v2444_v44  ;;  %v7818_v33 = vld [vmem:[#allocation19_spill] sm:$0xff]  ;;  %v7825_v41 = vld [vmem:[#allocation38_spill] sm:$0xff] }
 0x38c   :  { %4925 = vpow2.f32 %v2651_v63  ;;  %v2661_v53 = vmul.f32 1.442695, %v2591_v45  ;;  %v2456_v56 = vrot.slane %v2411_v9, %v7818_v33  ;;  %v2598_v40 = vsub.f32 %v7819_v22, %v2452_v27  ;;  %v7826_v34 = vld [vmem:[#allocation43_spill] sm:$0xff] }
 0x38d   :  { %4927 = vpow2.f32 %v2653_v49  ;;  %v2671_v62 = vmul.f32 1.442695, %v2596_v46  ;;  %v2595_v1 = vsub.f32 %v7820_v16, %v2448_v55  ;;  %v2665_v43 = vmul.f32 1.442695, %v2593_v61  ;;  %v7829_v46 = vld [vmem:[#allocation51_spill] sm:$0xff] }
 0x38e   :  { %4929 = vpow2.f32 %v2659_v25  ;;  %v2600_v11 = vsub.f32 %v7821_v0, %v2456_v56  ;;  %v2675_v58 = vmul.f32 1.442695, %v2598_v40  ;;  %v2597_v8 = vsub.f32 %v7822_v14, %v2452_v27  ;;  %v7827_v25 = vld [vmem:[#allocation46_spill] sm:$0xff]  ;;  %v7831_v16 = vld [vmem:[#allocation63_spill] sm:$0xff] }
 0x38f   :  { %4931 = vpow2.f32 %v2655_v57  ;;  %v2669_v2 = vmul.f32 1.442695, %v2595_v1  ;;  %v2599_v13 = vsub.f32 %v7824_v10, %v2456_v56  ;;  %v2500_v24 = vrot.slane %v6643_v6, %v7812_v35  ;;  %v7830_v56 = vld [vmem:[#allocation52_spill] sm:$0xff]  ;;  %v7834_v10 = vld [vmem:[#allocation23_spill] sm:$0xff] }
 0x390   :  { %4933 = vpow2.f32 %v2663_v54  ;;  %v2679_v4 = vmul.f32 1.442695, %v2600_v11  ;;  %v2673_v47 = vmul.f32 1.442695, %v2597_v8  ;;  %v2620_v21 = vsub.f32 %v7825_v41, %v2496_v19  ;;  %v7828_v54 = vld [vmem:[#allocation64_spill] sm:$0xff]  ;;  %v7832_v11 = vld [vmem:[#allocation55_spill] sm:$0xff] }
 0x391   :  { %4935 = vpow2.f32 %v2657_v20  ;;  %v2715_v12 = vmul.f32 1.442695, %v2618_v26  ;;  %v2617_v49 = vsub.f32 %v7826_v34, %v2492_v38  ;;  %v2677_v44 = vmul.f32 1.442695, %v2599_v13  ;;  %v7835_v41 = vld [vmem:[#allocation31_spill] sm:$0xff] }
 0x392   :  { %4937 = vpow2.f32 %v2667_v39  ;;  %v2504_v5 = vrot.slane %v6643_v6, %v7813_v15  ;;  %v2622_v31 = vsub.f32 %v7827_v25, %v2500_v24  ;;  %v2719_v57 = vmul.f32 1.442695, %v2620_v21 }
 0x393   :  { %4939 = vpow2.f32 %v2661_v53  ;;  %v2619_v45 = vsub.f32 %v7828_v54, %v2496_v19  ;;  %v2713_v20 = vmul.f32 1.442695, %v2617_v49  ;;  %v2508_v27 = vrot.slane %v6643_v6, %v7814_v7 }
 0x394   :  { %4941 = vpow2.f32 %v2671_v62  ;;  %v2624_v39 = vsub.f32 %v7829_v46, %v2504_v5  ;;  %v2723_v30 = vmul.f32 1.442695, %v2622_v31  ;;  %v2621_v22 = vsub.f32 %v7830_v56, %v2500_v24  ;;  %v6725_v49 = vpop.xlane.xlu0 %2419  ;;  %v7838_v46 = vld [vmem:[#allocation42_spill] sm:$0xff] }
 0x395   :  { %v6632_v29 = vpop.eup %4923  ;;  %4943 = vpow2.f32 %v2665_v43  ;;  %v2717_v40 = vmul.f32 1.442695, %v2619_v45  ;;  %v2512_v62 = vrot.slane %v6643_v6, %v7815_v52  ;;  %v2626_v1 = vsub.f32 %v7831_v16, %v2508_v27 }
 0x396   :  { %v6634_v3 = vpop.eup %4925  ;;  %2842 = vperm.xlu1 %4906, %v6632_v29   ;;  %4945 = vpow2.f32 %v2675_v58  ;;  %v2727_v43 = vmul.f32 1.442695, %v2624_v39  ;;  %v2623_v58 = vsub.f32 %v7832_v11, %v2504_v5  ;;  %v2721_v14 = vmul.f32 1.442695, %v2621_v22  ;;  %v7836_v5 = vld [vmem:[#allocation29_spill] sm:$0xff] }
 0x397   :  { %2845 = vperm.xlu0 %4905, %v6634_v3   ;;  %v6641_v48 = vpop.eup %4927  ;;  %4947 = vpow2.f32 %v2669_v2  ;;  %v2516_v8 = vrot.slane %v6643_v6, %v7816_v37  ;;  %v7833_v2 = vld [vmem:[#allocation66_spill] sm:$0xff]  ;;  %v2731_v59 = vmul.f32 1.442695, %v2626_v1  ;;  %v2625_v13 = vsub.f32 %v7834_v10, %v2508_v27 }
 0x398   :  { %v6645_v23 = vpop.eup %4929  ;;  %4949 = vpow2.f32 %v2679_v4  ;;  %v2628_v19 = vsub.f32 %v7833_v2, %v2512_v62  ;;  %v2520_v24 = vrot.slane %v6643_v6, %v7818_v33  ;;  %v2627_v25 = vsub.f32 %v7836_v5, %v2512_v62 }
 0x399   :  { %v6653_v28 = vpop.eup %4931  ;;  %4951 = vpow2.f32 %v2673_v47  ;;  %v2725_v47 = vmul.f32 1.442695, %v2623_v58  ;;  %v2630_v21 = vsub.f32 %v7835_v41, %v2516_v8  ;;  %v2729_v31 = vmul.f32 1.442695, %v2625_v13 }
 0x39a   :  { %2848 = vperm.xlu1 %4906, %v6641_v48   ;;  %v6655_v42 = vpop.eup %4933  ;;  %4953 = vpow2.f32 %v2715_v12  ;;  %v2735_v12 = vmul.f32 1.442695, %v2628_v19  ;;  %v2524_v45 = vrot.slane %v6725_v49, %v5313_v36  ;;  %v2629_v39 = vsub.f32 %v7838_v46, %v2516_v8  ;;  %v7841_v8 = vld [vmem:[#allocation45_spill] sm:$0xff] }
 0x39b   :  { %2857 = vperm.xlu0 %4905, %v6645_v23   ;;  %v6663_v9 = vpop.eup %4935  ;;  %4955 = vpow2.f32 %v2677_v44  ;;  %v2739_v54 = vmul.f32 1.442695, %v2630_v21  ;;  %v2528_v22 = vrot.slane %v6725_v49, %v7811_v32  ;;  %v2536_v41 = vrot.slane %v6725_v49, %v7813_v15  ;;  %v7843_v21 = vld [vmem:[#allocation54_spill] sm:$0xff]  ;;  %v7845_v46 = vld [vmem:[#allocation57_spill] sm:$0xff] }
 0x39c   :  { %v6665_v50 = vpop.eup %4937  ;;  %4957 = vpow2.f32 %v2719_v57  ;;  %v7837_v57 = vld [vmem:[#allocation39_spill] sm:$0xff]  ;;  %v2737_v58 = vmul.f32 1.442695, %v2629_v39 }
 0x39d   :  { %v6673_v51 = vpop.eup %4939  ;;  %4959 = vpow2.f32 %v2713_v20  ;;  %v2632_v6 = vsub.f32 %v7837_v57, %v2520_v24  ;;  %v2636_v2 = vsub.f32 %v7841_v8, %v2528_v22  ;;  %v7844_v57 = vld [vmem:[#allocation50_spill] sm:$0xff]  ;;  %v2640_v39 = vsub.f32 %v7845_v46, %v2536_v41  ;;  %v7855_v46 = vld [vmem:[#allocation59_spill] sm:$0xff] }
 0x39e   :  { %2851 = vperm.xlu1 %4906, %v6653_v28   ;;  %v6675_v63 = vpop.eup %4941  ;;  %4961 = vpow2.f32 %v2723_v30  ;;  %v2733_v30 = vmul.f32 1.442695, %v2627_v25 }
 0x39f   :  { %2863 = vperm.xlu0 %4905, %v6655_v42   ;;  %v6683_v55 = vpop.eup %4943  ;;  %4963 = vpow2.f32 %v2717_v40  ;;  %v2743_v56 = vmul.f32 1.442695, %v2632_v6  ;;  %v7839_v40 = vld [vmem:[#allocation56_spill] sm:$0xff]  ;;  %v2751_v5 = vmul.f32 1.442695, %v2636_v2  ;;  %v2635_v6 = vsub.f32 %v7844_v57, %v2528_v22 }
 0x3a0   :  { %v6685_v18 = vpop.eup %4945  ;;  %4965 = vpow2.f32 %v2727_v43  ;;  %v2634_v62 = vsub.f32 %v7839_v40, %v2524_v45  ;;  %v7840_v43 = vld [vmem:[#allocation40_spill] sm:$0xff]  ;;  %v2759_v2 = vmul.f32 1.442695, %v2640_v39 }
 0x3a1   :  { %v6693_v61 = vpop.eup %4947  ;;  %4967 = vpow2.f32 %v2721_v14  ;;  %v2631_v11 = vsub.f32 %v7840_v43, %v2520_v24  ;;  %v2532_v14 = vrot.slane %v6725_v49, %v7812_v35  ;;  %v2749_v22 = vmul.f32 1.442695, %v2635_v6 }
 0x3a2   :  { %2854 = vperm.xlu1 %4906, %v6663_v9   ;;  %v6695_v53 = vpop.eup %4949  ;;  %4969 = vpow2.f32 %v2731_v59  ;;  %v2747_v19 = vmul.f32 1.442695, %v2634_v62  ;;  %v7847_v62 = vld [vmem:[#allocation49_spill] sm:$0xff] }
 0x3a3   :  { %2869 = vperm.xlu0 %4905, %v6665_v50   ;;  %v6703_v38 = vpop.eup %4951  ;;  %4971 = vpow2.f32 %v2725_v47  ;;  %v2741_v13 = vmul.f32 1.442695, %v2631_v11  ;;  %v7842_v47 = vld [vmem:[#allocation25_spill] sm:$0xff]  ;;  %v2637_v43 = vsub.f32 %v7847_v62, %v2532_v14  ;;  %v2544_v11 = vrot.slane %v6725_v49, %v7815_v52 }
 0x3a4   :  { %v6705_v0 = vpop.eup %4953  ;;  %4973 = vpow2.f32 %v2735_v12  ;;  %v2633_v24 = vsub.f32 %v7842_v47, %v2524_v45  ;;  %v2638_v12 = vsub.f32 %v7843_v21, %v2532_v14  ;;  %v2540_v45 = vrot.slane %v6725_v49, %v7814_v7  ;;  %v7851_v47 = vld [vmem:[#allocation58_spill] sm:$0xff]  ;;  %v7856_v62 = vld [vmem:[#allocation69_spill] sm:$0xff] }
 0x3a5   :  { %v6713_v26 = vpop.eup %4955  ;;  %4975 = vpow2.f32 %v2729_v31  ;;  %v2753_v14 = vmul.f32 1.442695, %v2637_v43  ;;  %v2548_v21 = vrot.slane %v6725_v49, %v7816_v37 }
 0x3a6   :  { %2860 = vperm.xlu1 %4906, %v6673_v51   ;;  %v6715_v4 = vpop.eup %4957  ;;  %4977 = vpow2.f32 %v2739_v54  ;;  %v2745_v54 = vmul.f32 1.442695, %v2633_v24  ;;  %v2639_v24 = vsub.f32 %v7851_v47, %v2536_v41  ;;  %v2641_v39 = vsub.f32 %v7855_v46, %v2540_v45 }
 0x3a7   :  { %2875 = vperm.xlu0 %4905, %v6675_v63   ;;  %v6723_v34 = vpop.eup %4959  ;;  %4979 = vpow2.f32 %v2733_v30  ;;  %v2755_v30 = vmul.f32 1.442695, %v2638_v12  ;;  %v7852_v12 = vld [vmem:[#allocation61_spill] sm:$0xff]  ;;  %v2646_v43 = vsub.f32 %v7856_v62, %v2548_v21  ;;  %v7863_v62 = vld [vmem:[#allocation70_spill] sm:$0xff] }
 0x3a8   :  { %v6727_v44 = vpop.eup %4961  ;;  %4981 = vpow2.f32 %v2743_v56  ;;  %v2757_v41 = vmul.f32 1.442695, %v2639_v24  ;;  %v2761_v24 = vmul.f32 1.442695, %v2641_v39 }
 0x3a9   :  { %v6735_v20 = vpop.eup %4963  ;;  %4983 = vpow2.f32 %v2737_v58  ;;  %v7848_v58 = vld [vmem:[#allocation53_spill] sm:$0xff] }
 0x3aa   :  { %2866 = vperm.xlu1 %4906, %v6683_v55   ;;  %v6737_v27 = vpop.eup %4965  ;;  %4985 = vpow2.f32 %v2747_v19  ;;  %v2642_v8 = vsub.f32 %v7848_v58, %v2540_v45  ;;  %v7859_v45 = vld [vmem:[#allocation62_spill] sm:$0xff] }
 0x3ab   :  { %2881 = vperm.xlu0 %4905, %v6685_v18   ;;  %v6745_v16 = vpop.eup %4967  ;;  %4987 = vpow2.f32 %v2741_v13  ;;  %v2643_v47 = vsub.f32 %v7859_v45, %v2544_v11 }
 0x3ac   :  { %v6747_v1 = vpop.eup %4969  ;;  %4989 = vpow2.f32 %v2751_v5  ;;  %v2644_v5 = vsub.f32 %v7852_v12, %v2544_v11  ;;  %v2763_v57 = vmul.f32 1.442695, %v2642_v8  ;;  %v6807_v8 = vpop.xlane.xlu0 %2413  ;;  %v2771_v12 = vmul.f32 1.442695, %v2646_v43  ;;  %v7864_v43 = vld [vmem:[#allocation35_spill] sm:$0xff] }
 0x3ad   :  { %v6755_v59 = vpop.eup %4971  ;;  %4991 = vpow2.f32 %v2745_v54  ;;  %v2765_v11 = vmul.f32 1.442695, %v2643_v47  ;;  %v2468_v47 = vrot.slane %v6807_v8, %v7812_v35 }
 0x3ae   :  { %2872 = vperm.xlu1 %4906, %v6693_v61   ;;  %v6757_v10 = vpop.eup %4973  ;;  %4993 = vpow2.f32 %v2755_v30  ;;  %v2552_v30 = vrot.slane %v6725_v49, %v7818_v33 }
 0x3af   :  { %2887 = vperm.xlu0 %4905, %v6695_v53   ;;  %v6765_v25 = vpop.eup %4975  ;;  %4995 = vpow2.f32 %v2749_v22  ;;  %v2767_v22 = vmul.f32 1.442695, %v2644_v5  ;;  %v2460_v5 = vrot.slane %v6807_v8, %v5313_v36 }
 0x3b0   :  { %v6767_v31 = vpop.eup %4977  ;;  %4997 = vpow2.f32 %v2759_v2 }
 0x3b1   :  { %v6775_v56 = vpop.eup %4979  ;;  %4999 = vpow2.f32 %v2753_v14  ;;  %v7860_v14 = vld [vmem:[#allocation72_spill] sm:$0xff] }
 0x3b2   :  { %2878 = vperm.xlu1 %4906, %v6703_v38   ;;  %v6777_v40 = vpop.eup %4981  ;;  %5001 = vpow2.f32 %v2763_v57  ;;  %v2648_v49 = vsub.f32 %v7860_v14, %v2552_v30 }
 0x3b3   :  { %2941 = vperm.xlu0 %4905, %v6705_v0   ;;  %7846 = vst [vmem:[#allocation12_spill] sm:$0xff] %v6777_v40  ;;  %v6785_v19 = vpop.eup %4983  ;;  %5003 = vpow2.f32 %v2757_v41  ;;  %v2464_v41 = vrot.slane %v6807_v8, %v7811_v32 }
 0x3b4   :  { %7849 = vst [vmem:[#allocation13_spill] sm:$0xff] %v6785_v19  ;;  %v6787_v13 = vpop.eup %4985  ;;  %5005 = vpow2.f32 %v2767_v22  ;;  %v2775_v39 = vmul.f32 1.442695, %v2648_v49  ;;  %v2602_v22 = vsub.f32 %v7864_v43, %v2460_v5 }
 0x3b5   :  { %7850 = vst [vmem:[#allocation14_spill] sm:$0xff] %v6787_v13  ;;  %v6795_v6 = vpop.eup %4987  ;;  %5007 = vpow2.f32 %v2761_v24  ;;  %v7868_v24 = vld [vmem:[#allocation27_spill] sm:$0xff] }
 0x3b6   :  { %2884 = vperm.xlu1 %4906, %v6713_v26   ;;  %7853 = vst [vmem:[#allocation15_spill] sm:$0xff] %v6795_v6  ;;  %v6797_v54 = vpop.eup %4989  ;;  %5009 = vpow2.f32 %v2771_v12  ;;  %v2604_v49 = vsub.f32 %v7868_v24, %v2464_v41  ;;  %v2683_v12 = vmul.f32 1.442695, %v2602_v22 }
 0x3b7   :  { %2947 = vperm.xlu0 %4905, %v6715_v4   ;;  %7854 = vst [vmem:[#allocation16_spill] sm:$0xff] %v6797_v54  ;;  %v6805_v58 = vpop.eup %4991  ;;  %5011 = vpow2.f32 %v2765_v11  ;;  %v7872_v11 = vld [vmem:[#allocation22_spill] sm:$0xff] }
 0x3b8   :  { %7857 = vst [vmem:[#allocation17_spill] sm:$0xff] %v6805_v58  ;;  %v6809_v2 = vpop.eup %4993  ;;  %5013 = vpow2.f32 %v2775_v39  ;;  %v2606_v39 = vsub.f32 %v7872_v11, %v2468_v47  ;;  %v2687_v24 = vmul.f32 1.442695, %v2604_v49 }
 0x3b9   :  { %7858 = vst [vmem:[#allocation18_spill] sm:$0xff] %v6809_v2  ;;  %v6817_v57 = vpop.eup %4995 }
 0x3ba   :  { %2938 = vperm.xlu1 %4906, %v6723_v34   ;;  %7861 = vst [vmem:[#allocation37_spill] sm:$0xff] %v6817_v57  ;;  %v6819_v46 = vpop.eup %4997 }
 0x3bb   :  { %2953 = vperm.xlu0 %4905, %v6727_v44   ;;  %7862 = vst [vmem:[#allocation19_spill] sm:$0xff] %v6819_v46  ;;  %v6827_v45 = vpop.eup %4999 }
 0x3bc   :  { %7865 = vst [vmem:[#allocation28_spill] sm:$0xff] %v6827_v45  ;;  %v6829_v14 = vpop.eup %5001 }
 0x3bd   :  { %7866 = vst [vmem:[#allocation60_spill] sm:$0xff] %v6829_v14 }
 0x3be   :  { %2944 = vperm.xlu1 %4906, %v6735_v20  }
 0x3bf   :  { %2959 = vperm.xlu0 %4905, %v6737_v27  }
 0x3c2   :  { %2950 = vperm.xlu1 %4906, %v6745_v16  }
 0x3c3   :  { %2965 = vperm.xlu0 %4905, %v6747_v1  }
 0x3c6   :  { %2956 = vperm.xlu1 %4906, %v6755_v59  }
 0x3c7   :  { %2971 = vperm.xlu0 %4905, %v6757_v10  }
 0x3ca   :  { %2962 = vperm.xlu1 %4906, %v6765_v25  }
 0x3cb   :  { %2977 = vperm.xlu0 %4905, %v6767_v31  }
 0x3ce   :  { %2968 = vperm.xlu1 %4906, %v6775_v56  }
 0x3cf   :  { %2983 = vperm.xlu0 %4905, %v6777_v40  }
 0x3d2   :  { %2974 = vperm.xlu1 %4906, %v6785_v19  }
 0x3d3   :  { %2989 = vperm.xlu0 %4905, %v6787_v13  }
 0x3d6   :  { %2980 = vperm.xlu1 %4906, %v6795_v6  }
 0x3d7   :  { %2995 = vperm.xlu0 %4905, %v6797_v54  }
 0x3da   :  { %2986 = vperm.xlu1 %4906, %v6805_v58   ;;  %v2645_v58 = vsub.f32 %v7863_v62, %v2548_v21  ;;  %v6837_v62 = vpop.eup %5003 }
 0x3db   :  { %3001 = vperm.xlu0 %4905, %v6809_v2   ;;  %7869 = vst [vmem:[#allocation65_spill] sm:$0xff] %v6837_v62  ;;  %v6839_v43 = vpop.eup %5005 }
 0x3dc   :  { %v2769_v21 = vmul.f32 1.442695, %v2645_v58  ;;  %7870 = vst [vmem:[#allocation20_spill] sm:$0xff] %v6839_v43  ;;  %v2472_v58 = vrot.slane %v6807_v8, %v7813_v15  ;;  %v6847_v22 = vpop.eup %5007 }
 0x3dd   :  { %7873 = vst [vmem:[#allocation41_spill] sm:$0xff] %v6847_v22 }
 0x3de   :  { %2992 = vperm.xlu1 %4906, %v6817_v57   ;;  %v7867_v57 = vld [vmem:[#allocation73_spill] sm:$0xff]  ;;  %5015 = vpow2.f32 %v2769_v21 }
 0x3df   :  { %3007 = vperm.xlu0 %4905, %v6819_v46   ;;  %v2647_v2 = vsub.f32 %v7867_v57, %v2552_v30  ;;  %v7871_v30 = vld [vmem:[#allocation44_spill] sm:$0xff]  ;;  %5017 = vpow2.f32 %v2683_v12  ;;  %v7875_v21 = vld [vmem:[#allocation33_spill] sm:$0xff]  ;;  %v2691_v12 = vmul.f32 1.442695, %v2606_v39 }
 0x3e0   :  { %v2601_v57 = vsub.f32 %v7871_v30, %v2460_v5  ;;  %v2476_v5 = vrot.slane %v6807_v8, %v7814_v7  ;;  %v7876_v30 = vld [vmem:[#allocation71_spill] sm:$0xff] }
 0x3e2   :  { %2998 = vperm.xlu1 %4906, %v6827_v45   ;;  %v2773_v45 = vmul.f32 1.442695, %v2647_v2  ;;  %v2603_v2 = vsub.f32 %v7875_v21, %v2464_v41  ;;  %v7880_v21 = vld [vmem:[#allocation34_spill] sm:$0xff] }
 0x3e3   :  { %3013 = vperm.xlu0 %4905, %v6829_v14   ;;  %v6849_v14 = vpop.eup %5009 }
 0x3e4   :  { %7874 = vst [vmem:[#allocation67_spill] sm:$0xff] %v6849_v14  ;;  %5019 = vpow2.f32 %v2773_v45  ;;  %v6857_v49 = vpop.eup %5011  ;;  %v2685_v41 = vmul.f32 1.442695, %v2603_v2 }
 0x3e5   :  { %5021 = vpow2.f32 %v2687_v24  ;;  %7877 = vst [vmem:[#allocation38_spill] sm:$0xff] %v6857_v49  ;;  %v6859_v11 = vpop.eup %5013 }
 0x3e6   :  { %3004 = vperm.xlu1 %4906, %v6837_v62   ;;  %v2681_v62 = vmul.f32 1.442695, %v2601_v57  ;;  %7878 = vst [vmem:[#allocation43_spill] sm:$0xff] %v6859_v11  ;;  %v2480_v57 = vrot.slane %v6807_v8, %v7815_v52 }
 0x3e7   :  { %3019 = vperm.xlu0 %4905, %v6839_v43   ;;  %v2608_v43 = vsub.f32 %v7876_v30, %v2472_v58 }
 0x3e8   :  { %5023 = vpow2.f32 %v2681_v62  ;;  %v6867_v39 = vpop.eup %5015  ;;  %v2484_v62 = vrot.slane %v6807_v8, %v7816_v37 }
 0x3e9   :  { %5025 = vpow2.f32 %v2691_v12  ;;  %v2695_v24 = vmul.f32 1.442695, %v2608_v43  ;;  %7881 = vst [vmem:[#allocation46_spill] sm:$0xff] %v6867_v39  ;;  %v6869_v30 = vpop.eup %5017 }
 0x3ea   :  { %3010 = vperm.xlu1 %4906, %v6847_v22   ;;  %v7879_v22 = vld [vmem:[#allocation47_spill] sm:$0xff]  ;;  %7882 = vst [vmem:[#allocation64_spill] sm:$0xff] %v6869_v30  ;;  %5027 = vpow2.f32 %v2685_v41 }
 0x3eb   :  { %3025 = vperm.xlu0 %4905, %v6849_v14   ;;  %v2605_v45 = vsub.f32 %v7879_v22, %v2468_v47  ;;  %v2610_v14 = vsub.f32 %v7880_v21, %v2476_v5  ;;  %v7884_v22 = vld [vmem:[#allocation21_spill] sm:$0xff]  ;;  %5029 = vpow2.f32 %v2695_v24 }
 0x3ec   :  { %v2612_v2 = vsub.f32 %v7884_v22, %v2480_v57 }
 0x3ed   :  { %v2689_v47 = vmul.f32 1.442695, %v2605_v45  ;;  %v2699_v12 = vmul.f32 1.442695, %v2610_v14  ;;  %v7888_v45 = vld [vmem:[#allocation26_spill] sm:$0xff] }
 0x3ee   :  { %3016 = vperm.xlu1 %4906, %v6857_v49   ;;  %v7883_v49 = vld [vmem:[#allocation68_spill] sm:$0xff]  ;;  %v6877_v43 = vpop.eup %5019  ;;  %v2614_v41 = vsub.f32 %v7888_v45, %v2484_v62  ;;  %v2703_v24 = vmul.f32 1.442695, %v2612_v2  ;;  %v7895_v2 = vld [vmem:[#allocation30_spill] sm:$0xff] }
 0x3ef   :  { %3031 = vperm.xlu0 %4905, %v6859_v11   ;;  %v2607_v46 = vsub.f32 %v7883_v49, %v2472_v58  ;;  %7885 = vst [vmem:[#allocation51_spill] sm:$0xff] %v6877_v43  ;;  %v6879_v21 = vpop.eup %5021  ;;  %v7887_v11 = vld [vmem:[#allocation48_spill] sm:$0xff]  ;;  %5031 = vpow2.f32 %v2689_v47  ;;  %v2488_v49 = vrot.slane %v6807_v8, %v7818_v33  ;;  %v2613_v45 = vsub.f32 %v7895_v2, %v2484_v62 }
 0x3f0   :  { %7886 = vst [vmem:[#allocation52_spill] sm:$0xff] %v6879_v21  ;;  %5033 = vpow2.f32 %v2699_v12  ;;  %v2707_v8 = vmul.f32 1.442695, %v2614_v41 }
 0x3f1   :  { %v2693_v58 = vmul.f32 1.442695, %v2607_v46  ;;  %v7892_v46 = vld [vmem:[#allocation32_spill] sm:$0xff] }
 0x3f2   :  { %3022 = vperm.xlu1 %4906, %v6867_v39   ;;  %v2609_v39 = vsub.f32 %v7887_v11, %v2476_v5  ;;  %v6887_v14 = vpop.eup %5023  ;;  %v2616_v11 = vsub.f32 %v7892_v46, %v2488_v49 }
 0x3f3   :  { %2893 = vperm.xlu0 %4905, %v6869_v30   ;;  %7889 = vst [vmem:[#allocation63_spill] sm:$0xff] %v6887_v14  ;;  %v6889_v22 = vpop.eup %5025  ;;  %5035 = vpow2.f32 %v2693_v58  ;;  %v7898_v58 = vld [vmem:[#allocation36_spill] sm:$0xff] }
 0x3f4   :  { %7890 = vst [vmem:[#allocation55_spill] sm:$0xff] %v6889_v22  ;;  %v2697_v5 = vmul.f32 1.442695, %v2609_v39  ;;  %5037 = vpow2.f32 %v2703_v24  ;;  %v6895_v47 = vpop.eup %5027  ;;  %v2615_v41 = vsub.f32 %v7898_v58, %v2488_v49  ;;  %v2705_v24 = vmul.f32 1.442695, %v2613_v45 }
 0x3f5   :  { %7893 = vst [vmem:[#allocation66_spill] sm:$0xff] %v6895_v47  ;;  %v6897_v12 = vpop.eup %5029 }
 0x3f6   :  { %3028 = vperm.xlu1 %4906, %v6877_v43   ;;  %v7891_v43 = vld [vmem:[#allocation24_spill] sm:$0xff]  ;;  %7894 = vst [vmem:[#allocation23_spill] sm:$0xff] %v6897_v12  ;;  %5039 = vpow2.f32 %v2697_v5  ;;  %v2709_v5 = vmul.f32 1.442695, %v2615_v41 }
 0x3f7   :  { %2899 = vperm.xlu0 %4905, %v6879_v21   ;;  %v2611_v30 = vsub.f32 %v7891_v43, %v2480_v57  ;;  %5041 = vpow2.f32 %v2707_v8  ;;  %v2711_v57 = vmul.f32 1.442695, %v2616_v11 }
 0x3f9   :  { %v2701_v21 = vmul.f32 1.442695, %v2611_v30  ;;  %v6902_v39 = vpop.eup %5031 }
 0x3fa   :  { %2890 = vperm.xlu1 %4906, %v6887_v14   ;;  %7896 = vst [vmem:[#allocation31_spill] sm:$0xff] %v6902_v39  ;;  %v6904_v43 = vpop.eup %5033 }
 0x3fb   :  { %2905 = vperm.xlu0 %4905, %v6889_v22   ;;  %7897 = vst [vmem:[#allocation29_spill] sm:$0xff] %v6904_v43  ;;  %5043 = vpow2.f32 %v2701_v21 }
 0x3fc   :  { %5045 = vpow2.f32 %v2711_v57 }
 0x3fd   :  { %v6909_v62 = vpop.eup %5035  ;;  %5047 = vpow2.f32 %v2705_v24 }
 0x3fe   :  { %2896 = vperm.xlu1 %4906, %v6895_v47   ;;  %7899 = vst [vmem:[#allocation39_spill] sm:$0xff] %v6909_v62  ;;  %v6911_v30 = vpop.eup %5037  ;;  %5049 = vpow2.f32 %v2709_v5 }
 0x3ff   :  { %2911 = vperm.xlu0 %4905, %v6897_v12   ;;  %7900 = vst [vmem:[#allocation42_spill] sm:$0xff] %v6911_v30 }
 0x400   :  { %v6915_v46 = vpop.eup %5039 }
 0x401   :  { %7901 = vst [vmem:[#allocation56_spill] sm:$0xff] %v6915_v46  ;;  %v6917_v11 = vpop.eup %5041 }
 0x402   :  { %2902 = vperm.xlu1 %4906, %v6902_v39   ;;  %7902 = vst [vmem:[#allocation40_spill] sm:$0xff] %v6917_v11 }
 0x403   :  { %2917 = vperm.xlu0 %4905, %v6904_v43  }
 0x405   :  { %v6921_v21 = vpop.eup %5043 }
 0x406   :  { %2908 = vperm.xlu1 %4906, %v6909_v62   ;;  %7903 = vst [vmem:[#allocation45_spill] sm:$0xff] %v6921_v21  ;;  %v6923_v49 = vpop.eup %5045 }
 0x407   :  { %2923 = vperm.xlu0 %4905, %v6911_v30   ;;  %7904 = vst [vmem:[#allocation25_spill] sm:$0xff] %v6923_v49  ;;  %v6927_v8 = vpop.eup %5047 }
 0x408   :  { %7905 = vst [vmem:[#allocation54_spill] sm:$0xff] %v6927_v8  ;;  %v6930_v2 = vpop.eup %5049 }
 0x409   :  { %7906 = vst [vmem:[#allocation50_spill] sm:$0xff] %v6930_v2 }
 0x40a   :  { %2914 = vperm.xlu1 %4906, %v6915_v46  }
 0x40b   :  { %2929 = vperm.xlu0 %4905, %v6917_v11  }
 0x40e   :  { %2920 = vperm.xlu1 %4906, %v6921_v21  }
 0x40f   :  { %2935 = vperm.xlu0 %4905, %v6923_v49  }
 0x412   :  { %2926 = vperm.xlu1 %4906, %v6927_v8  }
 0x415   :  { %v2843_v45 = vpop.permute.xlu1 %2842 }
 0x416   :  { %v2846_v57 = vpop.permute.xlu0 %2845  ;;  %2932 = vperm.xlu1 %4906, %v6930_v2   ;;  %v3036_v22 = vrot.slane %v2843_v45, %v6425_v60 }
 0x417   :  { %v3040_v39 = vrot.slane %v2846_v57, %v6420_v17 }
 0x419   :  { %v2849_v58 = vpop.permute.xlu1 %2848 }
 0x41a   :  { %v2858_v41 = vpop.permute.xlu0 %2857  ;;  %v3045_v2 = vrot.slane %v2849_v58, %v6425_v60  ;;  %v3041_v58 = vsel %vm2088_vm0, %v3040_v39, %v3036_v22 }
 0x41b   :  { %v3058_v54 = vrot.slane %v2858_v41, %v6420_v17 }
 0x41d   :  { %v2852_v24 = vpop.permute.xlu1 %2851 }
 0x41e   :  { %v2864_v5 = vpop.permute.xlu0 %2863  ;;  %v3049_v62 = vrot.slane %v2852_v24, %v6420_v17 }
 0x41f   :  { %v3067_v13 = vrot.slane %v2864_v5, %v6420_v17 }
 0x420   :  { %v3050_v24 = vsel %vm2088_vm0, %v3049_v62, %v3045_v2 }
 0x421   :  { %v2855_v11 = vpop.permute.xlu1 %2854  ;;  %v3321_v5 = vsel %vm2369_vm1, %v3050_v24, %v3041_v58 }
 0x422   :  { %v2870_v30 = vpop.permute.xlu0 %2869  ;;  %v3054_v8 = vrot.slane %v2855_v11, %v6425_v60 }
 0x423   :  { %v3076_v19 = vrot.slane %v2870_v30, %v6420_v17 }
 0x424   :  { %v3059_v57 = vsel %vm2088_vm0, %v3058_v54, %v3054_v8 }
 0x425   :  { %v2861_v46 = vpop.permute.xlu1 %2860  ;;  %v3322_v30 = vsel %vm2371_vm3, %v3059_v57, %v3321_v5 }
 0x426   :  { %v2876_v21 = vpop.permute.xlu0 %2875  ;;  %v3063_v47 = vrot.slane %v2861_v46, %v6425_v60 }
 0x427   :  { %v3085_v46 = vrot.slane %v2876_v21, %v6420_v17 }
 0x428   :  { %v3068_v40 = vsel %vm2088_vm0, %v3067_v13, %v3063_v47 }
 0x429   :  { %v2867_v43 = vpop.permute.xlu1 %2866  ;;  %v3323_v8 = vsel %vm2373_vm2, %v3068_v40, %v3322_v30 }
 0x42a   :  { %v2882_v49 = vpop.permute.xlu0 %2881  ;;  %v3072_v6 = vrot.slane %v2867_v43, %v6425_v60 }
 0x42b   :  { %v3094_v62 = vrot.slane %v2882_v49, %v6420_v17 }
 0x42d   :  { %v2873_v12 = vpop.permute.xlu1 %2872 }
 0x42e   :  { %v2888_v14 = vpop.permute.xlu0 %2887  ;;  %v3081_v11 = vrot.slane %v2873_v12, %v6425_v60  ;;  %v3077_v12 = vsel %vm2088_vm0, %v3076_v19, %v3072_v6 }
 0x42f   :  { %v3324_v13 = vsel %vm2375_vm4, %v3077_v12, %v3323_v8  ;;  %v3103_v47 = vrot.slane %v2888_v14, %v6420_v17 }
 0x430   :  { %v3086_v54 = vsel %vm2088_vm0, %v3085_v46, %v3081_v11 }
 0x431   :  { %v2879_v45 = vpop.permute.xlu1 %2878  ;;  %v3325_v49 = vsel %vm2377_vm5, %v3086_v54, %v3324_v13 }
 0x432   :  { %v2942_v41 = vpop.permute.xlu0 %2941  ;;  %v3090_v43 = vrot.slane %v2879_v45, %v6425_v60 }
 0x434   :  { %v3095_v22 = vsel %vm2088_vm0, %v3094_v62, %v3090_v43 }
 0x435   :  { %v2885_v39 = vpop.permute.xlu1 %2884  ;;  %v3326_v6 = vsel %vm2379_vm6, %v3095_v22, %v3325_v49 }
 0x436   :  { %v2948_v21 = vpop.permute.xlu0 %2947  ;;  %v3099_v2 = vrot.slane %v2885_v39, %v6425_v60 }
 0x437   :  { %v3193_v22 = vrot.slane %v2948_v21, %v6420_v17 }
 0x438   :  { %v3104_v19 = vsel %vm2088_vm0, %v3103_v47, %v3099_v2 }
 0x439   :  { %v2939_v24 = vpop.permute.xlu1 %2938  ;;  %v3327_v11 = vsel %vm2381_vm7, %v3104_v19, %v3326_v6  ;;  %v3184_v19 = vrot.slane %v2942_v41, %v6420_v17 }
 0x43a   :  { %v2954_v40 = vpop.permute.xlu0 %2953  ;;  %v3353_v57 = vsel %vm2408_vm8, %v3327_v11, 0.0  ;;  %v3180_v39 = vrot.slane %v2939_v24, %v6425_v60 }
 0x43b   :  { %3354 = vadd.xlane.f32.xlu1 %v3353_v57  ;;  %v3202_v2 = vrot.slane %v2954_v40, %v6420_v17 }
 0x43d   :  { %v2945_v45 = vpop.permute.xlu1 %2944 }
 0x43e   :  { %v2960_v58 = vpop.permute.xlu0 %2959  ;;  %v3189_v30 = vrot.slane %v2945_v45, %v6425_v60 }
 0x43f   :  { %v3211_v6 = vrot.slane %v2960_v58, %v6420_v17 }
 0x440   :  { %v3194_v11 = vsel %vm2088_vm0, %v3193_v22, %v3189_v30 }
 0x441   :  { %v2951_v46 = vpop.permute.xlu1 %2950 }
 0x442   :  { %v2966_v14 = vpop.permute.xlu0 %2965  ;;  %v3198_v54 = vrot.slane %v2951_v46, %v6425_v60  ;;  %v3185_v46 = vsel %vm2088_vm0, %v3184_v19, %v3180_v39 }
 0x443   :  { %v3220_v45 = vrot.slane %v2966_v14, %v6420_v17  ;;  %v3335_v58 = vsel %vm2369_vm1, %v3194_v11, %v3185_v46 }
 0x444   :  { %v3203_v21 = vsel %vm2088_vm0, %v3202_v2, %v3198_v54 }
 0x445   :  { %v2957_v43 = vpop.permute.xlu1 %2956  ;;  %v3336_v14 = vsel %vm2371_vm3, %v3203_v21, %v3335_v58 }
 0x446   :  { %v2972_v5 = vpop.permute.xlu0 %2971  ;;  %v3207_v13 = vrot.slane %v2957_v43, %v6425_v60 }
 0x447   :  { %v3229_v43 = vrot.slane %v2972_v5, %v6420_v17 }
 0x448   :  { %v3212_v40 = vsel %vm2088_vm0, %v3211_v6, %v3207_v13 }
 0x449   :  { %v2963_v62 = vpop.permute.xlu1 %2962  ;;  %v3337_v22 = vsel %vm2373_vm2, %v3212_v40, %v3336_v14 }
 0x44a   :  { %v2978_v12 = vpop.permute.xlu0 %2977  ;;  %v3216_v49 = vrot.slane %v2963_v62, %v6425_v60 }
 0x44b   :  { %v3238_v30 = vrot.slane %v2978_v12, %v6420_v17 }
 0x44d   :  { %v2969_v8 = vpop.permute.xlu1 %2968 }
 0x44e   :  { %v2984_v47 = vpop.permute.xlu0 %2983  ;;  %v3225_v57 = vrot.slane %v2969_v8, %v6425_v60  ;;  %v3221_v8 = vsel %vm2088_vm0, %v3220_v45, %v3216_v49 }
 0x44f   :  { %v3338_v13 = vsel %vm2375_vm4, %v3221_v8, %v3337_v22  ;;  %v3247_v2 = vrot.slane %v2984_v47, %v6420_v17 }
 0x450   :  { %v3230_v54 = vsel %vm2088_vm0, %v3229_v43, %v3225_v57 }
 0x451   :  { %v2975_v24 = vpop.permute.xlu1 %2974  ;;  %v3339_v12 = vsel %vm2377_vm5, %v3230_v54, %v3338_v13 }
 0x452   :  { %v2990_v62 = vpop.permute.xlu0 %2989  ;;  %v3234_v41 = vrot.slane %v2975_v24, %v6425_v60 }
 0x454   :  { %v3239_v39 = vsel %vm2088_vm0, %v3238_v30, %v3234_v41 }
 0x455   :  { %v2981_v5 = vpop.permute.xlu1 %2980  ;;  %v3340_v11 = vsel %vm2379_vm6, %v3239_v39, %v3339_v12 }
 0x456   :  { %v2996_v19 = vpop.permute.xlu0 %2995  ;;  %v3243_v6 = vrot.slane %v2981_v5, %v6425_v60 }
 0x457   :  { %v3265_v39 = vrot.slane %v2996_v19, %v6420_v17 }
 0x458   :  { %v3248_v49 = vsel %vm2088_vm0, %v3247_v2, %v3243_v6 }
 0x459   :  { %v2987_v45 = vpop.permute.xlu1 %2986  ;;  %v3341_v57 = vsel %vm2381_vm7, %v3248_v49, %v3340_v11  ;;  %v3256_v49 = vrot.slane %v2990_v62, %v6420_v17 }
 0x45a   :  { %v3002_v21 = vpop.permute.xlu0 %3001  ;;  %v3359_v24 = vsel %vm2408_vm8, %v3341_v57, 0.0  ;;  %v3252_v5 = vrot.slane %v2987_v45, %v6425_v60 }
 0x45b   :  { %3360 = vadd.xlane.f32.xlu0 %v3359_v24  ;;  %v3274_v6 = vrot.slane %v3002_v21, %v6420_v17 }
 0x45d   :  { %v2993_v46 = vpop.permute.xlu1 %2992 }
 0x45e   :  { %v3008_v43 = vpop.permute.xlu0 %3007  ;;  %v3261_v14 = vrot.slane %v2993_v46, %v6425_v60 }
 0x45f   :  { %v3283_v11 = vrot.slane %v3008_v43, %v6420_v17 }
 0x460   :  { %v3266_v57 = vsel %vm2088_vm0, %v3265_v39, %v3261_v14 }
 0x461   :  { %v2999_v40 = vpop.permute.xlu1 %2998 }
 0x462   :  { %v3014_v47 = vpop.permute.xlu0 %3013  ;;  %v3270_v54 = vrot.slane %v2999_v40, %v6425_v60  ;;  %v3257_v40 = vsel %vm2088_vm0, %v3256_v49, %v3252_v5 }
 0x463   :  { %v3292_v46 = vrot.slane %v3014_v47, %v6420_v17  ;;  %v3342_v43 = vsel %vm2369_vm1, %v3266_v57, %v3257_v40 }
 0x464   :  { %v3275_v19 = vsel %vm2088_vm0, %v3274_v6, %v3270_v54 }
 0x465   :  { %v3005_v41 = vpop.permute.xlu1 %3004  ;;  %v3343_v47 = vsel %vm2371_vm3, %v3275_v19, %v3342_v43 }
 0x466   :  { %v3020_v58 = vpop.permute.xlu0 %3019  ;;  %v3279_v13 = vrot.slane %v3005_v41, %v6425_v60 }
 0x467   :  { %v3301_v41 = vrot.slane %v3020_v58, %v6420_v17 }
 0x468   :  { %v3284_v21 = vsel %vm2088_vm0, %v3283_v11, %v3279_v13 }
 0x469   :  { %v3011_v30 = vpop.permute.xlu1 %3010  ;;  %v3344_v39 = vsel %vm2373_vm2, %v3284_v21, %v3343_v47 }
 0x46a   :  { %v3026_v8 = vpop.permute.xlu0 %3025  ;;  %v3288_v12 = vrot.slane %v3011_v30, %v6425_v60 }
 0x46b   :  { %v3310_v14 = vrot.slane %v3026_v8, %v6420_v17 }
 0x46d   :  { %v3017_v22 = vpop.permute.xlu1 %3016 }
 0x46e   :  { %v3032_v2 = vpop.permute.xlu0 %3031  ;;  %v3297_v24 = vrot.slane %v3017_v22, %v6425_v60  ;;  %v3293_v22 = vsel %vm2088_vm0, %v3292_v46, %v3288_v12 }
 0x46f   :  { %v3345_v13 = vsel %vm2375_vm4, %v3293_v22, %v3344_v39  ;;  %v3319_v6 = vrot.slane %v3032_v2, %v6420_v17 }
 0x470   :  { %v3302_v54 = vsel %vm2088_vm0, %v3301_v41, %v3297_v24 }
 0x471   :  { %v3023_v45 = vpop.permute.xlu1 %3022  ;;  %v3346_v8 = vsel %vm2377_vm5, %v3302_v54, %v3345_v13 }
 0x472   :  { %v2894_v30 = vpop.permute.xlu0 %2893  ;;  %v3306_v62 = vrot.slane %v3023_v45, %v6425_v60 }
 0x474   :  { %v3311_v5 = vsel %vm2088_vm0, %v3310_v14, %v3306_v62 }
 0x475   :  { %v3029_v58 = vpop.permute.xlu1 %3028  ;;  %v3347_v57 = vsel %vm2379_vm6, %v3311_v5, %v3346_v8  ;;  %v3112_v8 = vrot.slane %v2894_v30, %v6420_v17 }
 0x476   :  { %v2900_v49 = vpop.permute.xlu0 %2899  ;;  %v3315_v11 = vrot.slane %v3029_v58, %v6425_v60 }
 0x477   :  { %v3121_v5 = vrot.slane %v2900_v49, %v6420_v17 }
 0x478   :  { %v3320_v12 = vsel %vm2088_vm0, %v3319_v6, %v3315_v11 }
 0x479   :  { %v2891_v46 = vpop.permute.xlu1 %2890  ;;  %v3348_v24 = vsel %vm2381_vm7, %v3320_v12, %v3347_v57 }
 0x47a   :  { %v2906_v19 = vpop.permute.xlu0 %2905  ;;  %v3362_v45 = vsel %vm2408_vm8, %v3348_v24, 0.0  ;;  %v3108_v58 = vrot.slane %v2891_v46, %v6425_v60 }
 0x47b   :  { %3363 = vadd.xlane.f32.xlu0 %v3362_v45  ;;  %v3130_v6 = vrot.slane %v2906_v19, %v6420_v17 }
 0x47c   :  { %v3113_v46 = vsel %vm2088_vm0, %v3112_v8, %v3108_v58 }
 0x47d   :  { %v2897_v40 = vpop.permute.xlu1 %2896 }
 0x47e   :  { %v2912_v41 = vpop.permute.xlu0 %2911  ;;  %v3117_v22 = vrot.slane %v2897_v40, %v6425_v60 }
 0x47f   :  { %v3139_v12 = vrot.slane %v2912_v41, %v6420_v17 }
 0x480   :  { %v3122_v57 = vsel %vm2088_vm0, %v3121_v5, %v3117_v22 }
 0x481   :  { %v2903_v21 = vpop.permute.xlu1 %2902  ;;  %v3328_v30 = vsel %vm2369_vm1, %v3122_v57, %v3113_v46 }
 0x482   :  { %v2918_v2 = vpop.permute.xlu0 %2917  ;;  %v3126_v47 = vrot.slane %v2903_v21, %v6425_v60 }
 0x483   :  { %v3148_v45 = vrot.slane %v2918_v2, %v6420_v17 }
 0x484   :  { %v3131_v49 = vsel %vm2088_vm0, %v3130_v6, %v3126_v47 }
 0x485   :  { %v2909_v62 = vpop.permute.xlu1 %2908  ;;  %v3329_v2 = vsel %vm2371_vm3, %v3131_v49, %v3328_v30 }
 0x486   :  { %v2924_v43 = vpop.permute.xlu0 %2923  ;;  %v3135_v13 = vrot.slane %v2909_v62, %v6425_v60 }
 0x487   :  { %v3157_v21 = vrot.slane %v2924_v43, %v6420_v17 }
 0x488   :  { %v3140_v19 = vsel %vm2088_vm0, %v3139_v12, %v3135_v13 }
 0x489   :  { %v2915_v14 = vpop.permute.xlu1 %2914 }
 0x48a   :  { %v2930_v54 = vpop.permute.xlu0 %2929  ;;  %v3144_v11 = vrot.slane %v2915_v14, %v6425_v60 }
 0x48b   :  { %v3166_v41 = vrot.slane %v2930_v54, %v6420_v17 }
 0x48c   :  { %v3149_v14 = vsel %vm2088_vm0, %v3148_v45, %v3144_v11 }
 0x48d   :  { %v2921_v39 = vpop.permute.xlu1 %2920 }
 0x48e   :  { %v3153_v24 = vrot.slane %v2921_v39, %v6425_v60  ;;  %v2936_v22 = vpop.permute.xlu0 %2935  ;;  %v3330_v39 = vsel %vm2373_vm2, %v3140_v19, %v3329_v2 }
 0x48f   :  { %v3331_v58 = vsel %vm2375_vm4, %v3149_v14, %v3330_v39  ;;  %v3175_v13 = vrot.slane %v2936_v22, %v6420_v17 }
 0x490   :  { %v3158_v47 = vsel %vm2088_vm0, %v3157_v21, %v3153_v24 }
 0x491   :  { %v2927_v40 = vpop.permute.xlu1 %2926  ;;  %v3332_v54 = vsel %vm2377_vm5, %v3158_v47, %v3331_v58 }
 0x492   :  { %v3162_v62 = vrot.slane %v2927_v40, %v6425_v60 }
 0x494   :  { %v3167_v5 = vsel %vm2088_vm0, %v3166_v41, %v3162_v62 }
 0x495   :  { %v2933_v43 = vpop.permute.xlu1 %2932  ;;  %v3333_v8 = vsel %vm2379_vm6, %v3167_v5, %v3332_v54 }
 0x496   :  { %v3171_v6 = vrot.slane %v2933_v43, %v6425_v60 }
 0x498   :  { %v3176_v11 = vsel %vm2088_vm0, %v3175_v13, %v3171_v6 }
 0x499   :  { %v3334_v12 = vsel %vm2381_vm7, %v3176_v11, %v3333_v8 }
 0x49a   :  { %v3356_v57 = vsel %vm2408_vm8, %v3334_v12, 0.0 }
 0x49b   :  { %3357 = vadd.xlane.f32.xlu0 %v3356_v57 }
 0x4c8   :  { %v3355_v24 = vpop.xlane.xlu1 %3354 }
 0x4c9   :  { %v3372_v45 = vrot.slane %v3355_v24, %v5313_v36  ;;  %v3380_v49 = vrot.slane %v3355_v24, %v7812_v35  ;;  %v3376_v40 = vrot.slane %v3355_v24, %v7811_v32  ;;  %v3384_v46 = vrot.slane %v3355_v24, %v7813_v15 }
 0x4ca   :  { %v3388_v21 = vrot.slane %v3355_v24, %v7814_v7  ;;  %v3392_v62 = vrot.slane %v3355_v24, %v7815_v52  ;;  %v3396_v2 = vrot.slane %v3355_v24, %v7816_v37  ;;  %v3400_v43 = vrot.slane %v3355_v24, %v7818_v33 }
 0x4cb   :  { %5051 = vrcp.f32 %v3372_v45 }
 0x4cc   :  { %5053 = vrcp.f32 %v3380_v49 }
 0x4cd   :  { %5055 = vrcp.f32 %v3376_v40 }
 0x4ce   :  { %5057 = vrcp.f32 %v3384_v46 }
 0x4cf   :  { %5059 = vrcp.f32 %v3388_v21 }
 0x4d0   :  { %5061 = vrcp.f32 %v3392_v62 }
 0x4d1   :  { %5063 = vrcp.f32 %v3396_v2 }
 0x4d2   :  { %5065 = vrcp.f32 %v3400_v43 }
 0x4d5   :  { %v5052_v19 = vpop.eup %5051 }
 0x4d6   :  { %v5054_v30 = vpop.eup %5053  ;;  %v3531_v41 = vmul.f32 %v5052_v19, %v6634_v3  ;;  %v3530_v14 = vmul.f32 %v5052_v19, %v6632_v29 }
 0x4d7   :  { %v5056_v22 = vpop.eup %5055  ;;  %v3537_v47 = vmul.f32 %v5054_v30, %v6645_v23  ;;  %v3536_v23 = vmul.f32 %v5054_v30, %v6663_v9 }
 0x4d8   :  { %3693 = vperm.xlu0 %4905, %v3531_v41   ;;  %3690 = vperm.xlu1 %4906, %v3530_v14   ;;  %v3533_v39 = vmul.f32 %v5056_v22, %v6641_v48  ;;  %v5058_v5 = vpop.eup %5057  ;;  %v3534_v29 = vmul.f32 %v5056_v22, %v6653_v28 }
 0x4d9   :  { %v3540_v3 = vmul.f32 %v5058_v5, %v6655_v42  ;;  %v5060_v58 = vpop.eup %5059  ;;  %v3539_v54 = vmul.f32 %v5058_v5, %v6673_v51 }
 0x4da   :  { %v3543_v13 = vmul.f32 %v5060_v58, %v6665_v50  ;;  %v5062_v6 = vpop.eup %5061  ;;  %v3542_v50 = vmul.f32 %v5060_v58, %v6683_v55 }
 0x4db   :  { %v3546_v48 = vmul.f32 %v5062_v6, %v6675_v63  ;;  %v5064_v11 = vpop.eup %5063  ;;  %v3545_v57 = vmul.f32 %v5062_v6, %v6693_v61  ;;  %v7910_v6 = vld [vmem:[#allocation15_spill] sm:$0xff] }
 0x4dc   :  { %3705 = vperm.xlu0 %4905, %v3537_v47   ;;  %3696 = vperm.xlu1 %4906, %v3533_v39   ;;  %v3549_v12 = vmul.f32 %v5064_v11, %v6685_v18  ;;  %v5066_v9 = vpop.eup %5065  ;;  %v3548_v18 = vmul.f32 %v5064_v11, %v6703_v38 }
 0x4dd   :  { %v3552_v51 = vmul.f32 %v5066_v9, %v6695_v53  ;;  %v3551_v40 = vmul.f32 %v5066_v9, %v6713_v26 }
 0x4e0   :  { %3711 = vperm.xlu0 %4905, %v3540_v3   ;;  %3699 = vperm.xlu1 %4906, %v3534_v29   ;;  %v7908_v29 = vld [vmem:[#allocation13_spill] sm:$0xff] }
 0x4e4   :  { %3717 = vperm.xlu0 %4905, %v3543_v13   ;;  %3702 = vperm.xlu1 %4906, %v3536_v23   ;;  %v7909_v23 = vld [vmem:[#allocation14_spill] sm:$0xff] }
 0x4e8   :  { %v3361_v8 = vpop.xlane.xlu0 %3360  ;;  %3723 = vperm.xlu0 %4905, %v3546_v48   ;;  %3708 = vperm.xlu1 %4906, %v3539_v54  }
 0x4e9   :  { %v3436_v28 = vrot.slane %v3361_v8, %v5313_v36  ;;  %v3440_v42 = vrot.slane %v3361_v8, %v7811_v32  ;;  %v3444_v63 = vrot.slane %v3361_v8, %v7812_v35  ;;  %v3448_v24 = vrot.slane %v3361_v8, %v7813_v15 }
 0x4ea   :  { %v3452_v45 = vrot.slane %v3361_v8, %v7814_v7  ;;  %v3456_v61 = vrot.slane %v3361_v8, %v7815_v52  ;;  %v3460_v19 = vrot.slane %v3361_v8, %v7816_v37  ;;  %v3464_v30 = vrot.slane %v3361_v8, %v7818_v33  ;;  %v7911_v8 = vld [vmem:[#allocation16_spill] sm:$0xff] }
 0x4eb   :  { %5067 = vrcp.f32 %v3436_v28 }
 0x4ec   :  { %3729 = vperm.xlu0 %4905, %v3549_v12   ;;  %3714 = vperm.xlu1 %4906, %v3542_v50   ;;  %5069 = vrcp.f32 %v3440_v42  ;;  %v7912_v42 = vld [vmem:[#allocation17_spill] sm:$0xff] }
 0x4ed   :  { %5071 = vrcp.f32 %v3444_v63  ;;  %v7913_v63 = vld [vmem:[#allocation18_spill] sm:$0xff] }
 0x4ee   :  { %5073 = vrcp.f32 %v3448_v24 }
 0x4ef   :  { %5075 = vrcp.f32 %v3452_v45 }
 0x4f0   :  { %3735 = vperm.xlu0 %4905, %v3552_v51   ;;  %3720 = vperm.xlu1 %4906, %v3545_v57   ;;  %5077 = vrcp.f32 %v3456_v61  ;;  %v7914_v57 = vld [vmem:[#allocation37_spill] sm:$0xff]  ;;  %v7917_v61 = vld [vmem:[#allocation60_spill] sm:$0xff] }
 0x4f1   :  { %5079 = vrcp.f32 %v3460_v19 }
 0x4f2   :  { %5081 = vrcp.f32 %v3464_v30  ;;  %v7919_v30 = vld [vmem:[#allocation20_spill] sm:$0xff] }
 0x4f4   :  { %3726 = vperm.xlu1 %4906, %v3548_v18  }
 0x4f5   :  { %v5068_v55 = vpop.eup %5067 }
 0x4f6   :  { %v3579_v49 = vmul.f32 %v5068_v55, %v6705_v0  ;;  %v5070_v46 = vpop.eup %5069  ;;  %v3578_v21 = vmul.f32 %v5068_v55, %v6723_v34  ;;  %v7915_v55 = vld [vmem:[#allocation19_spill] sm:$0xff] }
 0x4f7   :  { %v3582_v53 = vmul.f32 %v5070_v46, %v6715_v4  ;;  %v5072_v38 = vpop.eup %5071  ;;  %v3581_v26 = vmul.f32 %v5070_v46, %v6735_v20 }
 0x4f8   :  { %3789 = vperm.xlu0 %4905, %v3579_v49   ;;  %3732 = vperm.xlu1 %4906, %v3551_v40   ;;  %v3585_v0 = vmul.f32 %v5072_v38, %v6727_v44  ;;  %v5074_v62 = vpop.eup %5073  ;;  %v3584_v34 = vmul.f32 %v5072_v38, %v6745_v16  ;;  %v7916_v49 = vld [vmem:[#allocation28_spill] sm:$0xff] }
 0x4f9   :  { %v3588_v4 = vmul.f32 %v5074_v62, %v6737_v27  ;;  %v5076_v41 = vpop.eup %5075  ;;  %v3587_v44 = vmul.f32 %v5074_v62, %v6755_v59 }
 0x4fa   :  { %v3591_v14 = vmul.f32 %v5076_v41, %v6747_v1  ;;  %v5078_v22 = vpop.eup %5077  ;;  %v3590_v47 = vmul.f32 %v5076_v41, %v6765_v25  ;;  %v7907_v25 = vld [vmem:[#allocation12_spill] sm:$0xff] }
 0x4fb   :  { %v3594_v16 = vmul.f32 %v5078_v22, %v6757_v10  ;;  %v5080_v39 = vpop.eup %5079  ;;  %v3593_v5 = vmul.f32 %v5078_v22, %v6775_v56  ;;  %v7921_v22 = vld [vmem:[#allocation67_spill] sm:$0xff] }
 0x4fc   :  { %3795 = vperm.xlu0 %4905, %v3582_v53   ;;  %3786 = vperm.xlu1 %4906, %v3578_v21   ;;  %v3597_v59 = vmul.f32 %v5080_v39, %v6767_v31  ;;  %v5082_v43 = vpop.eup %5081  ;;  %v3596_v58 = vmul.f32 %v5080_v39, %v7908_v29  ;;  %v7918_v21 = vld [vmem:[#allocation65_spill] sm:$0xff] }
 0x4fd   :  { %v3600_v3 = vmul.f32 %v5082_v43, %v7907_v25  ;;  %v3599_v48 = vmul.f32 %v5082_v43, %v7910_v6  ;;  %v7925_v43 = vld [vmem:[#allocation63_spill] sm:$0xff] }
 0x500   :  { %3801 = vperm.xlu0 %4905, %v3585_v0   ;;  %3792 = vperm.xlu1 %4906, %v3581_v26  }
 0x504   :  { %3807 = vperm.xlu0 %4905, %v3588_v4   ;;  %3798 = vperm.xlu1 %4906, %v3584_v34   ;;  %v7920_v34 = vld [vmem:[#allocation41_spill] sm:$0xff] }
 0x508   :  { %v7102_v20 = vpop.xlane.xlu0 %3363  ;;  %3813 = vperm.xlu0 %4905, %v3591_v14   ;;  %3804 = vperm.xlu1 %4906, %v3587_v44  }
 0x509   :  { %v3468_v2 = vrot.slane %v7102_v20, %v5313_v36  ;;  %v3472_v27 = vrot.slane %v7102_v20, %v7811_v32  ;;  %v3476_v1 = vrot.slane %v7102_v20, %v7812_v35  ;;  %v3480_v10 = vrot.slane %v7102_v20, %v7813_v15 }
 0x50a   :  { %v3484_v31 = vrot.slane %v7102_v20, %v7814_v7  ;;  %v3488_v11 = vrot.slane %v7102_v20, %v7815_v52  ;;  %v3492_v9 = vrot.slane %v7102_v20, %v7816_v37 }
 0x50b   :  { %5083 = vrcp.f32 %v3468_v2 }
 0x50c   :  { %3819 = vperm.xlu0 %4905, %v3594_v16   ;;  %3810 = vperm.xlu1 %4906, %v3590_v47   ;;  %5085 = vrcp.f32 %v3472_v27  ;;  %v7922_v27 = vld [vmem:[#allocation38_spill] sm:$0xff] }
 0x50d   :  { %5087 = vrcp.f32 %v3476_v1 }
 0x50e   :  { %5089 = vrcp.f32 %v3480_v10 }
 0x50f   :  { %5091 = vrcp.f32 %v3484_v31  ;;  %v7928_v31 = vld [vmem:[#allocation55_spill] sm:$0xff] }
 0x510   :  { %3825 = vperm.xlu0 %4905, %v3597_v59   ;;  %3816 = vperm.xlu1 %4906, %v3593_v5   ;;  %5093 = vrcp.f32 %v3488_v11  ;;  %v7924_v59 = vld [vmem:[#allocation64_spill] sm:$0xff] }
 0x511   :  { %5095 = vrcp.f32 %v3492_v9  ;;  %v7933_v9 = vld [vmem:[#allocation56_spill] sm:$0xff] }
 0x514   :  { %3831 = vperm.xlu0 %4905, %v3600_v3   ;;  %3822 = vperm.xlu1 %4906, %v3596_v58   ;;  %v7926_v3 = vld [vmem:[#allocation52_spill] sm:$0xff] }
 0x515   :  { %v5084_v13 = vpop.eup %5083 }
 0x516   :  { %v3603_v56 = vmul.f32 %v5084_v13, %v7909_v23  ;;  %v5086_v54 = vpop.eup %5085  ;;  %v3602_v12 = vmul.f32 %v5084_v13, %v7912_v42 }
 0x517   :  { %v3606_v28 = vmul.f32 %v5086_v54, %v7911_v8  ;;  %v5088_v50 = vpop.eup %5087  ;;  %v3605_v24 = vmul.f32 %v5086_v54, %v7914_v57  ;;  %v7930_v54 = vld [vmem:[#allocation23_spill] sm:$0xff]  ;;  %v7934_v57 = vld [vmem:[#allocation42_spill] sm:$0xff] }
 0x518   :  { %3837 = vperm.xlu0 %4905, %v3603_v56   ;;  %3828 = vperm.xlu1 %4906, %v3599_v48   ;;  %v3609_v51 = vmul.f32 %v5088_v50, %v7913_v63  ;;  %v5090_v18 = vpop.eup %5089  ;;  %v3608_v40 = vmul.f32 %v5088_v50, %v7916_v49  ;;  %v7929_v56 = vld [vmem:[#allocation31_spill] sm:$0xff]  ;;  %v7936_v49 = vld [vmem:[#allocation40_spill] sm:$0xff] }
 0x519   :  { %v3612_v45 = vmul.f32 %v5090_v18, %v7915_v55  ;;  %v5092_v46 = vpop.eup %5091  ;;  %v3611_v38 = vmul.f32 %v5090_v18, %v7918_v21  ;;  %v7931_v8 = vld [vmem:[#allocation39_spill] sm:$0xff]  ;;  %v7935_v18 = vld [vmem:[#allocation45_spill] sm:$0xff]  ;;  %v7939_v21 = vld [vmem:[#allocation50_spill] sm:$0xff] }
 0x51a   :  { %v3615_v53 = vmul.f32 %v5092_v46, %v7917_v61  ;;  %v5094_v19 = vpop.eup %5093  ;;  %v3614_v41 = vmul.f32 %v5092_v46, %v7920_v34  ;;  %v7937_v46 = vld [vmem:[#allocation54_spill] sm:$0xff] }
 0x51b   :  { %v3618_v4 = vmul.f32 %v5094_v19, %v7919_v30  ;;  %v5096_v14 = vpop.eup %5095  ;;  %v3617_v16 = vmul.f32 %v5094_v19, %v7922_v27 }
 0x51c   :  { %3843 = vperm.xlu0 %4905, %v3606_v28   ;;  %3834 = vperm.xlu1 %4906, %v3602_v12   ;;  %v3621_v2 = vmul.f32 %v5096_v14, %v7921_v22  ;;  %v7932_v12 = vld [vmem:[#allocation29_spill] sm:$0xff] }
 0x520   :  { %3849 = vperm.xlu0 %4905, %v3609_v51   ;;  %3840 = vperm.xlu1 %4906, %v3605_v24  }
 0x524   :  { %3855 = vperm.xlu0 %4905, %v3612_v45   ;;  %3846 = vperm.xlu1 %4906, %v3608_v40  }
 0x528   :  { %v3358_v0 = vpop.xlane.xlu0 %3357  ;;  %3861 = vperm.xlu0 %4905, %v3615_v53   ;;  %3852 = vperm.xlu1 %4906, %v3611_v38  }
 0x529   :  { %v3404_v26 = vrot.slane %v3358_v0, %v5313_v36  ;;  %v3408_v62 = vrot.slane %v3358_v0, %v7811_v32  ;;  %v3412_v44 = vrot.slane %v3358_v0, %v7812_v35  ;;  %v3416_v36 = vrot.slane %v3358_v0, %v7813_v15  ;;  %v7923_v32 = vld [vmem:[#allocation46_spill] sm:$0xff] }
 0x52a   :  { %v3620_v47 = vmul.f32 %v5096_v14, %v7923_v32  ;;  %v3420_v1 = vrot.slane %v3358_v0, %v7814_v7  ;;  %v3424_v25 = vrot.slane %v3358_v0, %v7815_v52  ;;  %v7927_v15 = vld [vmem:[#allocation66_spill] sm:$0xff]  ;;  %v3428_v7 = vrot.slane %v3358_v0, %v7816_v37  ;;  %v4205_v14 = vld [vmem:[#allocation2] sm:$0xff] }
 0x52b   :  { %5097 = vrcp.f32 %v3404_v26  ;;  %v3432_v52 = vrot.slane %v3358_v0, %v7818_v33  ;;  %v3496_v37 = vrot.slane %v7102_v20, %v7818_v33  ;;  %v7938_v20 = vld [vmem:[#allocation25_spill] sm:$0xff]  ;;  %v7940_v0 = vld [vmem:[#allocation43_spill] sm:$0xff] }
 0x52c   :  { %3867 = vperm.xlu0 %4905, %v3618_v4   ;;  %3858 = vperm.xlu1 %4906, %v3614_v41   ;;  %5099 = vrcp.f32 %v3408_v62  ;;  %v7941_v4 = vld [vmem:[#allocation51_spill] sm:$0xff]  ;;  %v4206_v41 = vld [vmem:[#allocation2 + $0x8] sm:$0xff] }
 0x52d   :  { %5101 = vrcp.f32 %v3412_v44 }
 0x52e   :  { %5103 = vrcp.f32 %v3416_v36 }
 0x52f   :  { %5105 = vrcp.f32 %v3420_v1 }
 0x530   :  { %3873 = vperm.xlu0 %4905, %v3621_v2   ;;  %3864 = vperm.xlu1 %4906, %v3617_v16   ;;  %5107 = vrcp.f32 %v3424_v25  ;;  %v4208_v16 = vld [vmem:[#allocation2 + $0x18] sm:$0xff] }
 0x531   :  { %5109 = vrcp.f32 %v3428_v7 }
 0x532   :  { %5111 = vrcp.f32 %v3432_v52 }
 0x533   :  { %5113 = vrcp.f32 %v3496_v37 }
 0x534   :  { %3870 = vperm.xlu1 %4906, %v3620_v47  }
 0x535   :  { %v5098_v39 = vpop.eup %5097 }
 0x536   :  { %v3555_v5 = vmul.f32 %v5098_v39, %v7924_v59  ;;  %v3554_v35 = vmul.f32 %v5098_v39, %v7925_v43  ;;  %v5100_v10 = vpop.eup %5099  ;;  %v4207_v39 = vld [vmem:[#allocation2 + $0x10] sm:$0xff]  ;;  %v4210_v59 = vld [vmem:[#allocation2 + $0x28] sm:$0xff] }
 0x537   :  { %v3558_v29 = vmul.f32 %v5100_v10, %v7926_v3  ;;  %v3557_v58 = vmul.f32 %v5100_v10, %v7927_v15  ;;  %v5102_v13 = vpop.eup %5101 }
 0x538   :  { %3741 = vperm.xlu0 %4905, %v3555_v5   ;;  %3738 = vperm.xlu1 %4906, %v3554_v35   ;;  %v3561_v23 = vmul.f32 %v5102_v13, %v7928_v31  ;;  %v3560_v6 = vmul.f32 %v5102_v13, %v7929_v56  ;;  %v5104_v48 = vpop.eup %5103  ;;  %v4209_v5 = vld [vmem:[#allocation2 + $0x20] sm:$0xff]  ;;  %v4211_v13 = vld [vmem:[#allocation2 + $0x30] sm:$0xff] }
 0x539   :  { %v3564_v11 = vmul.f32 %v5104_v48, %v7930_v54  ;;  %v3563_v28 = vmul.f32 %v5104_v48, %v7931_v8  ;;  %v5106_v42 = vpop.eup %5105  ;;  %v4214_v54 = vld [vmem:[#allocation2 + $0x48] sm:$0xff]  ;;  %v4213_v8 = vld [vmem:[#allocation2 + $0x40] sm:$0xff] }
 0x53a   :  { %v3567_v50 = vmul.f32 %v5106_v42, %v7932_v12  ;;  %v3566_v63 = vmul.f32 %v5106_v42, %v7933_v9  ;;  %v5108_v51 = vpop.eup %5107 }
 0x53b   :  { %v3570_v24 = vmul.f32 %v5108_v51, %v7934_v57  ;;  %v3569_v55 = vmul.f32 %v5108_v51, %v7935_v18  ;;  %v5110_v45 = vpop.eup %5109  ;;  %v4216_v18 = vld [vmem:[#allocation2 + $0x58] sm:$0xff] }
 0x53c   :  { %3747 = vperm.xlu0 %4905, %v3558_v29   ;;  %3744 = vperm.xlu1 %4906, %v3557_v58   ;;  %v3573_v40 = vmul.f32 %v5110_v45, %v7936_v49  ;;  %v3572_v61 = vmul.f32 %v5110_v45, %v7937_v46  ;;  %v5112_v33 = vpop.eup %5111  ;;  %v4212_v29 = vld [vmem:[#allocation2 + $0x38] sm:$0xff] }
 0x53d   :  { %v3576_v53 = vmul.f32 %v5112_v33, %v7938_v20  ;;  %v3575_v38 = vmul.f32 %v5112_v33, %v7939_v21  ;;  %v5114_v19 = vpop.eup %5113 }
 0x53e   :  { %v3624_v26 = vmul.f32 %v5114_v19, %v7940_v0  ;;  %v3623_v34 = vmul.f32 %v5114_v19, %v7941_v4  ;;  %v4218_v4 = vld [vmem:[#allocation2 + $0x68] sm:$0xff] }
 0x540   :  { %3753 = vperm.xlu0 %4905, %v3561_v23   ;;  %3750 = vperm.xlu1 %4906, %v3560_v6  }
 0x544   :  { %3759 = vperm.xlu0 %4905, %v3564_v11   ;;  %3756 = vperm.xlu1 %4906, %v3563_v28  }
 0x548   :  { %3765 = vperm.xlu0 %4905, %v3567_v50   ;;  %3762 = vperm.xlu1 %4906, %v3566_v63  }
 0x54c   :  { %3771 = vperm.xlu0 %4905, %v3570_v24   ;;  %3768 = vperm.xlu1 %4906, %v3569_v55  }
 0x550   :  { %3777 = vperm.xlu0 %4905, %v3573_v40   ;;  %3774 = vperm.xlu1 %4906, %v3572_v61   ;;  %v4215_v61 = vld [vmem:[#allocation2 + $0x50] sm:$0xff] }
 0x554   :  { %3783 = vperm.xlu0 %4905, %v3576_v53   ;;  %3780 = vperm.xlu1 %4906, %v3575_v38  }
 0x557   :  { %v3694_v62 = vpop.permute.xlu0 %3693  ;;  %v3691_v30 = vpop.permute.xlu1 %3690 }
 0x558   :  { %3879 = vperm.xlu0 %4905, %v3624_v26   ;;  %3876 = vperm.xlu1 %4906, %v3623_v34   ;;  %v4334_v2 = vmul.f32 %v4206_v41, %v3694_v62  ;;  %v4333_v27 = vmul.f32 %v4205_v14, %v3691_v30  ;;  %v3888_v28 = vrot.slane %v3694_v62, %v6420_v17 }
 0x559   :  { %v3884_v42 = vrot.slane %v3691_v30, %v6425_v60 }
 0x55a   :  { %v4397_v47 = vadd.f32 %v4334_v2, %v4333_v27 }
 0x55b   :  { %v3706_v44 = vpop.permute.xlu0 %3705  ;;  %v3697_v22 = vpop.permute.xlu1 %3696  ;;  %v3889_v33 = vsel %vm2088_vm0, %v3888_v28, %v3884_v42 }
 0x55c   :  { %v4335_v43 = vmul.f32 %v4207_v39, %v3697_v22  ;;  %v4398_v25 = vrot.slane %v4397_v47, 4  ;;  %v4338_v3 = vmul.f32 %v4210_v59, %v3706_v44  ;;  %v3893_v51 = vrot.slane %v3697_v22, %v6425_v60 }
 0x55d   :  { %v3906_v49 = vrot.slane %v3706_v44, %v6420_v17  ;;  %v4217_v44 = vld [vmem:[#allocation2 + $0x60] sm:$0xff] }
 0x55e   :  { %v4399_v56 = vadd.f32 %v4398_v25, %v4397_v47 }
 0x55f   :  { %v3712_v36 = vpop.permute.xlu0 %3711  ;;  %v3700_v32 = vpop.permute.xlu1 %3699 }
 0x560   :  { %v4336_v1 = vmul.f32 %v4208_v16, %v3700_v32  ;;  %v4340_v6 = vmul.f32 %v4212_v29, %v3712_v36  ;;  %v3897_v37 = vrot.slane %v3700_v32, %v6420_v17  ;;  %v4400_v9 = vrot.slane %v4399_v56, 2 }
 0x561   :  { %v3915_v0 = vrot.slane %v3712_v36, %v6420_v17 }
 0x562   :  { %v4404_v15 = vadd.f32 %v4336_v1, %v4335_v43  ;;  %v3898_v20 = vsel %vm2088_vm0, %v3897_v37, %v3893_v51  ;;  %v7181_v19 = vadd.f32 %v4400_v9, %v4399_v56 }
 0x563   :  { %v7167_v35 = vpop.permute.xlu0 %3717  ;;  %v3703_v10 = vpop.permute.xlu1 %3702  ;;  %v4169_v22 = vsel %vm2369_vm1, %v3898_v20, %v3889_v33  ;;  %v4237_v33 = vld [vmem:[#allocation2 + $0x100] sm:$0xff] }
 0x564   :  { %v4337_v58 = vmul.f32 %v4209_v5, %v3703_v10  ;;  %v4405_v52 = vrot.slane %v4404_v15, 4  ;;  %v3902_v63 = vrot.slane %v3703_v10, %v6425_v60  ;;  %v4342_v24 = vmul.f32 %v4214_v54, %v7167_v35 }
 0x565   :  { %v3924_v2 = vrot.slane %v7167_v35, %v6420_v17 }
 0x566   :  { %v4411_v7 = vadd.f32 %v4338_v3, %v4337_v58  ;;  %v4406_v57 = vadd.f32 %v4405_v52, %v4404_v15  ;;  %v3907_v26 = vsel %vm2088_vm0, %v3906_v49, %v3902_v63 }
 0x567   :  { %v7169_v31 = vpop.permute.xlu0 %3723  ;;  %v3709_v23 = vpop.permute.xlu1 %3708  ;;  %v4170_v5 = vsel %vm2371_vm3, %v3907_v26, %v4169_v22  ;;  %v4402_v26 = vrot.slane %v7181_v19, 1 }
 0x568   :  { %v4339_v48 = vmul.f32 %v4211_v13, %v3709_v23  ;;  %v4412_v12 = vrot.slane %v4411_v7, 4  ;;  %v3911_v40 = vrot.slane %v3709_v23, %v6425_v60  ;;  %v4344_v62 = vmul.f32 %v4216_v18, %v7169_v31  ;;  %v4220_v23 = vld [vmem:[#allocation2 + $0x78] sm:$0xff] }
 0x569   :  { %v4407_v30 = vrot.slane %v4406_v57, 2  ;;  %v3933_v35 = vrot.slane %v7169_v31, %v6420_v17 }
 0x56a   :  { %v4418_v11 = vadd.f32 %v4340_v6, %v4339_v48  ;;  %v4413_v53 = vadd.f32 %v4412_v12, %v4411_v7  ;;  %v3916_v27 = vsel %vm2088_vm0, %v3915_v0, %v3911_v40  ;;  %v4219_v6 = vld [vmem:[#allocation2 + $0x70] sm:$0xff] }
 0x56b   :  { %v3715_v50 = vpop.permute.xlu1 %3714  ;;  %v3730_v55 = vpop.permute.xlu0 %3729  ;;  %v4408_v3 = vadd.f32 %v4407_v30, %v4406_v57  ;;  %v4171_v58 = vsel %vm2373_vm2, %v3916_v27, %v4170_v5 }
 0x56c   :  { %v4341_v45 = vmul.f32 %v4213_v8, %v3715_v50  ;;  %v4419_v46 = vrot.slane %v4418_v11, 4  ;;  %v3920_v34 = vrot.slane %v3715_v50, %v6425_v60  ;;  %v4414_v36 = vrot.slane %v4413_v53, 2 }
 0x56d   :  { %v4346_v43 = vmul.f32 %v4218_v4, %v3730_v55  ;;  %v3942_v7 = vrot.slane %v3730_v55, %v6420_v17  ;;  %v4409_v57 = vrot.slane %v4408_v3, 1 }
 0x56e   :  { %v4425_v21 = vadd.f32 %v4342_v24, %v4341_v45  ;;  %v4420_v16 = vadd.f32 %v4419_v46, %v4418_v11  ;;  %v3925_v29 = vsel %vm2088_vm0, %v3924_v2, %v3920_v34  ;;  %v4415_v48 = vadd.f32 %v4414_v36, %v4413_v53 }
 0x56f   :  { %v3721_v38 = vpop.permute.xlu1 %3720  ;;  %v3736_v47 = vpop.permute.xlu0 %3735  ;;  %v4172_v31 = vsel %vm2375_vm4, %v3925_v29, %v4171_v58 }
 0x570   :  { %v4426_v41 = vrot.slane %v4425_v21, 4  ;;  %v4343_v14 = vmul.f32 %v4215_v61, %v3721_v38  ;;  %v3929_v39 = vrot.slane %v3721_v38, %v6425_v60  ;;  %v4421_v13 = vrot.slane %v4420_v16, 2 }
 0x571   :  { %v3951_v42 = vrot.slane %v3736_v47, %v6420_v17  ;;  %v4348_v50 = vmul.f32 %v4220_v23, %v3736_v47  ;;  %v4416_v53 = vrot.slane %v4415_v48, 1  ;;  %v4239_v47 = vld [vmem:[#allocation2 + $0x110] sm:$0xff] }
 0x572   :  { %v4427_v32 = vadd.f32 %v4426_v41, %v4425_v21  ;;  %v4432_v1 = vadd.f32 %v4344_v62, %v4343_v14  ;;  %v3934_v54 = vsel %vm2088_vm0, %v3933_v35, %v3929_v39  ;;  %v4422_v24 = vadd.f32 %v4421_v13, %v4420_v16  ;;  %v4238_v62 = vld [vmem:[#allocation2 + $0x108] sm:$0xff] }
 0x573   :  { %v3727_v59 = vpop.permute.xlu1 %3726  ;;  %v4173_v18 = vsel %vm2377_vm5, %v3934_v54, %v4172_v31  ;;  %v4410_v14 = vadd.f32 %v4409_v57, %v4408_v3  ;;  %v4417_v16 = vadd.f32 %v4416_v53, %v4415_v48  ;;  %v4403_v39 = vadd.f32 %v4402_v26, %v7181_v19  ;;  %v4243_v31 = vld [vmem:[#allocation2 + $0x130] sm:$0xff]  ;;  %v4245_v26 = vld [vmem:[#allocation2 + $0x140] sm:$0xff] }
 0x574   :  { %v3938_v10 = vrot.slane %v3727_v59, %v6425_v60  ;;  %v4345_v25 = vmul.f32 %v4217_v44, %v3727_v59  ;;  %v4433_v15 = vrot.slane %v4432_v1, 4  ;;  %v4428_v52 = vrot.slane %v4427_v32, 2 }
 0x575   :  { %v4423_v4 = vrot.slane %v4422_v24, 1  ;;  %v4653_v3 = vsel %vm2369_vm1, %v4410_v14, %v4403_v39 }
 0x576   :  { %v4439_v56 = vadd.f32 %v4346_v43, %v4345_v25  ;;  %v4434_v11 = vadd.f32 %v4433_v15, %v4432_v1  ;;  %v3943_v37 = vsel %vm2088_vm0, %v3942_v7, %v3938_v10  ;;  %v4429_v45 = vadd.f32 %v4428_v52, %v4427_v32  ;;  %v4240_v43 = vld [vmem:[#allocation2 + $0x118] sm:$0xff]  ;;  %v4241_v25 = vld [vmem:[#allocation2 + $0x120] sm:$0xff] }
 0x577   :  { %v7200_v8 = vpop.permute.xlu0 %3789  ;;  %v3733_v28 = vpop.permute.xlu1 %3732  ;;  %v4174_v49 = vsel %vm2379_vm6, %v3943_v37, %v4173_v18  ;;  %v4424_v5 = vadd.f32 %v4423_v4, %v4422_v24  ;;  %v4654_v7 = vsel %vm2371_vm3, %v4417_v16, %v4653_v3 }
 0x578   :  { %v4440_v12 = vrot.slane %v4439_v56, 4  ;;  %v4435_v9 = vrot.slane %v4434_v11, 2  ;;  %v3947_v63 = vrot.slane %v3733_v28, %v6425_v60  ;;  %v4347_v51 = vmul.f32 %v4219_v6, %v3733_v28  ;;  %v4244_v28 = vld [vmem:[#allocation2 + $0x138] sm:$0xff] }
 0x579   :  { %v4430_v44 = vrot.slane %v4429_v45, 1  ;;  %v4366_v32 = vmul.f32 %v4238_v62, %v7200_v8  ;;  %v4655_v54 = vsel %vm2373_vm2, %v4424_v5, %v4654_v7 }
 0x57a   :  { %v4441_v55 = vadd.f32 %v4440_v12, %v4439_v56  ;;  %v3952_v40 = vsel %vm2088_vm0, %v3951_v42, %v3947_v63  ;;  %v4446_v46 = vadd.f32 %v4348_v50, %v4347_v51  ;;  %v4436_v21 = vadd.f32 %v4435_v9, %v4434_v11  ;;  %v4242_v56 = vld [vmem:[#allocation2 + $0x128] sm:$0xff] }
 0x57b   :  { %v7209_v61 = vpop.permute.xlu0 %3795  ;;  %v7211_v20 = vpop.permute.xlu1 %3786  ;;  %v4175_v0 = vsel %vm2381_vm7, %v3952_v40, %v4174_v49  ;;  %v4431_v35 = vadd.f32 %v4430_v44, %v4429_v45 }
 0x57c   :  { %v4442_v38 = vrot.slane %v4441_v55, 2  ;;  %4201 = vst.msk [vmem:[%s7517_s8] sm:$0xff] %vm2408_vm8, %v4175_v0  ;;  %v4447_v30 = vrot.slane %v4446_v46, 4  ;;  %v4365_v41 = vmul.f32 %v4237_v33, %v7211_v20  ;;  %v4437_v36 = vrot.slane %v4436_v21, 1 }
 0x57d   :  { %v4368_v48 = vmul.f32 %v4240_v43, %v7209_v61  ;;  %v4656_v42 = vsel %vm2375_vm4, %v4431_v35, %v4655_v54  ;;  %v4028_v33 = vrot.slane %v7211_v20, %v6425_v60 }
 0x57e   :  { %v4443_v34 = vadd.f32 %v4442_v38, %v4441_v55  ;;  %v4448_v22 = vadd.f32 %v4447_v30, %v4446_v46  ;;  %v4509_v10 = vadd.f32 %v4366_v32, %v4365_v41  ;;  %v4438_v23 = vadd.f32 %v4437_v36, %v4436_v21  ;;  %v4246_v21 = vld [vmem:[#allocation2 + $0x148] sm:$0xff]  ;;  %v4248_v36 = vld [vmem:[#allocation2 + $0x158] sm:$0xff] }
 0x57f   :  { %v7220_v2 = vpop.permute.xlu0 %3801  ;;  %v3793_v27 = vpop.permute.xlu1 %3792  ;;  %v4041_v46 = vrot.slane %v7209_v61, %v6420_v17  ;;  %v4032_v30 = vrot.slane %v7200_v8, %v6420_v17 }
 0x580   :  { %v4444_v1 = vrot.slane %v4443_v34, 1  ;;  %v4449_v59 = vrot.slane %v4448_v22, 2  ;;  %v4367_v15 = vmul.f32 %v4239_v47, %v3793_v27  ;;  %v4510_v11 = vrot.slane %v4509_v10, 4  ;;  %v4247_v47 = vld [vmem:[#allocation2 + $0x150] sm:$0xff] }
 0x581   :  { %v4370_v12 = vmul.f32 %v4242_v56, %v7220_v2  ;;  %v4037_v51 = vrot.slane %v3793_v27, %v6425_v60  ;;  %v4657_v57 = vsel %vm2377_vm5, %v4438_v23, %v4656_v42  ;;  %v4033_v20 = vsel %vm2088_vm0, %v4032_v30, %v4028_v33  ;;  %v4250_v23 = vld [vmem:[#allocation2 + $0x168] sm:$0xff]  ;;  %v4252_v33 = vld [vmem:[#allocation2 + $0x178] sm:$0xff] }
 0x582   :  { %v4450_v29 = vadd.f32 %v4449_v59, %v4448_v22  ;;  %v4445_v6 = vadd.f32 %v4444_v1, %v4443_v34  ;;  %v4516_v50 = vadd.f32 %v4368_v48, %v4367_v15  ;;  %v4511_v49 = vadd.f32 %v4510_v11, %v4509_v10 }
 0x583   :  { %v7225_v58 = vpop.permute.xlu0 %3807  ;;  %v3799_v13 = vpop.permute.xlu1 %3798  ;;  %v4042_v4 = vsel %vm2088_vm0, %v4041_v46, %v4037_v51  ;;  %v4050_v22 = vrot.slane %v7220_v2, %v6420_v17 }
 0x584   :  { %v4451_v19 = vrot.slane %v4450_v29, 1  ;;  %v4369_v52 = vmul.f32 %v4241_v25, %v3799_v13  ;;  %v4372_v24 = vmul.f32 %v4244_v28, %v7225_v58  ;;  %v4658_v45 = vsel %vm2379_vm6, %v4445_v6, %v4657_v57 }
 0x585   :  { %v4517_v53 = vrot.slane %v4516_v50, 4  ;;  %v4046_v34 = vrot.slane %v3799_v13, %v6425_v60  ;;  %v4512_v14 = vrot.slane %v4511_v49, 2  ;;  %v4183_v8 = vsel %vm2369_vm1, %v4042_v4, %v4033_v20 }
 0x586   :  { %v4452_v37 = vadd.f32 %v4451_v19, %v4450_v29  ;;  %v4523_v18 = vadd.f32 %v4370_v12, %v4369_v52  ;;  %v4059_v5 = vrot.slane %v7225_v58, %v6420_v17  ;;  %v4249_v19 = vld [vmem:[#allocation2 + $0x160] sm:$0xff] }
 0x587   :  { %v3814_v9 = vpop.permute.xlu0 %3813  ;;  %v3805_v63 = vpop.permute.xlu1 %3804  ;;  %v4518_v27 = vadd.f32 %v4517_v53, %v4516_v50  ;;  %v4051_v43 = vsel %vm2088_vm0, %v4050_v22, %v4046_v34  ;;  %v7254_v2 = vadd.f32 %v4512_v14, %v4511_v49 }
 0x588   :  { %v4371_v55 = vmul.f32 %v4243_v31, %v3805_v63  ;;  %v4659_v40 = vsel %vm2381_vm7, %v4452_v37, %v4658_v45  ;;  %v4524_v41 = vrot.slane %v4523_v18, 4  ;;  %v4374_v61 = vmul.f32 %v4246_v21, %v3814_v9  ;;  %v4251_v45 = vld [vmem:[#allocation2 + $0x170] sm:$0xff] }
 0x589   :  { %4685 = vst [vmem:[#allocation8] sm:$0xff] %v4659_v40  ;;  %v4055_v1 = vrot.slane %v3805_v63, %v6425_v60  ;;  %v4519_v15 = vrot.slane %v4518_v27, 2  ;;  %v4068_v13 = vrot.slane %v3814_v9, %v6420_v17  ;;  %v4184_v48 = vsel %vm2371_vm3, %v4051_v43, %v4183_v8 }
 0x58a   :  { %v4530_v38 = vadd.f32 %v4372_v24, %v4371_v55  ;;  %v4525_v10 = vadd.f32 %v4524_v41, %v4523_v18 }
 0x58b   :  { %v3820_v0 = vpop.permute.xlu0 %3819  ;;  %v3811_v62 = vpop.permute.xlu1 %3810  ;;  %v4060_v52 = vsel %vm2088_vm0, %v4059_v5, %v4055_v1  ;;  %v4520_v51 = vadd.f32 %v4519_v15, %v4518_v27  ;;  %v4514_v5 = vrot.slane %v7254_v2, 1 }
 0x58c   :  { %v4373_v44 = vmul.f32 %v4245_v26, %v3811_v62  ;;  %v4531_v16 = vrot.slane %v4530_v38, 4  ;;  %v4064_v25 = vrot.slane %v3811_v62, %v6425_v60  ;;  %v4376_v3 = vmul.f32 %v4248_v36, %v3820_v0 }
 0x58d   :  { %v4526_v28 = vrot.slane %v4525_v10, 2  ;;  %v4077_v31 = vrot.slane %v3820_v0, %v6420_v17  ;;  %v4185_v57 = vsel %vm2373_vm2, %v4060_v52, %v4184_v48  ;;  %v4515_v48 = vadd.f32 %v4514_v5, %v7254_v2 }
 0x58e   :  { %v4537_v59 = vadd.f32 %v4374_v61, %v4373_v44  ;;  %v4532_v7 = vadd.f32 %v4531_v16, %v4530_v38  ;;  %v4069_v42 = vsel %vm2088_vm0, %v4068_v13, %v4064_v25  ;;  %v4253_v25 = vld [vmem:[#allocation2 + $0x180] sm:$0xff] }
 0x58f   :  { %v3826_v32 = vpop.permute.xlu0 %3825  ;;  %v3817_v39 = vpop.permute.xlu1 %3816  ;;  %v4527_v38 = vadd.f32 %v4526_v28, %v4525_v10  ;;  %v4186_v0 = vsel %vm2375_vm4, %v4069_v42, %v4185_v57 }
 0x590   :  { %v4538_v35 = vrot.slane %v4537_v59, 4  ;;  %v4375_v29 = vmul.f32 %v4247_v47, %v3817_v39  ;;  %v4073_v56 = vrot.slane %v3817_v39, %v6425_v60  ;;  %v4086_v12 = vrot.slane %v3826_v32, %v6420_v17 }
 0x591   :  { %v4378_v50 = vmul.f32 %v4250_v23, %v3826_v32  ;;  %v4533_v24 = vrot.slane %v4532_v7, 2  ;;  %v4521_v47 = vrot.slane %v4520_v51, 1  ;;  %v4528_v1 = vrot.slane %v4527_v38, 1  ;;  %v4254_v23 = vld [vmem:[#allocation2 + $0x188] sm:$0xff] }
 0x592   :  { %v4539_v54 = vadd.f32 %v4538_v35, %v4537_v59  ;;  %v4544_v11 = vadd.f32 %v4376_v3, %v4375_v29  ;;  %v4078_v18 = vsel %vm2088_vm0, %v4077_v31, %v4073_v56 }
 0x593   :  { %v3832_v6 = vpop.permute.xlu0 %3831  ;;  %v3823_v58 = vpop.permute.xlu1 %3822  ;;  %v4187_v30 = vsel %vm2377_vm5, %v4078_v18, %v4186_v0  ;;  %v4534_v14 = vadd.f32 %v4533_v24, %v4532_v7  ;;  %v4522_v13 = vadd.f32 %v4521_v47, %v4520_v51 }
 0x594   :  { %v4082_v37 = vrot.slane %v3823_v58, %v6425_v60  ;;  %v4545_v9 = vrot.slane %v4544_v11, 4  ;;  %v4377_v63 = vmul.f32 %v4249_v19, %v3823_v58  ;;  %v4540_v40 = vrot.slane %v4539_v54, 2 }
 0x595   :  { %v4095_v26 = vrot.slane %v3832_v6, %v6420_v17  ;;  %v4380_v61 = vmul.f32 %v4252_v33, %v3832_v6  ;;  %v4535_v43 = vrot.slane %v4534_v14, 1  ;;  %v4529_v6 = vadd.f32 %v4528_v1, %v4527_v38 }
 0x596   :  { %v4546_v46 = vadd.f32 %v4545_v9, %v4544_v11  ;;  %v4087_v53 = vsel %vm2088_vm0, %v4086_v12, %v4082_v37  ;;  %v4551_v21 = vadd.f32 %v4378_v50, %v4377_v63  ;;  %v4541_v16 = vadd.f32 %v4540_v40, %v4539_v54  ;;  %v4255_v11 = vld [vmem:[#allocation2 + $0x190] sm:$0xff]  ;;  %v4256_v63 = vld [vmem:[#allocation2 + $0x198] sm:$0xff] }
 0x597   :  { %v7266_v55 = vpop.permute.xlu0 %3837  ;;  %v3829_v49 = vpop.permute.xlu1 %3828  ;;  %v4188_v44 = vsel %vm2379_vm6, %v4087_v53, %v4187_v30  ;;  %v4536_v52 = vadd.f32 %v4535_v43, %v4534_v14  ;;  %v4667_v12 = vsel %vm2369_vm1, %v4522_v13, %v4515_v48  ;;  %v4257_v53 = vld [vmem:[#allocation2 + $0x1a0] sm:$0xff] }
 0x598   :  { %v4091_v62 = vrot.slane %v3829_v49, %v6425_v60  ;;  %v4547_v4 = vrot.slane %v4546_v46, 2  ;;  %v4552_v34 = vrot.slane %v4551_v21, 4  ;;  %v4379_v41 = vmul.f32 %v4251_v45, %v3829_v49 }
 0x599   :  { %v4542_v29 = vrot.slane %v4541_v16, 1  ;;  %v4382_v37 = vmul.f32 %v4254_v23, %v7266_v55  ;;  %v4668_v51 = vsel %vm2371_vm3, %v4529_v6, %v4667_v12  ;;  %v4265_v12 = vld [vmem:[#allocation2 + $0x1e0] sm:$0xff] }
 0x59a   :  { %v4096_v20 = vsel %vm2088_vm0, %v4095_v26, %v4091_v62  ;;  %v4553_v36 = vadd.f32 %v4552_v34, %v4551_v21  ;;  %v4548_v39 = vadd.f32 %v4547_v4, %v4546_v46  ;;  %v4558_v8 = vadd.f32 %v4380_v61, %v4379_v41  ;;  %v4258_v26 = vld [vmem:[#allocation2 + $0x1a8] sm:$0xff] }
 0x59b   :  { %v7275_v22 = vpop.permute.xlu0 %3843  ;;  %v7277_v27 = vpop.permute.xlu1 %3834  ;;  %v4189_v32 = vsel %vm2381_vm7, %v4096_v20, %v4188_v44  ;;  %v4543_v42 = vadd.f32 %v4542_v29, %v4541_v16  ;;  %v4669_v18 = vsel %vm2373_vm2, %v4536_v52, %v4668_v51  ;;  %v4262_v29 = vld [vmem:[#allocation2 + $0x1c8] sm:$0xff] }
 0x59c   :  { %4203 = vst.msk [vmem:[%s7517_s8 + $0x10] sm:$0xff] %vm2408_vm8, %v4189_v32  ;;  %v4554_v59 = vrot.slane %v4553_v36, 2  ;;  %v4559_v10 = vrot.slane %v4558_v8, 4  ;;  %v4549_v7 = vrot.slane %v4548_v39, 1  ;;  %v4381_v58 = vmul.f32 %v4253_v25, %v7277_v27  ;;  %v4259_v32 = vld [vmem:[#allocation2 + $0x1b0] sm:$0xff]  ;;  %v4222_v51 = vld [vmem:[#allocation2 + $0x88] sm:$0xff] }
 0x59d   :  { %v4670_v46 = vsel %vm2375_vm4, %v4543_v42, %v4669_v18  ;;  %v4384_v33 = vmul.f32 %v4256_v63, %v7275_v22  ;;  %v4113_v43 = vrot.slane %v7275_v22, %v6420_v17  ;;  %v4264_v63 = vld [vmem:[#allocation2 + $0x1d8] sm:$0xff] }
 0x59e   :  { %v4555_v15 = vadd.f32 %v4554_v59, %v4553_v36  ;;  %v4560_v56 = vadd.f32 %v4559_v10, %v4558_v8  ;;  %v4550_v50 = vadd.f32 %v4549_v7, %v4548_v39  ;;  %v4565_v24 = vadd.f32 %v4382_v37, %v4381_v58  ;;  %v4261_v39 = vld [vmem:[#allocation2 + $0x1c0] sm:$0xff]  ;;  %v4260_v59 = vld [vmem:[#allocation2 + $0x1b8] sm:$0xff] }
 0x59f   :  { %v7285_v3 = vpop.permute.xlu0 %3849  ;;  %v7287_v35 = vpop.permute.xlu1 %3840  ;;  %v4100_v10 = vrot.slane %v7277_v27, %v6425_v60 }
 0x5a0   :  { %v4556_v19 = vrot.slane %v4555_v15, 1  ;;  %v4561_v54 = vrot.slane %v4560_v56, 2  ;;  %v4383_v2 = vmul.f32 %v4255_v11, %v7287_v35  ;;  %v4671_v38 = vsel %vm2377_vm5, %v4550_v50, %v4670_v46 }
 0x5a1   :  { %v4566_v0 = vrot.slane %v4565_v24, 4  ;;  %v4386_v14 = vmul.f32 %v4258_v26, %v7285_v3  ;;  %v4109_v47 = vrot.slane %v7287_v35, %v6425_v60  ;;  %v4122_v35 = vrot.slane %v7285_v3, %v6420_v17  ;;  %v4263_v3 = vld [vmem:[#allocation2 + $0x1d0] sm:$0xff] }
 0x5a2   :  { %v4562_v9 = vadd.f32 %v4561_v54, %v4560_v56  ;;  %v4557_v57 = vadd.f32 %v4556_v19, %v4555_v15  ;;  %v4572_v62 = vadd.f32 %v4384_v33, %v4383_v2  ;;  %v4104_v56 = vrot.slane %v7266_v55, %v6420_v17  ;;  %v4224_v33 = vld [vmem:[#allocation2 + $0x98] sm:$0xff] }
 0x5a3   :  { %v7291_v28 = vpop.permute.xlu0 %3855  ;;  %v3847_v31 = vpop.permute.xlu1 %3846  ;;  %v4567_v44 = vadd.f32 %v4566_v0, %v4565_v24  ;;  %v4114_v22 = vsel %vm2088_vm0, %v4113_v43, %v4109_v47 }
 0x5a4   :  { %v4563_v45 = vrot.slane %v4562_v9, 1  ;;  %v4672_v30 = vsel %vm2379_vm6, %v4557_v57, %v4671_v38  ;;  %v4385_v4 = vmul.f32 %v4257_v53, %v3847_v31  ;;  %v4573_v20 = vrot.slane %v4572_v62, 4  ;;  %v4221_v57 = vld [vmem:[#allocation2 + $0x80] sm:$0xff]  ;;  %v4223_v53 = vld [vmem:[#allocation2 + $0x90] sm:$0xff] }
 0x5a5   :  { %v4568_v8 = vrot.slane %v4567_v44, 2  ;;  %v4118_v5 = vrot.slane %v3847_v31, %v6425_v60  ;;  %v4388_v27 = vmul.f32 %v4260_v59, %v7291_v28  ;;  %v4105_v52 = vsel %vm2088_vm0, %v4104_v56, %v4100_v10  ;;  %v4225_v10 = vld [vmem:[#allocation2 + $0xa0] sm:$0xff] }
 0x5a6   :  { %v4564_v21 = vadd.f32 %v4563_v45, %v4562_v9  ;;  %v4579_v16 = vadd.f32 %v4386_v14, %v4385_v4  ;;  %v4574_v1 = vadd.f32 %v4573_v20, %v4572_v62  ;;  %v4190_v55 = vsel %vm2369_vm1, %v4114_v22, %v4105_v52  ;;  %v4266_v45 = vld [vmem:[#allocation2 + $0x1e8] sm:$0xff] }
 0x5a7   :  { %v7298_v49 = vpop.permute.xlu0 %3861  ;;  %v7300_v40 = vpop.permute.xlu1 %3852  ;;  %v4569_v6 = vadd.f32 %v4568_v8, %v4567_v44  ;;  %v4123_v58 = vsel %vm2088_vm0, %v4122_v35, %v4118_v5  ;;  %v4131_v50 = vrot.slane %v7291_v28, %v6420_v17 }
 0x5a8   :  { %v4673_v41 = vsel %vm2381_vm7, %v4564_v21, %v4672_v30  ;;  %v4580_v25 = vrot.slane %v4579_v16, 4  ;;  %v4387_v15 = vmul.f32 %v4259_v32, %v7300_v40  ;;  %v4575_v19 = vrot.slane %v4574_v1, 2 }
 0x5a9   :  { %4687 = vst [vmem:[#allocation8 + $0x10] sm:$0xff] %v4673_v41  ;;  %v4390_v48 = vmul.f32 %v4262_v29, %v7298_v49  ;;  %v4191_v9 = vsel %vm2371_vm3, %v4123_v58, %v4190_v55  ;;  %v4570_v24 = vrot.slane %v4569_v6, 1  ;;  %v4127_v18 = vrot.slane %v7300_v40, %v6425_v60 }
 0x5aa   :  { %v4581_v54 = vadd.f32 %v4580_v25, %v4579_v16  ;;  %v4586_v11 = vadd.f32 %v4388_v27, %v4387_v15  ;;  %v4576_v2 = vadd.f32 %v4575_v19, %v4574_v1  ;;  %v4140_v14 = vrot.slane %v7298_v49, %v6420_v17  ;;  %v4226_v16 = vld [vmem:[#allocation2 + $0xa8] sm:$0xff] }
 0x5ab   :  { %v7306_v34 = vpop.permute.xlu1 %3858  ;;  %v7310_v61 = vpop.permute.xlu0 %3867  ;;  %v7362_v32 = vadd.f32 %v4570_v24, %v4569_v6 }
 0x5ac   :  { %v4389_v23 = vmul.f32 %v4261_v39, %v7306_v34  ;;  %v4582_v21 = vrot.slane %v4581_v54, 2  ;;  %v4587_v38 = vrot.slane %v4586_v11, 4  ;;  %v4136_v28 = vrot.slane %v7306_v34, %v6425_v60 }
 0x5ad   :  { %v4392_v30 = vmul.f32 %v4264_v63, %v7310_v61  ;;  %v4577_v47 = vrot.slane %v4576_v2, 1  ;;  %v4132_v39 = vsel %vm2088_vm0, %v4131_v50, %v4127_v18  ;;  %v4149_v22 = vrot.slane %v7310_v61, %v6420_v17 }
 0x5ae   :  { %v4593_v37 = vadd.f32 %v4390_v48, %v4389_v23  ;;  %v7365_v1 = vadd.f32 %v4582_v21, %v4581_v54  ;;  %v4588_v59 = vadd.f32 %v4587_v38, %v4586_v11  ;;  %v4141_v5 = vsel %vm2088_vm0, %v4140_v14, %v4136_v28  ;;  %v4227_v54 = vld [vmem:[#allocation2 + $0xb0] sm:$0xff] }
 0x5af   :  { %v7312_v36 = vpop.permute.xlu1 %3864  ;;  %v7322_v13 = vpop.permute.xlu0 %3873  ;;  %v4192_v56 = vsel %vm2373_vm2, %v4132_v39, %v4191_v9  ;;  %v7380_v19 = vadd.f32 %v4577_v47, %v4576_v2  ;;  %v4232_v39 = vld [vmem:[#allocation2 + $0xd8] sm:$0xff] }
 0x5b0   :  { %v4391_v46 = vmul.f32 %v4263_v3, %v7312_v36  ;;  %v4594_v4 = vrot.slane %v4593_v37, 4  ;;  %v4394_v44 = vmul.f32 %v4266_v45, %v7322_v13  ;;  %v4145_v15 = vrot.slane %v7312_v36, %v6425_v60  ;;  %v4228_v36 = vld [vmem:[#allocation2 + $0xb8] sm:$0xff] }
 0x5b1   :  { %v4193_v58 = vsel %vm2375_vm4, %v4141_v5, %v4192_v56  ;;  %v4584_v11 = vrot.slane %v7365_v1, 1  ;;  %v4589_v3 = vrot.slane %v4588_v59, 2  ;;  %v4158_v55 = vrot.slane %v7322_v13, %v6420_v17 }
 0x5b2   :  { %v4600_v8 = vadd.f32 %v4392_v30, %v4391_v46  ;;  %v4595_v29 = vadd.f32 %v4594_v4, %v4593_v37  ;;  %v4150_v50 = vsel %vm2088_vm0, %v4149_v22, %v4145_v15  ;;  %v4229_v30 = vld [vmem:[#allocation2 + $0xc0] sm:$0xff] }
 0x5b3   :  { %v7324_v7 = vpop.permute.xlu1 %3870 }
 0x5b4   :  { %v4393_v0 = vmul.f32 %v4265_v12, %v7324_v7  ;;  %v4154_v27 = vrot.slane %v7324_v7, %v6425_v60  ;;  %v4601_v48 = vrot.slane %v4600_v8, 4  ;;  %v4596_v12 = vrot.slane %v4595_v29, 2 }
 0x5b6   :  { %v4607_v43 = vadd.f32 %v4394_v44, %v4393_v0  ;;  %v7395_v18 = vadd.f32 %v4601_v48, %v4600_v8 }
 0x5b7   :  { %v7336_v31 = vpop.permute.xlu0 %3741  ;;  %v7338_v42 = vpop.permute.xlu1 %3738 }
 0x5b8   :  { %v4350_v40 = vmul.f32 %v4222_v51, %v7336_v31  ;;  %v4349_v41 = vmul.f32 %v4221_v57, %v7338_v42  ;;  %v4608_v61 = vrot.slane %v4607_v43, 4  ;;  %v4159_v51 = vsel %vm2088_vm0, %v4158_v55, %v4154_v27 }
 0x5b9   :  { %v3960_v13 = vrot.slane %v7336_v31, %v6420_v17  ;;  %v3956_v21 = vrot.slane %v7338_v42, %v6425_v60  ;;  %v7409_v31 = vadd.f32 %v4596_v12, %v4595_v29  ;;  %v4233_v12 = vld [vmem:[#allocation2 + $0xe0] sm:$0xff] }
 0x5ba   :  { %v4453_v35 = vadd.f32 %v4350_v40, %v4349_v41  ;;  %v7407_v40 = vadd.f32 %v4589_v3, %v4588_v59 }
 0x5bb   :  { %v7350_v26 = vpop.permute.xlu0 %3747  ;;  %v7352_v62 = vpop.permute.xlu1 %3744  ;;  %v3961_v59 = vsel %vm2088_vm0, %v3960_v13, %v3956_v21 }
 0x5bc   :  { %v4352_v34 = vmul.f32 %v4224_v33, %v7350_v26  ;;  %v4351_v20 = vmul.f32 %v4223_v53, %v7352_v62  ;;  %v4454_v9 = vrot.slane %v4453_v35, 4  ;;  %v3969_v45 = vrot.slane %v7350_v26, %v6420_v17  ;;  %v4230_v33 = vld [vmem:[#allocation2 + $0xc8] sm:$0xff] }
 0x5bd   :  { %v3965_v46 = vrot.slane %v7352_v62, %v6425_v60  ;;  %v7403_v53 = vadd.f32 %v4608_v61, %v4607_v43  ;;  %v4194_v26 = vsel %vm2377_vm5, %v4150_v50, %v4193_v58 }
 0x5be   :  { %v4460_v6 = vadd.f32 %v4352_v34, %v4351_v20  ;;  %v4455_v41 = vadd.f32 %v4454_v9, %v4453_v35  ;;  %v4603_v34 = vrot.slane %v7395_v18, 2  ;;  %v7418_v20 = vsel %vm2379_vm6, %v4159_v51, %v4194_v26 }
 0x5bf   :  { %v7368_v49 = vpop.permute.xlu0 %3753  ;;  %v7370_v25 = vpop.permute.xlu1 %3750  ;;  %v4610_v8 = vrot.slane %v7403_v53, 2 }
 0x5c0   :  { %v4354_v23 = vmul.f32 %v4226_v16, %v7368_v49  ;;  %v4353_v52 = vmul.f32 %v4225_v10, %v7370_v25  ;;  %v4461_v57 = vrot.slane %v4460_v6, 4  ;;  %v3978_v62 = vrot.slane %v7368_v49, %v6420_v17  ;;  %v4231_v10 = vld [vmem:[#allocation2 + $0xd0] sm:$0xff] }
 0x5c1   :  { %v3974_v44 = vrot.slane %v7370_v25, %v6425_v60  ;;  %v3970_v16 = vsel %vm2088_vm0, %v3969_v45, %v3965_v46  ;;  %v4456_v25 = vrot.slane %v4455_v41, 2 }
 0x5c2   :  { %v4467_v63 = vadd.f32 %v4354_v23, %v4353_v52  ;;  %v4462_v14 = vadd.f32 %v4461_v57, %v4460_v6  ;;  %v4176_v56 = vsel %vm2369_vm1, %v3970_v16, %v3961_v59 }
 0x5c3   :  { %v7387_v37 = vpop.permute.xlu0 %3759  ;;  %v7389_v7 = vpop.permute.xlu1 %3756  ;;  %v3979_v27 = vsel %vm2088_vm0, %v3978_v62, %v3974_v44  ;;  %v7433_v9 = vadd.f32 %v4456_v25, %v4455_v41  ;;  %v4235_v62 = vld [vmem:[#allocation2 + $0xf0] sm:$0xff] }
 0x5c4   :  { %v4356_v24 = vmul.f32 %v4228_v36, %v7387_v37  ;;  %v4355_v2 = vmul.f32 %v4227_v54, %v7389_v7  ;;  %v4468_v38 = vrot.slane %v4467_v63, 4  ;;  %v3987_v15 = vrot.slane %v7387_v37, %v6420_v17  ;;  %v4234_v54 = vld [vmem:[#allocation2 + $0xe8] sm:$0xff] }
 0x5c5   :  { %v3983_v35 = vrot.slane %v7389_v7, %v6425_v60  ;;  %v4463_v22 = vrot.slane %v4462_v14, 2 }
 0x5c6   :  { %v4474_v28 = vadd.f32 %v4356_v24, %v4355_v2  ;;  %v4469_v5 = vadd.f32 %v4468_v38, %v4467_v63  ;;  %v4177_v24 = vsel %vm2371_vm3, %v3979_v27, %v4176_v56 }
 0x5c7   :  { %v3766_v0 = vpop.permute.xlu0 %3765  ;;  %v3763_v4 = vpop.permute.xlu1 %3762  ;;  %v3988_v63 = vsel %vm2088_vm0, %v3987_v15, %v3983_v35  ;;  %v4464_v46 = vadd.f32 %v4463_v22, %v4462_v14  ;;  %v4268_v15 = vld [vmem:[#allocation2 + $0x1f8] sm:$0xff] }
 0x5c8   :  { %v4358_v42 = vmul.f32 %v4230_v33, %v3766_v0  ;;  %v4357_v47 = vmul.f32 %v4229_v30, %v3763_v4  ;;  %v4475_v43 = vrot.slane %v4474_v28, 4  ;;  %v3996_v58 = vrot.slane %v3766_v0, %v6420_v17 }
 0x5c9   :  { %v3992_v48 = vrot.slane %v3763_v4, %v6425_v60  ;;  %v4470_v3 = vrot.slane %v4469_v5, 2  ;;  %v4178_v30 = vsel %vm2373_vm2, %v3988_v63, %v4177_v24  ;;  %v4465_v35 = vrot.slane %v4464_v46, 1 }
 0x5ca   :  { %v4481_v23 = vadd.f32 %v4358_v42, %v4357_v47  ;;  %v4476_v55 = vadd.f32 %v4475_v43, %v4474_v28  ;;  %v4236_v28 = vld [vmem:[#allocation2 + $0xf8] sm:$0xff] }
 0x5cb   :  { %v3772_v49 = vpop.permute.xlu0 %3771  ;;  %v3769_v29 = vpop.permute.xlu1 %3768  ;;  %v3997_v33 = vsel %vm2088_vm0, %v3996_v58, %v3992_v48  ;;  %v4471_v0 = vadd.f32 %v4470_v3, %v4469_v5 }
 0x5cc   :  { %v4360_v6 = vmul.f32 %v4232_v39, %v3772_v49  ;;  %v4482_v52 = vrot.slane %v4481_v23, 4  ;;  %v4359_v36 = vmul.f32 %v4231_v10, %v3769_v29  ;;  %v4005_v61 = vrot.slane %v3772_v49, %v6420_v17 }
 0x5cd   :  { %v4001_v37 = vrot.slane %v3769_v29, %v6425_v60  ;;  %v4477_v4 = vrot.slane %v4476_v55, 2  ;;  %v4179_v14 = vsel %vm2375_vm4, %v3997_v33, %v4178_v30 }
 0x5ce   :  { %v4483_v51 = vadd.f32 %v4482_v52, %v4481_v23  ;;  %v4488_v57 = vadd.f32 %v4360_v6, %v4359_v36  ;;  %v4267_v6 = vld [vmem:[#allocation2 + $0x1f0] sm:$0xff] }
 0x5cf   :  { %v3778_v7 = vpop.permute.xlu0 %3777  ;;  %v3775_v50 = vpop.permute.xlu1 %3774  ;;  %v4006_v26 = vsel %vm2088_vm0, %v4005_v61, %v4001_v37  ;;  %v4478_v23 = vadd.f32 %v4477_v4, %v4476_v55 }
 0x5d0   :  { %v4014_v2 = vrot.slane %v3778_v7, %v6420_v17  ;;  %v4362_v13 = vmul.f32 %v4234_v54, %v3778_v7  ;;  %v4010_v45 = vrot.slane %v3775_v50, %v6425_v60  ;;  %v4489_v21 = vrot.slane %v4488_v57, 4 }
 0x5d1   :  { %v4361_v38 = vmul.f32 %v4233_v12, %v3775_v50  ;;  %v4484_v42 = vrot.slane %v4483_v51, 2  ;;  %v4180_v49 = vsel %vm2377_vm5, %v4006_v26, %v4179_v14  ;;  %v4604_v7 = vadd.f32 %v4603_v34, %v7395_v18 }
 0x5d2   :  { %v4490_v16 = vadd.f32 %v4489_v21, %v4488_v57  ;;  %v4015_v47 = vsel %vm2088_vm0, %v4014_v2, %v4010_v45  ;;  %v4472_v12 = vrot.slane %v4471_v0, 1  ;;  %v4479_v57 = vrot.slane %v4478_v23, 1 }
 0x5d3   :  { %v3784_v41 = vpop.permute.xlu0 %3783  ;;  %v3781_v44 = vpop.permute.xlu1 %3780  ;;  %v4495_v39 = vadd.f32 %v4362_v13, %v4361_v38  ;;  %v4181_v56 = vsel %vm2379_vm6, %v4015_v47, %v4180_v49  ;;  %v4485_v58 = vadd.f32 %v4484_v42, %v4483_v51  ;;  %v4458_v51 = vrot.slane %v7433_v9, 1 }
 0x5d4   :  { %v4023_v59 = vrot.slane %v3784_v41, %v6420_v17  ;;  %v4364_v43 = vmul.f32 %v4236_v28, %v3784_v41  ;;  %v4019_v5 = vrot.slane %v3781_v44, %v6425_v60  ;;  %v4491_v10 = vrot.slane %v4490_v16, 2 }
 0x5d5   :  { %v4496_v29 = vrot.slane %v4495_v39, 4  ;;  %v4363_v25 = vmul.f32 %v4235_v62, %v3781_v44  ;;  %v4486_v13 = vrot.slane %v4485_v58, 1  ;;  %v4466_v18 = vadd.f32 %v4465_v35, %v4464_v46 }
 0x5d6   :  { %v4024_v22 = vsel %vm2088_vm0, %v4023_v59, %v4019_v5  ;;  %v4492_v48 = vadd.f32 %v4491_v10, %v4490_v16  ;;  %v4591_v38 = vrot.slane %v7407_v40, 1  ;;  %v4473_v28 = vadd.f32 %v4472_v12, %v4471_v0 }
 0x5d7   :  { %v3880_v27 = vpop.permute.xlu0 %3879  ;;  %v4497_v52 = vadd.f32 %v4496_v29, %v4495_v39  ;;  %v4182_v36 = vsel %vm2381_vm7, %v4024_v22, %v4181_v56  ;;  %v3877_v54 = vpop.permute.xlu1 %3876  ;;  %v4502_v3 = vadd.f32 %v4364_v43, %v4363_v25  ;;  %v4459_v26 = vadd.f32 %v4458_v51, %v7433_v9 }
 0x5d8   :  { %4202 = vst.msk [vmem:[%s7517_s8 + $0x8] sm:$0xff] %vm2408_vm8, %v4182_v36  ;;  %v4167_v55 = vrot.slane %v3880_v27, %v6420_v17  ;;  %v4396_v61 = vmul.f32 %v4268_v15, %v3880_v27  ;;  %v4163_v37 = vrot.slane %v3877_v54, %v6425_v60  ;;  %v4395_v63 = vmul.f32 %v4267_v6, %v3877_v54 }
 0x5d9   :  { %v4498_v50 = vrot.slane %v4497_v52, 2  ;;  %v4503_v24 = vrot.slane %v4502_v3, 4  ;;  %v4611_v60 = vadd.f32 %v4610_v8, %v7403_v53  ;;  %v4493_v34 = vrot.slane %v4492_v48, 1 }
 0x5da   :  { %v4168_v2 = vsel %vm2088_vm0, %v4167_v55, %v4163_v37  ;;  %v4614_v33 = vadd.f32 %v4396_v61, %v4395_v63  ;;  %v4480_v41 = vadd.f32 %v4479_v57, %v4478_v23  ;;  %v4585_v53 = vadd.f32 %v4584_v11, %v7365_v1 }
 0x5db   :  { %v4499_v45 = vadd.f32 %v4498_v50, %v4497_v52  ;;  %v4196_v17 = vsel %vm2381_vm7, %v4168_v2, %v7418_v20  ;;  %v4504_v21 = vadd.f32 %v4503_v24, %v4502_v3  ;;  %v4598_v20 = vrot.slane %v7409_v31, 1 }
 0x5dc   :  { %4204 = vst.msk [vmem:[%s7517_s8 + $0x18] sm:$0xff] %vm2408_vm8, %v4196_v17  ;;  %v4615_v4 = vrot.slane %v4614_v33, 4  ;;  %v4605_v8 = vrot.slane %v4604_v7, 1  ;;  %v4487_v46 = vadd.f32 %v4486_v13, %v4485_v58  ;;  %v4612_v42 = vrot.slane %v4611_v60, 1  ;;  %s5218_s8 = smov [#allocation8]  }
 0x5dd   :  { %v4500_v30 = vrot.slane %v4499_v45, 1  ;;  %v4505_v62 = vrot.slane %v4504_v21, 2  ;;  %v4660_v16 = vsel %vm2369_vm1, %v4466_v18, %v4459_v26  ;;  %v4494_v47 = vadd.f32 %v4493_v34, %v4492_v48  ;;  %s4694_s15 = sshll.u32 %s5218_s8, 4  ;;  %s4695_s15 = int_to_ptr.vmem [resolvable:$true] %s4694_s15 }
 0x5de   :  { %v4616_v44 = vadd.f32 %v4615_v4, %v4614_v33  ;;  %v4592_v39 = vadd.f32 %v4591_v38, %v7407_v40  ;;  %v4661_v14 = vsel %vm2371_vm3, %v4473_v28, %v4660_v16  ;;  %v4599_v43 = vadd.f32 %v4598_v20, %v7409_v31  ;;  %s5181_s16 = scalar_lea.vmem %s4695_s15, 512  ;;  %p5186_p11 = scmp.lt.s32.totalorder %s4695_s15, %s4695_s15 }
 0x5df   :  { %v4506_v0 = vadd.f32 %v4505_v62, %v4504_v21  ;;  %v4501_v59 = vadd.f32 %v4500_v30, %v4499_v45  ;;  %v4662_v5 = vsel %vm2373_vm2, %v4480_v41, %v4661_v14  ;;  %v4674_v1 = vsel %vm2369_vm1, %v7380_v19, %v7362_v32  ;;  %p5182_p10 = scmp.ne.s32.totalorder %s4695_s15, %s5181_s16  ;;  %p5187_p12 = scmp.lt.s32.totalorder %s5181_s16, %s5181_s16 }
 0x5e0   :  { %v4617_v9 = vrot.slane %v4616_v44, 2  ;;  %v4606_v11 = vadd.f32 %v4605_v8, %v4604_v7  ;;  %v4663_v10 = vsel %vm2375_vm4, %v4487_v46, %v4662_v5  ;;  %v4675_v25 = vsel %vm2371_vm3, %v4585_v53, %v4674_v1 }
 0x5e1   :  { %v4507_v49 = vrot.slane %v4506_v0, 1  ;;  %v4613_v40 = vadd.f32 %v4612_v42, %v4611_v60  ;;  %v4664_v35 = vsel %vm2377_vm5, %v4494_v47, %v4663_v10  ;;  %v4676_v23 = vsel %vm2373_vm2, %v4592_v39, %v4675_v25  ;;  %p5188_p13 = por %p5187_p12, %p5186_p11 }
 0x5e2   :  { %v4618_v29 = vadd.f32 %v4617_v9, %v4616_v44  ;;  %v4665_v56 = vsel %vm2379_vm6, %v4501_v59, %v4664_v35  ;;  %v4677_v22 = vsel %vm2375_vm4, %v4599_v43, %v4676_v23 }
 0x5e3   :  { %v4508_v15 = vadd.f32 %v4507_v49, %v4506_v0  ;;  %v4678_v27 = vsel %vm2377_vm5, %v4606_v11, %v4677_v22  ;;  %p5189_p0 = pnand %p5188_p13, %p5182_p10 }
 0x5e4   :  { %v4619_v31 = vrot.slane %v4618_v29, 1  ;;  %v4679_v6 = vsel %vm2379_vm6, %v4613_v40, %v4678_v27 }
 0x5e5   :  { %v4666_v32 = vsel %vm2381_vm7, %v4508_v15, %v4665_v56 }
 0x5e6   :  { %v4620_v19 = vadd.f32 %v4619_v31, %v4618_v29  ;;  %4686 = vst [vmem:[#allocation8 + $0x8] sm:$0xff] %v4666_v32 }
 0x5e8   :  { %v4680_v58 = vsel %vm2381_vm7, %v4620_v19, %v4679_v6 }
 0x5e9   :  { %4688 = vst [vmem:[#allocation8 + $0x18] sm:$0xff] %v4680_v58 }
 0x5ea   :  { %5192 = shalt.err (!%p5189_p0)
}
 0x5eb   :  { %s5193_s25 = scalar_lea.hbm %s7516_s7, 512 }
 0x5ec   :  { %p5194_p1 = scmp.ne.s32.totalorder %s7516_s7, %s5193_s25  ;;  %p5197_p2 = scmp.lt.u32.totalorder %s5193_s25, %s7516_s7 }
 0x5ee   :  { %p5199_p3 = pnand %p5197_p2, %p5194_p1 }
 0x5f0   :  { %5202 = shalt.err (!%p5199_p3)
}
 0x5f1   :  { %4700 = dma.vmem_to_hbm [thread:$0]  %s4695_s15, 512, %s7516_s7, [#allocation4], %s5213_s3, %s5213_s3, %s5214_s28  }
 0x5f2   :  { %5207 = dma.done.wait [#allocation4], 512  }
 0x5f3   :  { %5208 = vsyncadd [#allocation4], 4294966784 }
 0x5f4   :  { %4708 = vsyncpa [#allocation3], 1 }
 0x5f5   :  { %4709 = vsyncpa [#allocation6], 1 }
 0x5f6   :  { %4710 = vsyncpa [#allocation4], 1 }

</bundles_post_ra>
